<compile_context>
chip_gen: v7x
topology: tpu7x:2x2x1
jax: 0.10.0
libtpu: 0.0.40
codegen_flags: <defaults>
</compile_context>

<pallas_src>
import jax
import jax.numpy as jnp
import numpy as np
from jax.experimental import pallas as pl
from jax.experimental.pallas import tpu as pltpu

EPS = 1e-5
LANE = 128


def _round_up(x, m):
    return (x + m - 1) // m * m


def _pick_tile_h(h, target):
    th = min(target, h)
    while h % th:
        th -= 1
    return th


def _conv3x3_kernel(xs_ref, w_ref, y_ref, st_ref, lhs_ref):
    """One (batch, row-tile) step of a SAME 3x3 conv + per-tile BN partial stats.

    xs_ref : (tile_h+2, W+2, Cin) bf16  padded input slab (1-row halo)
    w_ref  : (9*Cin, C)           bf16  taps flattened as (dy, dx, cin) rows
    y_ref  : (tile_h*W, C)        f32   raw (pre-BN) conv output, lane-dense
    st_ref : (2, C)               f32   [sum, sum-of-squares] over this tile's rows
    lhs_ref: (tile_h, W, 9*Cin)   bf16  VMEM im2col scratch
    """
    thp, wp, cin = xs_ref.shape
    th, wd = thp - 2, wp - 2
    # im2col built once in bf16, straight into the scratch at per-tap lane offsets.
    k = 0
    for dy in range(3):
        for dx in range(3):
            lhs_ref[:, :, k * cin:(k + 1) * cin] = xs_ref[dy:dy + th, dx:dx + wd, :]
            k += 1
    lhs = lhs_ref[...].reshape(th * wd, 9 * cin)
    # Single MXU matmul per tile; bf16 operands, f32 accumulation.
    acc = jnp.dot(lhs, w_ref[...], preferred_element_type=jnp.float32)
    y_ref[...] = acc.astype(y_ref.dtype)
    # Per-tile BN partials; reduced across tiles outside the kernel.
    st_ref[...] = jnp.concatenate(
        [jnp.sum(acc, axis=0, keepdims=True),
         jnp.sum(acc * acc, axis=0, keepdims=True)], axis=0)


def _affine_relu_kernel(x_ref, scale_ref, shift_ref, o_ref):
    """Second (cheap) BN pass: out = relu(x * scale + shift), per row tile."""
    y = x_ref[...].astype(jnp.float32) * scale_ref[...] + shift_ref[...]
    o_ref[...] = jnp.maximum(y, 0.0).astype(o_ref.dtype)


def _conv3x3_tiles(x_nhwc, w_flat, tile_h):
    """SAME 3x3 conv (no bias) gridded over row tiles.

    Returns (y_tiles, sum, sumsq):
      y_tiles : (N*HT, tile_h*W, C) f32 raw pre-BN conv output in tile-major layout
      sum/sumsq : (C,) f32 batch-statistics accumulators over all N*H*W positions
    """
    n, h, wd, cin = x_nhwc.shape
    c = w_flat.shape[1]
    ht = h // tile_h
    nt = n * ht
    thp, wp = tile_h + 2, wd + 2
    rows = tile_h * wd

    # SAME padding + overlapping row slabs (1-row halo duplicated in HBM) so every grid step
    # is a plain rectangular BlockSpec tile => automatic double-buffered pipelining.
    xpad = jnp.pad(x_nhwc.astype(jnp.bfloat16), ((0, 0), (1, 1), (1, 1), (0, 0)))
    slabs = jnp.stack([xpad[:, t * tile_h:t * tile_h + thp] for t in range(ht)], axis=1)
    slabs = slabs.reshape(nt, thp, wp, cin)

    # Per-step VMEM working set (double-buffered slabs / outputs + resident weights + scratch).
    step_bytes = (2 * thp * wp * cin * 2 + w_flat.size * 2
                  + 2 * rows * c * 4 + rows * 9 * cin * 2 + 2 * 2 * c * 4)
    vmem_limit = int(min(max(4 * step_bytes, 16 << 20), 100 << 20))
    # NOTE: on v7x (64 MiB VMEM/TC) choose tile_h so this stays well under ~48 MiB.

    flops = 2 * nt * rows * 9 * cin * c
    bytes_accessed = slabs.size * 2 + w_flat.size * 2 + nt * rows * c * 4 + nt * 2 * c * 4

    y, stats = pl.pallas_call(
        _conv3x3_kernel,
        grid=(nt,),
        in_specs=[
            pl.BlockSpec((None, thp, wp, cin), lambda i: (i, 0, 0, 0)),
            pl.BlockSpec((9 * cin, c), lambda i: (0, 0)),
        ],
        out_specs=(
            pl.BlockSpec((None, rows, c), lambda i: (i, 0, 0)),
            pl.BlockSpec((None, 2, c), lambda i: (i, 0, 0)),
        ),
        out_shape=(
            jax.ShapeDtypeStruct((nt, rows, c), jnp.float32),
            jax.ShapeDtypeStruct((nt, 2, c), jnp.float32),
        ),
        scratch_shapes=[pltpu.VMEM((tile_h, wd, 9 * cin), jnp.bfloat16)],
        compiler_params=pltpu.CompilerParams(
            dimension_semantics=("parallel",), vmem_limit_bytes=vmem_limit),
        cost_estimate=pl.CostEstimate(flops=flops, transcendentals=0,
                                      bytes_accessed=bytes_accessed),
    )(slabs, w_flat)

    red = jnp.sum(stats, axis=0)          # (2, C) cross-tile (pairwise-ish) reduction
    return y, red[0], red[1]


def _affine_relu(x_tiles, scale, shift, out_dtype):
    """Gridded normalize + ReLU pass over the tile-major conv output."""
    nt, rows, c = x_tiles.shape
    return pl.pallas_call(
        _affine_relu_kernel,
        grid=(nt,),
        in_specs=[
            pl.BlockSpec((None, rows, c), lambda i: (i, 0, 0)),
            pl.BlockSpec((1, c), lambda i: (0, 0)),
            pl.BlockSpec((1, c), lambda i: (0, 0)),
        ],
        out_specs=pl.BlockSpec((None, rows, c), lambda i: (i, 0, 0)),
        out_shape=jax.ShapeDtypeStruct((nt, rows, c), out_dtype),
        compiler_params=pltpu.CompilerParams(dimension_semantics=("parallel",)),
    )(x_tiles, scale, shift)


def _bn_affine(s, ss, gamma, beta, count):
    """Fold PyTorch training-mode BN (biased batch var) into per-channel scale/shift."""
    mean = s / count
    var = jnp.maximum(ss / count - mean * mean, 0.0)   # guard E[x^2]-E[x]^2 rounding
    scale = gamma * jax.lax.rsqrt(var + EPS)
    shift = beta - mean * scale
    return (scale.reshape(1, -1).astype(jnp.float32),
            shift.reshape(1, -1).astype(jnp.float32))


def conv_block_nhwc(x_nhwc, params, tile_h=None):
    """Fused conv_block_nested on NHWC input.

    Returns (N, H, W, CoutP) bf16 with CoutP = round_up(out_ch, 128); padded channels are
    exactly zero so callers may keep the padded lane-dense layout or slice it off.
    """
    # Conv biases are ignored: training-mode BN subtracts the batch mean, so a per-channel
    # constant bias cancels exactly.
    w1, _b1, g1, be1, w2, _b2, g2, be2 = params
    n, h, wd, cin = x_nhwc.shape
    cmid = w1.shape[-1]
    cout = w2.shape[-1]
    coutp = _round_up(cout, LANE)
    if tile_h is None:
        tile_h = _pick_tile_h(h, 8)
    count = jnp.float32(n * h * wd)

    # Weights: (3,3,ci,co) HWIO -> (9*ci, co) bf16; conv-2 output channels padded to a lane
    # multiple so every conv-2 / BN-2 store is an unmasked full-lane vst.
    # NOTE: cmid is left unpadded -- with cmid < 128 the conv-1 stores / BN-1 VPU work run at
    # partial lane occupancy (cheap at toy sizes; revisit per layer at NestedUNet sizes).
    w1f = w1.reshape(9 * cin, cmid).astype(jnp.bfloat16)
    w2f = jnp.pad(w2.reshape(9 * cmid, cout).astype(jnp.float32),
                  ((0, 0), (0, coutp - cout))).astype(jnp.bfloat16)
    g2p = jnp.pad(g2.astype(jnp.float32), (0, coutp - cout))
    be2p = jnp.pad(be2.astype(jnp.float32), (0, coutp - cout))

    # conv1 (raw) + batch stats, then cheap normalize+ReLU pass (bf16 activation).
    y1, s1, ss1 = _conv3x3_tiles(x_nhwc, w1f, tile_h)
    sc1, sh1 = _bn_affine(s1, ss1, g1.astype(jnp.float32), be1.astype(jnp.float32), count)
    a1 = _affine_relu(y1, sc1, sh1, jnp.bfloat16)            # (N*HT, th*W, cmid) bf16
    a1 = a1.reshape(n, h, wd, cmid)                          # contiguous reshape

    # conv2 (raw) + batch stats, then normalize+ReLU into the lane-dense padded output.
    y2, s2, ss2 = _conv3x3_tiles(a1, w2f, tile_h)
    sc2, sh2 = _bn_affine(s2, ss2, g2p, be2p, count)
    out = _affine_relu(y2, sc2, sh2, jnp.bfloat16)           # (N*HT, th*W, coutp) bf16
    return out.reshape(n, h, wd, coutp)


@jax.jit
def conv_block_nested_forward(x_nchw, params):
    """Public wrapper matching the PyTorch module: NCHW f32 in, NCHW f32 out."""
    cout = params[4].shape[-1]
    x_nhwc = jnp.transpose(x_nchw, (0, 2, 3, 1)).astype(jnp.float32)
    out = conv_block_nhwc(x_nhwc, params)
    out = out[..., :cout].astype(jnp.float32)
    return jnp.transpose(out, (0, 3, 1, 2))


def ref_forward(x_nchw, params, matmul_dtype=jnp.float32):
    """Pure-JAX reference of the PyTorch module forward (training-mode BN)."""
    w1, b1, g1, be1, w2, b2, g2, be2 = params

    def conv(x, w_hwio, b):
        y = jax.lax.conv_general_dilated(
            x.astype(matmul_dtype), w_hwio.astype(matmul_dtype),
            window_strides=(1, 1), padding=((1, 1), (1, 1)),
            dimension_numbers=('NCHW', 'HWIO', 'NCHW'),
            preferred_element_type=jnp.float32)
        return y + b[None, :, None, None]

    def bn(x, g, be):
        mean = jnp.mean(x, axis=(0, 2, 3), keepdims=True)
        var = jnp.mean((x - mean) ** 2, axis=(0, 2, 3), keepdims=True)
        return ((x - mean) * jax.lax.rsqrt(var + EPS)
                * g[None, :, None, None] + be[None, :, None, None])

    y = jax.nn.relu(bn(conv(x_nchw.astype(jnp.float32), w1, b1), g1, be1))
    y = jax.nn.relu(bn(conv(y, w2, b2), g2, be2))
    return y


if __name__ == "__main__":
    # Small deterministic setup: in_ch=4, mid_ch=8, out_ch=8, x: (2, 4, 16, 16)
    N, Cin, Cmid, Cout, H, W = 2, 4, 8, 8, 16, 16
    key = jax.random.PRNGKey(0)
    ks = jax.random.split(key, 9)

    x = jax.random.normal(ks[0], (N, Cin, H, W), jnp.float32)

    w1 = jax.random.normal(ks[1], (3, 3, Cin, Cmid), jnp.float32) * 0.1
    b1 = jax.random.normal(ks[2], (Cmid,), jnp.float32) * 0.1
    g1 = 1.0 + 0.1 * jax.random.normal(ks[3], (Cmid,), jnp.float32)
    be1 = 0.1 * jax.random.normal(ks[4], (Cmid,), jnp.float32)
    w2 = jax.random.normal(ks[5], (3, 3, Cmid, Cout), jnp.float32) * 0.1
    b2 = jax.random.normal(ks[6], (Cout,), jnp.float32) * 0.1
    g2 = 1.0 + 0.1 * jax.random.normal(ks[7], (Cout,), jnp.float32)
    be2 = 0.1 * jax.random.normal(ks[8], (Cout,), jnp.float32)

    params = (w1, b1, g1, be1, w2, b2, g2, be2)

    out = jax.block_until_ready(conv_block_nested_forward(x, params))
    assert out.shape == (N, Cout, H, W), out.shape

    # 1) precision-matched reference (bf16 matmul operands, f32 accumulation) -- tight check
    ref_bf16 = jax.block_until_ready(ref_forward(x, params, matmul_dtype=jnp.bfloat16))
    np.testing.assert_allclose(np.asarray(out), np.asarray(ref_bf16), rtol=1e-2, atol=1e-2)

    # 2) full-f32 PyTorch-semantics reference -- loosened tolerance for bf16 MXU operands
    ref_f32 = jax.block_until_ready(ref_forward(x, params, matmul_dtype=jnp.float32))
    np.testing.assert_allclose(np.asarray(out), np.asarray(ref_f32), rtol=5e-2, atol=5e-2)

    print("KERNEL_OK")
</pallas_src>

<mosaic_0001>
module attributes {stable_mosaic.version = 11 : i64} {
  func.func @_conv3x3_kernel(%arg0: i32, %arg1: memref<1x10x18x4xbf16, #tpu.memory_space<vmem>>, %arg2: memref<36x8xbf16, #tpu.memory_space<vmem>>, %arg3: memref<1x128x8xf32, #tpu.memory_space<vmem>>, %arg4: memref<1x2x8xf32, #tpu.memory_space<vmem>>, %arg5: memref<8x16x36xbf16, #tpu.memory_space<vmem>>) attributes {dimension_semantics = [#tpu.dimension_semantics<parallel>], iteration_bounds = array<i64: 4>, scalar_prefetch = 0 : i64, scratch_operands = 1 : i64, tpu.core_type = #tpu.core_type<tc>, window_params = [{transform_indices = @transform_0, window_bounds = array<i64: 1, 10, 18, 4>}, {pipeline_mode = #tpu.pipeline_mode<synchronous>, transform_indices = @transform_1, window_bounds = array<i64: 36, 8>}, {transform_indices = @transform_2, window_bounds = array<i64: 1, 128, 8>}, {transform_indices = @transform_3, window_bounds = array<i64: 1, 2, 8>}]} {
    %c0 = arith.constant 0 : index
    %c0_0 = arith.constant 0 : index
    %c0_1 = arith.constant 0 : index
    %c0_2 = arith.constant 0 : index
    %0 = vector.load %arg1[%c0, %c0_0, %c0_1, %c0_2] : memref<1x10x18x4xbf16, #tpu.memory_space<vmem>>, vector<1x8x16x4xbf16>
    %1 = vector.shape_cast %0 : vector<1x8x16x4xbf16> to vector<8x16x4xbf16>
    %c0_3 = arith.constant 0 : index
    %c0_4 = arith.constant 0 : index
    %c0_5 = arith.constant 0 : index
    %2 = vector.load %arg5[%c0_3, %c0_4, %c0_5] : memref<8x16x36xbf16, #tpu.memory_space<vmem>>, vector<8x16x4xbf16>
    tpu.vector_store %arg5[%c0_3, %c0_4, %c0_5], %1 {strides = array<i32>} : memref<8x16x36xbf16, #tpu.memory_space<vmem>>, vector<8x16x4xbf16>,
    %c0_6 = arith.constant 0 : index
    %c0_7 = arith.constant 0 : index
    %c1 = arith.constant 1 : index
    %c0_8 = arith.constant 0 : index
    %3 = vector.load %arg1[%c0_6, %c0_7, %c1, %c0_8] : memref<1x10x18x4xbf16, #tpu.memory_space<vmem>>, vector<1x8x16x4xbf16>
    %4 = vector.shape_cast %3 : vector<1x8x16x4xbf16> to vector<8x16x4xbf16>
    %c0_9 = arith.constant 0 : index
    %c0_10 = arith.constant 0 : index
    %c4 = arith.constant 4 : index
    %5 = vector.load %arg5[%c0_9, %c0_10, %c4] : memref<8x16x36xbf16, #tpu.memory_space<vmem>>, vector<8x16x4xbf16>
    tpu.vector_store %arg5[%c0_9, %c0_10, %c4], %4 {strides = array<i32>} : memref<8x16x36xbf16, #tpu.memory_space<vmem>>, vector<8x16x4xbf16>,
    %c0_11 = arith.constant 0 : index
    %c0_12 = arith.constant 0 : index
    %c2 = arith.constant 2 : index
    %c0_13 = arith.constant 0 : index
    %6 = vector.load %arg1[%c0_11, %c0_12, %c2, %c0_13] : memref<1x10x18x4xbf16, #tpu.memory_space<vmem>>, vector<1x8x16x4xbf16>
    %7 = vector.shape_cast %6 : vector<1x8x16x4xbf16> to vector<8x16x4xbf16>
    %c0_14 = arith.constant 0 : index
    %c0_15 = arith.constant 0 : index
    %c8 = arith.constant 8 : index
    %8 = vector.load %arg5[%c0_14, %c0_15, %c8] : memref<8x16x36xbf16, #tpu.memory_space<vmem>>, vector<8x16x4xbf16>
    tpu.vector_store %arg5[%c0_14, %c0_15, %c8], %7 {strides = array<i32>} : memref<8x16x36xbf16, #tpu.memory_space<vmem>>, vector<8x16x4xbf16>,
    %c0_16 = arith.constant 0 : index
    %c1_17 = arith.constant 1 : index
    %c0_18 = arith.constant 0 : index
    %c0_19 = arith.constant 0 : index
    %9 = vector.load %arg1[%c0_16, %c1_17, %c0_18, %c0_19] : memref<1x10x18x4xbf16, #tpu.memory_space<vmem>>, vector<1x8x16x4xbf16>
    %10 = vector.shape_cast %9 : vector<1x8x16x4xbf16> to vector<8x16x4xbf16>
    %c0_20 = arith.constant 0 : index
    %c0_21 = arith.constant 0 : index
    %c12 = arith.constant 12 : index
    %11 = vector.load %arg5[%c0_20, %c0_21, %c12] : memref<8x16x36xbf16, #tpu.memory_space<vmem>>, vector<8x16x4xbf16>
    tpu.vector_store %arg5[%c0_20, %c0_21, %c12], %10 {strides = array<i32>} : memref<8x16x36xbf16, #tpu.memory_space<vmem>>, vector<8x16x4xbf16>,
    %c0_22 = arith.constant 0 : index
    %c1_23 = arith.constant 1 : index
    %c1_24 = arith.constant 1 : index
    %c0_25 = arith.constant 0 : index
    %12 = vector.load %arg1[%c0_22, %c1_23, %c1_24, %c0_25] : memref<1x10x18x4xbf16, #tpu.memory_space<vmem>>, vector<1x8x16x4xbf16>
    %13 = vector.shape_cast %12 : vector<1x8x16x4xbf16> to vector<8x16x4xbf16>
    %c0_26 = arith.constant 0 : index
    %c0_27 = arith.constant 0 : index
    %c16 = arith.constant 16 : index
    %14 = vector.load %arg5[%c0_26, %c0_27, %c16] : memref<8x16x36xbf16, #tpu.memory_space<vmem>>, vector<8x16x4xbf16>
    tpu.vector_store %arg5[%c0_26, %c0_27, %c16], %13 {strides = array<i32>} : memref<8x16x36xbf16, #tpu.memory_space<vmem>>, vector<8x16x4xbf16>,
    %c0_28 = arith.constant 0 : index
    %c1_29 = arith.constant 1 : index
    %c2_30 = arith.constant 2 : index
    %c0_31 = arith.constant 0 : index
    %15 = vector.load %arg1[%c0_28, %c1_29, %c2_30, %c0_31] : memref<1x10x18x4xbf16, #tpu.memory_space<vmem>>, vector<1x8x16x4xbf16>
    %16 = vector.shape_cast %15 : vector<1x8x16x4xbf16> to vector<8x16x4xbf16>
    %c0_32 = arith.constant 0 : index
    %c0_33 = arith.constant 0 : index
    %c20 = arith.constant 20 : index
    %17 = vector.load %arg5[%c0_32, %c0_33, %c20] : memref<8x16x36xbf16, #tpu.memory_space<vmem>>, vector<8x16x4xbf16>
    tpu.vector_store %arg5[%c0_32, %c0_33, %c20], %16 {strides = array<i32>} : memref<8x16x36xbf16, #tpu.memory_space<vmem>>, vector<8x16x4xbf16>,
    %c0_34 = arith.constant 0 : index
    %c2_35 = arith.constant 2 : index
    %c0_36 = arith.constant 0 : index
    %c0_37 = arith.constant 0 : index
    %18 = vector.load %arg1[%c0_34, %c2_35, %c0_36, %c0_37] : memref<1x10x18x4xbf16, #tpu.memory_space<vmem>>, vector<1x8x16x4xbf16>
    %19 = vector.shape_cast %18 : vector<1x8x16x4xbf16> to vector<8x16x4xbf16>
    %c0_38 = arith.constant 0 : index
    %c0_39 = arith.constant 0 : index
    %c24 = arith.constant 24 : index
    %20 = vector.load %arg5[%c0_38, %c0_39, %c24] : memref<8x16x36xbf16, #tpu.memory_space<vmem>>, vector<8x16x4xbf16>
    tpu.vector_store %arg5[%c0_38, %c0_39, %c24], %19 {strides = array<i32>} : memref<8x16x36xbf16, #tpu.memory_space<vmem>>, vector<8x16x4xbf16>,
    %c0_40 = arith.constant 0 : index
    %c2_41 = arith.constant 2 : index
    %c1_42 = arith.constant 1 : index
    %c0_43 = arith.constant 0 : index
    %21 = vector.load %arg1[%c0_40, %c2_41, %c1_42, %c0_43] : memref<1x10x18x4xbf16, #tpu.memory_space<vmem>>, vector<1x8x16x4xbf16>
    %22 = vector.shape_cast %21 : vector<1x8x16x4xbf16> to vector<8x16x4xbf16>
    %c0_44 = arith.constant 0 : index
    %c0_45 = arith.constant 0 : index
    %c28 = arith.constant 28 : index
    %23 = vector.load %arg5[%c0_44, %c0_45, %c28] : memref<8x16x36xbf16, #tpu.memory_space<vmem>>, vector<8x16x4xbf16>
    tpu.vector_store %arg5[%c0_44, %c0_45, %c28], %22 {strides = array<i32>} : memref<8x16x36xbf16, #tpu.memory_space<vmem>>, vector<8x16x4xbf16>,
    %c0_46 = arith.constant 0 : index
    %c2_47 = arith.constant 2 : index
    %c2_48 = arith.constant 2 : index
    %c0_49 = arith.constant 0 : index
    %24 = vector.load %arg1[%c0_46, %c2_47, %c2_48, %c0_49] : memref<1x10x18x4xbf16, #tpu.memory_space<vmem>>, vector<1x8x16x4xbf16>
    %25 = vector.shape_cast %24 : vector<1x8x16x4xbf16> to vector<8x16x4xbf16>
    %c0_50 = arith.constant 0 : index
    %c0_51 = arith.constant 0 : index
    %c32 = arith.constant 32 : index
    %26 = vector.load %arg5[%c0_50, %c0_51, %c32] : memref<8x16x36xbf16, #tpu.memory_space<vmem>>, vector<8x16x4xbf16>
    tpu.vector_store %arg5[%c0_50, %c0_51, %c32], %25 {strides = array<i32>} : memref<8x16x36xbf16, #tpu.memory_space<vmem>>, vector<8x16x4xbf16>,
    %c0_52 = arith.constant 0 : index
    %c0_53 = arith.constant 0 : index
    %c0_54 = arith.constant 0 : index
    %27 = vector.load %arg5[%c0_52, %c0_53, %c0_54] : memref<8x16x36xbf16, #tpu.memory_space<vmem>>, vector<8x16x36xbf16>
    %28 = vector.shape_cast %27 : vector<8x16x36xbf16> to vector<128x36xbf16>
    %c0_55 = arith.constant 0 : index
    %c0_56 = arith.constant 0 : index
    %29 = vector.load %arg2[%c0_55, %c0_56] : memref<36x8xbf16, #tpu.memory_space<vmem>>, vector<36x8xbf16>
    %cst = arith.constant dense<0.000000e+00> : vector<128x8xf32>
    %30 = tpu.matmul %28, %29, %cst {dimension_numbers = #tpu.dot_dimension_numbers<[1], [0], [0], [1], [0, 0, 1, 1], [], []>} : vector<128x36xbf16>, vector<36x8xbf16>, vector<128x8xf32> -> vector<128x8xf32>
    %c0_57 = arith.constant 0 : index
    %c0_58 = arith.constant 0 : index
    %c0_59 = arith.constant 0 : index
    %31 = vector.load %arg3[%c0_57, %c0_58, %c0_59] : memref<1x128x8xf32, #tpu.memory_space<vmem>>, vector<1x128x8xf32>
    %32 = vector.shape_cast %31 : vector<1x128x8xf32> to vector<128x8xf32>
    %33 = vector.shape_cast %30 : vector<128x8xf32> to vector<1x128x8xf32>
    tpu.vector_store %arg3[%c0_57, %c0_58, %c0_59], %33 {strides = array<i32>} : memref<1x128x8xf32, #tpu.memory_space<vmem>>, vector<1x128x8xf32>,
    %cst_60 = arith.constant dense<0.000000e+00> : vector<8xf32>
    %34 = vector.multi_reduction <add>, %30, %cst_60 [0] : vector<128x8xf32> to vector<8xf32>
    %35 = vector.shape_cast %34 : vector<8xf32> to vector<1x8xf32>
    %36 = arith.mulf %30, %30 : vector<128x8xf32>
    %cst_61 = arith.constant dense<0.000000e+00> : vector<8xf32>
    %37 = vector.multi_reduction <add>, %36, %cst_61 [0] : vector<128x8xf32> to vector<8xf32>
    %38 = vector.shape_cast %37 : vector<8xf32> to vector<1x8xf32>
    %39 = tpu.concatenate %35, %38 in 0 : vector<1x8xf32>, vector<1x8xf32> -> vector<2x8xf32>
    %c0_62 = arith.constant 0 : index
    %c0_63 = arith.constant 0 : index
    %c0_64 = arith.constant 0 : index
    %40 = vector.load %arg4[%c0_62, %c0_63, %c0_64] : memref<1x2x8xf32, #tpu.memory_space<vmem>>, vector<1x2x8xf32>
    %41 = vector.shape_cast %40 : vector<1x2x8xf32> to vector<2x8xf32>
    %42 = vector.shape_cast %39 : vector<2x8xf32> to vector<1x2x8xf32>
    tpu.vector_store %arg4[%c0_62, %c0_63, %c0_64], %42 {strides = array<i32>} : memref<1x2x8xf32, #tpu.memory_space<vmem>>, vector<1x2x8xf32>,
    return
  }
  func.func @transform_0(%arg0: i32) -> (i32, i32, i32, i32) {
    %c0_i32 = arith.constant 0 : i32
    %c0_i32_0 = arith.constant 0 : i32
    %c0_i32_1 = arith.constant 0 : i32
    %c0_i32_2 = arith.constant 0 : i32
    return %arg0, %c0_i32, %c0_i32_0, %c0_i32_1 : i32, i32, i32, i32
  }
  func.func @transform_1(%arg0: i32) -> (i32, i32) {
    %c0_i32 = arith.constant 0 : i32
    %c0_i32_0 = arith.constant 0 : i32
    %c0_i32_1 = arith.constant 0 : i32
    return %c0_i32, %c0_i32_0 : i32, i32
  }
  func.func @transform_2(%arg0: i32) -> (i32, i32, i32) {
    %c0_i32 = arith.constant 0 : i32
    %c0_i32_0 = arith.constant 0 : i32
    %c0_i32_1 = arith.constant 0 : i32
    return %arg0, %c0_i32, %c0_i32_0 : i32, i32, i32
  }
  func.func @transform_3(%arg0: i32) -> (i32, i32, i32) {
    %c0_i32 = arith.constant 0 : i32
    %c0_i32_0 = arith.constant 0 : i32
    %c0_i32_1 = arith.constant 0 : i32
    return %arg0, %c0_i32, %c0_i32_0 : i32, i32, i32
  }
}

module attributes {stable_mosaic.version = 11 : i64} {
  func.func @_affine_relu_kernel(%arg0: i32, %arg1: memref<1x128x8xf32, #tpu.memory_space<vmem>>, %arg2: memref<1x8xf32, #tpu.memory_space<vmem>>, %arg3: memref<1x8xf32, #tpu.memory_space<vmem>>, %arg4: memref<1x128x8xbf16, #tpu.memory_space<vmem>>) attributes {dimension_semantics = [#tpu.dimension_semantics<parallel>], iteration_bounds = array<i64: 4>, scalar_prefetch = 0 : i64, scratch_operands = 0 : i64, tpu.core_type = #tpu.core_type<tc>, window_params = [{transform_indices = @transform_0, window_bounds = array<i64: 1, 128, 8>}, {pipeline_mode = #tpu.pipeline_mode<synchronous>, transform_indices = @transform_1, window_bounds = array<i64: 1, 8>}, {pipeline_mode = #tpu.pipeline_mode<synchronous>, transform_indices = @transform_2, window_bounds = array<i64: 1, 8>}, {transform_indices = @transform_3, window_bounds = array<i64: 1, 128, 8>}]} {
    %c0 = arith.constant 0 : index
    %c0_0 = arith.constant 0 : index
    %c0_1 = arith.constant 0 : index
    %0 = vector.load %arg1[%c0, %c0_0, %c0_1] : memref<1x128x8xf32, #tpu.memory_space<vmem>>, vector<1x128x8xf32>
    %1 = vector.shape_cast %0 : vector<1x128x8xf32> to vector<128x8xf32>
    %c0_2 = arith.constant 0 : index
    %c0_3 = arith.constant 0 : index
    %2 = vector.load %arg2[%c0_2, %c0_3] : memref<1x8xf32, #tpu.memory_space<vmem>>, vector<1x8xf32>
    %3 = vector.broadcast %2 : vector<1x8xf32> to vector<128x8xf32>
    %4 = arith.mulf %1, %3 : vector<128x8xf32>
    %c0_4 = arith.constant 0 : index
    %c0_5 = arith.constant 0 : index
    %5 = vector.load %arg3[%c0_4, %c0_5] : memref<1x8xf32, #tpu.memory_space<vmem>>, vector<1x8xf32>
    %6 = vector.broadcast %5 : vector<1x8xf32> to vector<128x8xf32>
    %7 = arith.addf %4, %6 : vector<128x8xf32>
    %cst = arith.constant 0.000000e+00 : f32
    %8 = vector.broadcast %cst : f32 to vector<128x8xf32>
    %9 = arith.maximumf %7, %8 : vector<128x8xf32>
    %10 = arith.truncf %9 : vector<128x8xf32> to vector<128x8xbf16>
    %c0_6 = arith.constant 0 : index
    %c0_7 = arith.constant 0 : index
    %c0_8 = arith.constant 0 : index
    %11 = vector.load %arg4[%c0_6, %c0_7, %c0_8] : memref<1x128x8xbf16, #tpu.memory_space<vmem>>, vector<1x128x8xbf16>
    %12 = vector.shape_cast %11 : vector<1x128x8xbf16> to vector<128x8xbf16>
    %13 = vector.shape_cast %10 : vector<128x8xbf16> to vector<1x128x8xbf16>
    tpu.vector_store %arg4[%c0_6, %c0_7, %c0_8], %13 {strides = array<i32>} : memref<1x128x8xbf16, #tpu.memory_space<vmem>>, vector<1x128x8xbf16>,
    return
  }
  func.func @transform_0(%arg0: i32) -> (i32, i32, i32) {
    %c0_i32 = arith.constant 0 : i32
    %c0_i32_0 = arith.constant 0 : i32
    %c0_i32_1 = arith.constant 0 : i32
    return %arg0, %c0_i32, %c0_i32_0 : i32, i32, i32
  }
  func.func @transform_1(%arg0: i32) -> (i32, i32) {
    %c0_i32 = arith.constant 0 : i32
    %c0_i32_0 = arith.constant 0 : i32
    %c0_i32_1 = arith.constant 0 : i32
    return %c0_i32, %c0_i32_0 : i32, i32
  }
  func.func @transform_2(%arg0: i32) -> (i32, i32) {
    %c0_i32 = arith.constant 0 : i32
    %c0_i32_0 = arith.constant 0 : i32
    %c0_i32_1 = arith.constant 0 : i32
    return %c0_i32, %c0_i32_0 : i32, i32
  }
  func.func @transform_3(%arg0: i32) -> (i32, i32, i32) {
    %c0_i32 = arith.constant 0 : i32
    %c0_i32_0 = arith.constant 0 : i32
    %c0_i32_1 = arith.constant 0 : i32
    return %arg0, %c0_i32, %c0_i32_0 : i32, i32, i32
  }
}

module attributes {stable_mosaic.version = 11 : i64} {
  func.func @_conv3x3_kernel(%arg0: i32, %arg1: memref<1x10x18x8xbf16, #tpu.memory_space<vmem>>, %arg2: memref<72x128xbf16, #tpu.memory_space<vmem>>, %arg3: memref<1x128x128xf32, #tpu.memory_space<vmem>>, %arg4: memref<1x2x128xf32, #tpu.memory_space<vmem>>, %arg5: memref<8x16x72xbf16, #tpu.memory_space<vmem>>) attributes {dimension_semantics = [#tpu.dimension_semantics<parallel>], iteration_bounds = array<i64: 4>, scalar_prefetch = 0 : i64, scratch_operands = 1 : i64, tpu.core_type = #tpu.core_type<tc>, window_params = [{transform_indices = @transform_0, window_bounds = array<i64: 1, 10, 18, 8>}, {pipeline_mode = #tpu.pipeline_mode<synchronous>, transform_indices = @transform_1, window_bounds = array<i64: 72, 128>}, {transform_indices = @transform_2, window_bounds = array<i64: 1, 128, 128>}, {transform_indices = @transform_3, window_bounds = array<i64: 1, 2, 128>}]} {
    %c0 = arith.constant 0 : index
    %c0_0 = arith.constant 0 : index
    %c0_1 = arith.constant 0 : index
    %c0_2 = arith.constant 0 : index
    %0 = vector.load %arg1[%c0, %c0_0, %c0_1, %c0_2] : memref<1x10x18x8xbf16, #tpu.memory_space<vmem>>, vector<1x8x16x8xbf16>
    %1 = vector.shape_cast %0 : vector<1x8x16x8xbf16> to vector<8x16x8xbf16>
    %c0_3 = arith.constant 0 : index
    %c0_4 = arith.constant 0 : index
    %c0_5 = arith.constant 0 : index
    %2 = vector.load %arg5[%c0_3, %c0_4, %c0_5] : memref<8x16x72xbf16, #tpu.memory_space<vmem>>, vector<8x16x8xbf16>
    tpu.vector_store %arg5[%c0_3, %c0_4, %c0_5], %1 {strides = array<i32>} : memref<8x16x72xbf16, #tpu.memory_space<vmem>>, vector<8x16x8xbf16>,
    %c0_6 = arith.constant 0 : index
    %c0_7 = arith.constant 0 : index
    %c1 = arith.constant 1 : index
    %c0_8 = arith.constant 0 : index
    %3 = vector.load %arg1[%c0_6, %c0_7, %c1, %c0_8] : memref<1x10x18x8xbf16, #tpu.memory_space<vmem>>, vector<1x8x16x8xbf16>
    %4 = vector.shape_cast %3 : vector<1x8x16x8xbf16> to vector<8x16x8xbf16>
    %c0_9 = arith.constant 0 : index
    %c0_10 = arith.constant 0 : index
    %c8 = arith.constant 8 : index
    %5 = vector.load %arg5[%c0_9, %c0_10, %c8] : memref<8x16x72xbf16, #tpu.memory_space<vmem>>, vector<8x16x8xbf16>
    tpu.vector_store %arg5[%c0_9, %c0_10, %c8], %4 {strides = array<i32>} : memref<8x16x72xbf16, #tpu.memory_space<vmem>>, vector<8x16x8xbf16>,
    %c0_11 = arith.constant 0 : index
    %c0_12 = arith.constant 0 : index
    %c2 = arith.constant 2 : index
    %c0_13 = arith.constant 0 : index
    %6 = vector.load %arg1[%c0_11, %c0_12, %c2, %c0_13] : memref<1x10x18x8xbf16, #tpu.memory_space<vmem>>, vector<1x8x16x8xbf16>
    %7 = vector.shape_cast %6 : vector<1x8x16x8xbf16> to vector<8x16x8xbf16>
    %c0_14 = arith.constant 0 : index
    %c0_15 = arith.constant 0 : index
    %c16 = arith.constant 16 : index
    %8 = vector.load %arg5[%c0_14, %c0_15, %c16] : memref<8x16x72xbf16, #tpu.memory_space<vmem>>, vector<8x16x8xbf16>
    tpu.vector_store %arg5[%c0_14, %c0_15, %c16], %7 {strides = array<i32>} : memref<8x16x72xbf16, #tpu.memory_space<vmem>>, vector<8x16x8xbf16>,
    %c0_16 = arith.constant 0 : index
    %c1_17 = arith.constant 1 : index
    %c0_18 = arith.constant 0 : index
    %c0_19 = arith.constant 0 : index
    %9 = vector.load %arg1[%c0_16, %c1_17, %c0_18, %c0_19] : memref<1x10x18x8xbf16, #tpu.memory_space<vmem>>, vector<1x8x16x8xbf16>
    %10 = vector.shape_cast %9 : vector<1x8x16x8xbf16> to vector<8x16x8xbf16>
    %c0_20 = arith.constant 0 : index
    %c0_21 = arith.constant 0 : index
    %c24 = arith.constant 24 : index
    %11 = vector.load %arg5[%c0_20, %c0_21, %c24] : memref<8x16x72xbf16, #tpu.memory_space<vmem>>, vector<8x16x8xbf16>
    tpu.vector_store %arg5[%c0_20, %c0_21, %c24], %10 {strides = array<i32>} : memref<8x16x72xbf16, #tpu.memory_space<vmem>>, vector<8x16x8xbf16>,
    %c0_22 = arith.constant 0 : index
    %c1_23 = arith.constant 1 : index
    %c1_24 = arith.constant 1 : index
    %c0_25 = arith.constant 0 : index
    %12 = vector.load %arg1[%c0_22, %c1_23, %c1_24, %c0_25] : memref<1x10x18x8xbf16, #tpu.memory_space<vmem>>, vector<1x8x16x8xbf16>
    %13 = vector.shape_cast %12 : vector<1x8x16x8xbf16> to vector<8x16x8xbf16>
    %c0_26 = arith.constant 0 : index
    %c0_27 = arith.constant 0 : index
    %c32 = arith.constant 32 : index
    %14 = vector.load %arg5[%c0_26, %c0_27, %c32] : memref<8x16x72xbf16, #tpu.memory_space<vmem>>, vector<8x16x8xbf16>
    tpu.vector_store %arg5[%c0_26, %c0_27, %c32], %13 {strides = array<i32>} : memref<8x16x72xbf16, #tpu.memory_space<vmem>>, vector<8x16x8xbf16>,
    %c0_28 = arith.constant 0 : index
    %c1_29 = arith.constant 1 : index
    %c2_30 = arith.constant 2 : index
    %c0_31 = arith.constant 0 : index
    %15 = vector.load %arg1[%c0_28, %c1_29, %c2_30, %c0_31] : memref<1x10x18x8xbf16, #tpu.memory_space<vmem>>, vector<1x8x16x8xbf16>
    %16 = vector.shape_cast %15 : vector<1x8x16x8xbf16> to vector<8x16x8xbf16>
    %c0_32 = arith.constant 0 : index
    %c0_33 = arith.constant 0 : index
    %c40 = arith.constant 40 : index
    %17 = vector.load %arg5[%c0_32, %c0_33, %c40] : memref<8x16x72xbf16, #tpu.memory_space<vmem>>, vector<8x16x8xbf16>
    tpu.vector_store %arg5[%c0_32, %c0_33, %c40], %16 {strides = array<i32>} : memref<8x16x72xbf16, #tpu.memory_space<vmem>>, vector<8x16x8xbf16>,
    %c0_34 = arith.constant 0 : index
    %c2_35 = arith.constant 2 : index
    %c0_36 = arith.constant 0 : index
    %c0_37 = arith.constant 0 : index
    %18 = vector.load %arg1[%c0_34, %c2_35, %c0_36, %c0_37] : memref<1x10x18x8xbf16, #tpu.memory_space<vmem>>, vector<1x8x16x8xbf16>
    %19 = vector.shape_cast %18 : vector<1x8x16x8xbf16> to vector<8x16x8xbf16>
    %c0_38 = arith.constant 0 : index
    %c0_39 = arith.constant 0 : index
    %c48 = arith.constant 48 : index
    %20 = vector.load %arg5[%c0_38, %c0_39, %c48] : memref<8x16x72xbf16, #tpu.memory_space<vmem>>, vector<8x16x8xbf16>
    tpu.vector_store %arg5[%c0_38, %c0_39, %c48], %19 {strides = array<i32>} : memref<8x16x72xbf16, #tpu.memory_space<vmem>>, vector<8x16x8xbf16>,
    %c0_40 = arith.constant 0 : index
    %c2_41 = arith.constant 2 : index
    %c1_42 = arith.constant 1 : index
    %c0_43 = arith.constant 0 : index
    %21 = vector.load %arg1[%c0_40, %c2_41, %c1_42, %c0_43] : memref<1x10x18x8xbf16, #tpu.memory_space<vmem>>, vector<1x8x16x8xbf16>
    %22 = vector.shape_cast %21 : vector<1x8x16x8xbf16> to vector<8x16x8xbf16>
    %c0_44 = arith.constant 0 : index
    %c0_45 = arith.constant 0 : index
    %c56 = arith.constant 56 : index
    %23 = vector.load %arg5[%c0_44, %c0_45, %c56] : memref<8x16x72xbf16, #tpu.memory_space<vmem>>, vector<8x16x8xbf16>
    tpu.vector_store %arg5[%c0_44, %c0_45, %c56], %22 {strides = array<i32>} : memref<8x16x72xbf16, #tpu.memory_space<vmem>>, vector<8x16x8xbf16>,
    %c0_46 = arith.constant 0 : index
    %c2_47 = arith.constant 2 : index
    %c2_48 = arith.constant 2 : index
    %c0_49 = arith.constant 0 : index
    %24 = vector.load %arg1[%c0_46, %c2_47, %c2_48, %c0_49] : memref<1x10x18x8xbf16, #tpu.memory_space<vmem>>, vector<1x8x16x8xbf16>
    %25 = vector.shape_cast %24 : vector<1x8x16x8xbf16> to vector<8x16x8xbf16>
    %c0_50 = arith.constant 0 : index
    %c0_51 = arith.constant 0 : index
    %c64 = arith.constant 64 : index
    %26 = vector.load %arg5[%c0_50, %c0_51, %c64] : memref<8x16x72xbf16, #tpu.memory_space<vmem>>, vector<8x16x8xbf16>
    tpu.vector_store %arg5[%c0_50, %c0_51, %c64], %25 {strides = array<i32>} : memref<8x16x72xbf16, #tpu.memory_space<vmem>>, vector<8x16x8xbf16>,
    %c0_52 = arith.constant 0 : index
    %c0_53 = arith.constant 0 : index
    %c0_54 = arith.constant 0 : index
    %27 = vector.load %arg5[%c0_52, %c0_53, %c0_54] : memref<8x16x72xbf16, #tpu.memory_space<vmem>>, vector<8x16x72xbf16>
    %28 = vector.shape_cast %27 : vector<8x16x72xbf16> to vector<128x72xbf16>
    %c0_55 = arith.constant 0 : index
    %c0_56 = arith.constant 0 : index
    %29 = vector.load %arg2[%c0_55, %c0_56] : memref<72x128xbf16, #tpu.memory_space<vmem>>, vector<72x128xbf16>
    %cst = arith.constant dense<0.000000e+00> : vector<128x128xf32>
    %30 = tpu.matmul %28, %29, %cst {dimension_numbers = #tpu.dot_dimension_numbers<[1], [0], [0], [1], [0, 0, 1, 1], [], []>} : vector<128x72xbf16>, vector<72x128xbf16>, vector<128x128xf32> -> vector<128x128xf32>
    %c0_57 = arith.constant 0 : index
    %c0_58 = arith.constant 0 : index
    %c0_59 = arith.constant 0 : index
    %31 = vector.load %arg3[%c0_57, %c0_58, %c0_59] : memref<1x128x128xf32, #tpu.memory_space<vmem>>, vector<1x128x128xf32>
    %32 = vector.shape_cast %31 : vector<1x128x128xf32> to vector<128x128xf32>
    %33 = vector.shape_cast %30 : vector<128x128xf32> to vector<1x128x128xf32>
    tpu.vector_store %arg3[%c0_57, %c0_58, %c0_59], %33 {strides = array<i32>} : memref<1x128x128xf32, #tpu.memory_space<vmem>>, vector<1x128x128xf32>,
    %cst_60 = arith.constant dense<0.000000e+00> : vector<128xf32>
    %34 = vector.multi_reduction <add>, %30, %cst_60 [0] : vector<128x128xf32> to vector<128xf32>
    %35 = vector.shape_cast %34 : vector<128xf32> to vector<1x128xf32>
    %36 = arith.mulf %30, %30 : vector<128x128xf32>
    %cst_61 = arith.constant dense<0.000000e+00> : vector<128xf32>
    %37 = vector.multi_reduction <add>, %36, %cst_61 [0] : vector<128x128xf32> to vector<128xf32>
    %38 = vector.shape_cast %37 : vector<128xf32> to vector<1x128xf32>
    %39 = tpu.concatenate %35, %38 in 0 : vector<1x128xf32>, vector<1x128xf32> -> vector<2x128xf32>
    %c0_62 = arith.constant 0 : index
    %c0_63 = arith.constant 0 : index
    %c0_64 = arith.constant 0 : index
    %40 = vector.load %arg4[%c0_62, %c0_63, %c0_64] : memref<1x2x128xf32, #tpu.memory_space<vmem>>, vector<1x2x128xf32>
    %41 = vector.shape_cast %40 : vector<1x2x128xf32> to vector<2x128xf32>
    %42 = vector.shape_cast %39 : vector<2x128xf32> to vector<1x2x128xf32>
    tpu.vector_store %arg4[%c0_62, %c0_63, %c0_64], %42 {strides = array<i32>} : memref<1x2x128xf32, #tpu.memory_space<vmem>>, vector<1x2x128xf32>,
    return
  }
  func.func @transform_0(%arg0: i32) -> (i32, i32, i32, i32) {
    %c0_i32 = arith.constant 0 : i32
    %c0_i32_0 = arith.constant 0 : i32
    %c0_i32_1 = arith.constant 0 : i32
    %c0_i32_2 = arith.constant 0 : i32
    return %arg0, %c0_i32, %c0_i32_0, %c0_i32_1 : i32, i32, i32, i32
  }
  func.func @transform_1(%arg0: i32) -> (i32, i32) {
    %c0_i32 = arith.constant 0 : i32
    %c0_i32_0 = arith.constant 0 : i32
    %c0_i32_1 = arith.constant 0 : i32
    return %c0_i32, %c0_i32_0 : i32, i32
  }
  func.func @transform_2(%arg0: i32) -> (i32, i32, i32) {
    %c0_i32 = arith.constant 0 : i32
    %c0_i32_0 = arith.constant 0 : i32
    %c0_i32_1 = arith.constant 0 : i32
    return %arg0, %c0_i32, %c0_i32_0 : i32, i32, i32
  }
  func.func @transform_3(%arg0: i32) -> (i32, i32, i32) {
    %c0_i32 = arith.constant 0 : i32
    %c0_i32_0 = arith.constant 0 : i32
    %c0_i32_1 = arith.constant 0 : i32
    return %arg0, %c0_i32, %c0_i32_0 : i32, i32, i32
  }
}

module attributes {stable_mosaic.version = 11 : i64} {
  func.func @_affine_relu_kernel(%arg0: i32, %arg1: memref<1x128x128xf32, #tpu.memory_space<vmem>>, %arg2: memref<1x128xf32, #tpu.memory_space<vmem>>, %arg3: memref<1x128xf32, #tpu.memory_space<vmem>>, %arg4: memref<1x128x128xbf16, #tpu.memory_space<vmem>>) attributes {dimension_semantics = [#tpu.dimension_semantics<parallel>], iteration_bounds = array<i64: 4>, scalar_prefetch = 0 : i64, scratch_operands = 0 : i64, tpu.core_type = #tpu.core_type<tc>, window_params = [{transform_indices = @transform_0, window_bounds = array<i64: 1, 128, 128>}, {pipeline_mode = #tpu.pipeline_mode<synchronous>, transform_indices = @transform_1, window_bounds = array<i64: 1, 128>}, {pipeline_mode = #tpu.pipeline_mode<synchronous>, transform_indices = @transform_2, window_bounds = array<i64: 1, 128>}, {transform_indices = @transform_3, window_bounds = array<i64: 1, 128, 128>}]} {
    %c0 = arith.constant 0 : index
    %c0_0 = arith.constant 0 : index
    %c0_1 = arith.constant 0 : index
    %0 = vector.load %arg1[%c0, %c0_0, %c0_1] : memref<1x128x128xf32, #tpu.memory_space<vmem>>, vector<1x128x128xf32>
    %1 = vector.shape_cast %0 : vector<1x128x128xf32> to vector<128x128xf32>
    %c0_2 = arith.constant 0 : index
    %c0_3 = arith.constant 0 : index
    %2 = vector.load %arg2[%c0_2, %c0_3] : memref<1x128xf32, #tpu.memory_space<vmem>>, vector<1x128xf32>
    %3 = vector.broadcast %2 : vector<1x128xf32> to vector<128x128xf32>
    %4 = arith.mulf %1, %3 : vector<128x128xf32>
    %c0_4 = arith.constant 0 : index
    %c0_5 = arith.constant 0 : index
    %5 = vector.load %arg3[%c0_4, %c0_5] : memref<1x128xf32, #tpu.memory_space<vmem>>, vector<1x128xf32>
    %6 = vector.broadcast %5 : vector<1x128xf32> to vector<128x128xf32>
    %7 = arith.addf %4, %6 : vector<128x128xf32>
    %cst = arith.constant 0.000000e+00 : f32
    %8 = vector.broadcast %cst : f32 to vector<128x128xf32>
    %9 = arith.maximumf %7, %8 : vector<128x128xf32>
    %10 = arith.truncf %9 : vector<128x128xf32> to vector<128x128xbf16>
    %c0_6 = arith.constant 0 : index
    %c0_7 = arith.constant 0 : index
    %c0_8 = arith.constant 0 : index
    %11 = vector.load %arg4[%c0_6, %c0_7, %c0_8] : memref<1x128x128xbf16, #tpu.memory_space<vmem>>, vector<1x128x128xbf16>
    %12 = vector.shape_cast %11 : vector<1x128x128xbf16> to vector<128x128xbf16>
    %13 = vector.shape_cast %10 : vector<128x128xbf16> to vector<1x128x128xbf16>
    tpu.vector_store %arg4[%c0_6, %c0_7, %c0_8], %13 {strides = array<i32>} : memref<1x128x128xbf16, #tpu.memory_space<vmem>>, vector<1x128x128xbf16>,
    return
  }
  func.func @transform_0(%arg0: i32) -> (i32, i32, i32) {
    %c0_i32 = arith.constant 0 : i32
    %c0_i32_0 = arith.constant 0 : i32
    %c0_i32_1 = arith.constant 0 : i32
    return %arg0, %c0_i32, %c0_i32_0 : i32, i32, i32
  }
  func.func @transform_1(%arg0: i32) -> (i32, i32) {
    %c0_i32 = arith.constant 0 : i32
    %c0_i32_0 = arith.constant 0 : i32
    %c0_i32_1 = arith.constant 0 : i32
    return %c0_i32, %c0_i32_0 : i32, i32
  }
  func.func @transform_2(%arg0: i32) -> (i32, i32) {
    %c0_i32 = arith.constant 0 : i32
    %c0_i32_0 = arith.constant 0 : i32
    %c0_i32_1 = arith.constant 0 : i32
    return %c0_i32, %c0_i32_0 : i32, i32
  }
  func.func @transform_3(%arg0: i32) -> (i32, i32, i32) {
    %c0_i32 = arith.constant 0 : i32
    %c0_i32_0 = arith.constant 0 : i32
    %c0_i32_1 = arith.constant 0 : i32
    return %arg0, %c0_i32, %c0_i32_0 : i32, i32, i32
  }
}

</mosaic_0001>

<bundles_post_ra>
// kernel: conv_block_nested_forward.5
= control target key start
LH: loop header
LB: loop body
LE: loop exit
PB: predicated region body
PF: predicated region fallthrough
CT: control target
= control target key end

     0   :  { %s468_s12 = smov 0   ;;  %s583_s0 = inlined_call_operand.vmem [shape: f32[4,128,8], index: 0, kind: input, shape index: {}]   ;;  %s584_s1 = inlined_call_operand.vmem [shape: f32[1,8], index: 1, kind: input, shape index: {}]   ;;  %s585_s2 = inlined_call_operand.vmem [shape: f32[1,8], index: 2, kind: input, shape index: {}]   ;;  %s586_s3 = inlined_call_operand.vmem [shape: bf16[4,128,8], index: 3, kind: output, shape index: {}]  }
   0x1 LB: > { %s385_s13 = sadd.s32 4294967295, %s446_s12   ;;  %p389_p0 = scmp.ge.s32.totalorder %s446_s12, 1  ;;  %s446_s12 = sphi %s468_s12, %s13_s12  }
   0x2   : > { %p137_p1 = scmp.lt.s32.totalorder %s446_s12, 5 }
   0x4   : > { %p138_p2 = pnand %p389_p0, %p137_p1 }
   0x5   : > { %p161_p3 = scmp.lt.s32.totalorder (!%p138_p2), %s385_s13, 3  ;;  %v482_v0 = vld [vmem:[%s584_s1] ss:$0 sm:$0xff] (!%p138_p2)  ;;  %vm313_vm0 = vcmask (!%p138_p2), 60416  }
   0x6   : > { %141 = sbr.rel (%p138_p2) target bundleno = 38 (0x26), region = 32  ;;  %v492_v1 = vld [vmem:[%s585_s2] ss:$0 sm:$0xff] (!%p138_p2) }
   0xd   : > { %s588_s13 = smov (!%p161_p3, %s385_s13), 3 }
   0xe   : > { %s414_s14 = sshll.u32 %s588_s13, 7  ;;  %s415_s22 = sshll.u32 %s588_s13, 6 }
   0xf   : > { %s487_s19 = scalar_lea.vmem %s583_s0, %s414_s14  ;;  %s521_s25 = scalar_lea.vmem %s586_s3, %s415_s22 }
  0x10   : > { %v171_v2 = vld [vmem:[%s487_s19] sm:$0xff]  ;;  %v172_v3 = vld [vmem:[%s487_s19 + $0x8] sm:$0xff]  ;;  %v173_v4 = vld [vmem:[%s487_s19 + $0x10] sm:$0xff] }
  0x11   : > { %v194_v5 = vmul.f32 %v482_v0, %v171_v2  ;;  %v195_v6 = vmul.f32 %v482_v0, %v172_v3  ;;  %v196_v7 = vmul.f32 %v482_v0, %v173_v4  ;;  %v174_v8 = vld [vmem:[%s487_s19 + $0x18] sm:$0xff]  ;;  %v175_v9 = vld [vmem:[%s487_s19 + $0x20] sm:$0xff]  ;;  %v176_v10 = vld [vmem:[%s487_s19 + $0x28] sm:$0xff] }
  0x12   : > { %v197_v11 = vmul.f32 %v482_v0, %v174_v8  ;;  %v198_v12 = vmul.f32 %v482_v0, %v175_v9  ;;  %v199_v13 = vmul.f32 %v482_v0, %v176_v10  ;;  %v177_v14 = vld [vmem:[%s487_s19 + $0x30] sm:$0xff]  ;;  %v178_v15 = vld [vmem:[%s487_s19 + $0x38] sm:$0xff]  ;;  %v179_v32 = vld [vmem:[%s487_s19 + $0x40] sm:$0xff] }
  0x13   : > { %v217_v16 = vadd.f32 %v492_v1, %v194_v5  ;;  %v218_v17 = vadd.f32 %v492_v1, %v195_v6  ;;  %v219_v18 = vadd.f32 %v492_v1, %v196_v7  ;;  %v200_v19 = vmul.f32 %v482_v0, %v177_v14  ;;  %v180_v33 = vld [vmem:[%s487_s19 + $0x48] sm:$0xff]  ;;  %v181_v34 = vld [vmem:[%s487_s19 + $0x50] sm:$0xff]  ;;  %v182_v39 = vld [vmem:[%s487_s19 + $0x58] sm:$0xff] }
  0x14   : > { %v220_v20 = vadd.f32 %v492_v1, %v197_v11  ;;  %v221_v21 = vadd.f32 %v492_v1, %v198_v12  ;;  %v222_v22 = vadd.f32 %v492_v1, %v199_v13  ;;  %v201_v23 = vmul.f32 %v482_v0, %v178_v15  ;;  %v183_v40 = vld [vmem:[%s487_s19 + $0x60] sm:$0xff]  ;;  %v184_v41 = vld [vmem:[%s487_s19 + $0x68] sm:$0xff]  ;;  %v185_v46 = vld [vmem:[%s487_s19 + $0x70] sm:$0xff] }
  0x15   : > { %v233_v24 = vmax.f32 %v217_v16, 0.0  ;;  %v234_v25 = vmax.f32 %v218_v17, 0.0  ;;  %v235_v26 = vmax.f32 %v219_v18, 0.0  ;;  %v223_v27 = vadd.f32 %v492_v1, %v200_v19  ;;  %v186_v51 = vld [vmem:[%s487_s19 + $0x78] sm:$0xff] }
  0x16   : > { %v236_v28 = vmax.f32 %v220_v20, 0.0  ;;  %v237_v29 = vmax.f32 %v221_v21, 0.0  ;;  %v238_v30 = vmax.f32 %v222_v22, 0.0  ;;  %v224_v31 = vadd.f32 %v492_v1, %v201_v23 }
  0x17   : > { %v416_v35 = vpack.c.bf16 %v233_v24, %v233_v24  ;;  %v417_v36 = vpack.c.bf16 %v234_v25, %v234_v25  ;;  %v418_v37 = vpack.c.bf16 %v235_v26, %v235_v26  ;;  %v239_v38 = vmax.f32 %v223_v27, 0.0 }
  0x18   : > { %v419_v42 = vpack.c.bf16 %v236_v28, %v236_v28  ;;  %v420_v43 = vpack.c.bf16 %v237_v29, %v237_v29  ;;  %v421_v44 = vpack.c.bf16 %v238_v30, %v238_v30  ;;  %v240_v45 = vmax.f32 %v224_v31, 0.0 }
  0x19   : > { %314 = vst.msk [vmem:[%s521_s25] sm:$0xf] %vm313_vm0, %v416_v35  ;;  %315 = vst.msk [vmem:[%s521_s25 + $0x4] sm:$0xf] %vm313_vm0, %v417_v36  ;;  %v422_v47 = vpack.c.bf16 %v239_v38, %v239_v38  ;;  %v202_v48 = vmul.f32 %v482_v0, %v179_v32  ;;  %v203_v49 = vmul.f32 %v482_v0, %v180_v33 }
  0x1a   : > { %316 = vst.msk [vmem:[%s521_s25 + $0x8] sm:$0xf] %vm313_vm0, %v418_v37  ;;  %v204_v50 = vmul.f32 %v482_v0, %v181_v34  ;;  %317 = vst.msk [vmem:[%s521_s25 + $0xc] sm:$0xf] %vm313_vm0, %v419_v42  ;;  %v423_v52 = vpack.c.bf16 %v240_v45, %v240_v45  ;;  %v205_v53 = vmul.f32 %v482_v0, %v182_v39 }
  0x1b   : > { %318 = vst.msk [vmem:[%s521_s25 + $0x10] sm:$0xf] %vm313_vm0, %v420_v43  ;;  %319 = vst.msk [vmem:[%s521_s25 + $0x14] sm:$0xf] %vm313_vm0, %v421_v44  ;;  %v206_v54 = vmul.f32 %v482_v0, %v183_v40  ;;  %v207_v55 = vmul.f32 %v482_v0, %v184_v41  ;;  %v225_v56 = vadd.f32 %v492_v1, %v202_v48 }
  0x1c   : > { %320 = vst.msk [vmem:[%s521_s25 + $0x18] sm:$0xf] %vm313_vm0, %v422_v47  ;;  %v226_v57 = vadd.f32 %v492_v1, %v203_v49  ;;  %v227_v58 = vadd.f32 %v492_v1, %v204_v50  ;;  %v208_v59 = vmul.f32 %v482_v0, %v185_v46  ;;  %321 = vst.msk [vmem:[%s521_s25 + $0x1c] sm:$0xf] %vm313_vm0, %v423_v52 }
  0x1d   : > { %v228_v60 = vadd.f32 %v492_v1, %v205_v53  ;;  %v229_v61 = vadd.f32 %v492_v1, %v206_v54  ;;  %v230_v62 = vadd.f32 %v492_v1, %v207_v55  ;;  %v209_v63 = vmul.f32 %v482_v0, %v186_v51 }
  0x1e   : > { %v241_v2 = vmax.f32 %v225_v56, 0.0  ;;  %v242_v3 = vmax.f32 %v226_v57, 0.0  ;;  %v243_v4 = vmax.f32 %v227_v58, 0.0  ;;  %v231_v5 = vadd.f32 %v492_v1, %v208_v59 }
  0x1f   : > { %v244_v6 = vmax.f32 %v228_v60, 0.0  ;;  %v245_v7 = vmax.f32 %v229_v61, 0.0  ;;  %v246_v8 = vmax.f32 %v230_v62, 0.0  ;;  %v232_v9 = vadd.f32 %v492_v1, %v209_v63 }
  0x20   : > { %v424_v10 = vpack.c.bf16 %v241_v2, %v241_v2  ;;  %v425_v11 = vpack.c.bf16 %v242_v3, %v242_v3  ;;  %v426_v0 = vpack.c.bf16 %v243_v4, %v243_v4  ;;  %v247_v12 = vmax.f32 %v231_v5, 0.0 }
  0x21   : > { %v427_v13 = vpack.c.bf16 %v244_v6, %v244_v6  ;;  %v428_v14 = vpack.c.bf16 %v245_v7, %v245_v7  ;;  %v429_v15 = vpack.c.bf16 %v246_v8, %v246_v8  ;;  %v248_v16 = vmax.f32 %v232_v9, 0.0 }
  0x22   : > { %322 = vst.msk [vmem:[%s521_s25 + $0x20] sm:$0xf] %vm313_vm0, %v424_v10  ;;  %323 = vst.msk [vmem:[%s521_s25 + $0x24] sm:$0xf] %vm313_vm0, %v425_v11  ;;  %v430_v17 = vpack.c.bf16 %v247_v12, %v247_v12 }
  0x23   : > { %324 = vst.msk [vmem:[%s521_s25 + $0x28] sm:$0xf] %vm313_vm0, %v426_v0  ;;  %325 = vst.msk [vmem:[%s521_s25 + $0x2c] sm:$0xf] %vm313_vm0, %v427_v13  ;;  %v431_v1 = vpack.c.bf16 %v248_v16, %v248_v16 }
  0x24   : > { %326 = vst.msk [vmem:[%s521_s25 + $0x30] sm:$0xf] %vm313_vm0, %v428_v14  ;;  %327 = vst.msk [vmem:[%s521_s25 + $0x34] sm:$0xf] %vm313_vm0, %v429_v15 }
  0x25   : > { %328 = vst.msk [vmem:[%s521_s25 + $0x38] sm:$0xf] %vm313_vm0, %v430_v17  ;;  %329 = vst.msk [vmem:[%s521_s25 + $0x3c] sm:$0xf] %vm313_vm0, %v431_v1 }
  0x26 PF: > { %s13_s12 = sadd.s32 1, %s446_s12  }
  0x27   : > { %p10_p4 = scmp.ge.s32.totalorder %s13_s12, 6  }
  0x29   :  { %12 = sbr.rel (!%p10_p4) target bundleno = 1 (0x1), region = 62 }

// kernel: conv_block_nested_forward.7
= control target key start
LH: loop header
LB: loop body
LE: loop exit
PB: predicated region body
PF: predicated region fallthrough
CT: control target
= control target key end

     0   :  { %s514_s12 = smov 0   ;;  %s605_s0 = inlined_call_operand.vmem [shape: f32[4,128,128], index: 0, kind: input, shape index: {}]   ;;  %s606_s1 = inlined_call_operand.vmem [shape: f32[1,128], index: 1, kind: input, shape index: {}]   ;;  %s607_s2 = inlined_call_operand.vmem [shape: f32[1,128], index: 2, kind: input, shape index: {}]   ;;  %s608_s3 = inlined_call_operand.vmem [shape: bf16[4,128,128], index: 3, kind: output, shape index: {}]  }
   0x1 LB: > { %s384_s13 = sadd.s32 4294967295, %s492_s12   ;;  %p388_p0 = scmp.ge.s32.totalorder %s492_s12, 1  ;;  %s492_s12 = sphi %s514_s12, %s13_s12  }
   0x2   : > { %p137_p1 = scmp.lt.s32.totalorder %s492_s12, 5 }
   0x4   : > { %p138_p2 = pnand %p388_p0, %p137_p1 }
   0x5   : > { %p161_p3 = scmp.lt.s32.totalorder (!%p138_p2), %s384_s13, 3  ;;  %v528_v0 = vld [vmem:[%s606_s1] ss:$0 sm:$0xff] (!%p138_p2) }
   0x6   : > { %141 = sbr.rel (%p138_p2) target bundleno = 37 (0x25), region = 32  ;;  %v538_v1 = vld [vmem:[%s607_s2] ss:$0 sm:$0xff] (!%p138_p2) }
   0xd   : > { %s610_s13 = smov (!%p161_p3, %s384_s13), 3 }
   0xe   : > { %s413_s14 = sshll.u32 %s610_s13, 7  ;;  %s414_s22 = sshll.u32 %s610_s13, 6 }
   0xf   : > { %s533_s19 = scalar_lea.vmem %s605_s0, %s413_s14  ;;  %s570_s25 = scalar_lea.vmem %s608_s3, %s414_s22 }
  0x10   : > { %v171_v2 = vld [vmem:[%s533_s19] sm:$0xff]  ;;  %v172_v3 = vld [vmem:[%s533_s19 + $0x8] sm:$0xff]  ;;  %v173_v4 = vld [vmem:[%s533_s19 + $0x10] sm:$0xff] }
  0x11   : > { %v194_v5 = vmul.f32 %v528_v0, %v171_v2  ;;  %v195_v6 = vmul.f32 %v528_v0, %v172_v3  ;;  %v174_v7 = vld [vmem:[%s533_s19 + $0x18] sm:$0xff]  ;;  %v196_v8 = vmul.f32 %v528_v0, %v173_v4  ;;  %v175_v9 = vld [vmem:[%s533_s19 + $0x20] sm:$0xff]  ;;  %v176_v10 = vld [vmem:[%s533_s19 + $0x28] sm:$0xff] }
  0x12   : > { %v197_v11 = vmul.f32 %v528_v0, %v174_v7  ;;  %v198_v12 = vmul.f32 %v528_v0, %v175_v9  ;;  %v199_v13 = vmul.f32 %v528_v0, %v176_v10  ;;  %v177_v14 = vld [vmem:[%s533_s19 + $0x30] sm:$0xff]  ;;  %v178_v15 = vld [vmem:[%s533_s19 + $0x38] sm:$0xff]  ;;  %v179_v24 = vld [vmem:[%s533_s19 + $0x40] sm:$0xff] }
  0x13   : > { %v217_v16 = vadd.f32 %v538_v1, %v194_v5  ;;  %v218_v17 = vadd.f32 %v538_v1, %v195_v6  ;;  %v219_v18 = vadd.f32 %v538_v1, %v196_v8  ;;  %v200_v19 = vmul.f32 %v528_v0, %v177_v14  ;;  %v180_v25 = vld [vmem:[%s533_s19 + $0x48] sm:$0xff]  ;;  %v181_v30 = vld [vmem:[%s533_s19 + $0x50] sm:$0xff]  ;;  %v182_v35 = vld [vmem:[%s533_s19 + $0x58] sm:$0xff] }
  0x14   : > { %v220_v20 = vadd.f32 %v538_v1, %v197_v11  ;;  %v221_v21 = vadd.f32 %v538_v1, %v198_v12  ;;  %v222_v22 = vadd.f32 %v538_v1, %v199_v13  ;;  %v201_v23 = vmul.f32 %v528_v0, %v178_v15  ;;  %v183_v36 = vld [vmem:[%s533_s19 + $0x60] sm:$0xff]  ;;  %v184_v41 = vld [vmem:[%s533_s19 + $0x68] sm:$0xff]  ;;  %v185_v42 = vld [vmem:[%s533_s19 + $0x70] sm:$0xff] }
  0x15   : > { %v233_v26 = vmax.f32 %v217_v16, 0.0  ;;  %v234_v27 = vmax.f32 %v218_v17, 0.0  ;;  %v235_v28 = vmax.f32 %v219_v18, 0.0  ;;  %v223_v29 = vadd.f32 %v538_v1, %v200_v19  ;;  %v186_v51 = vld [vmem:[%s533_s19 + $0x78] sm:$0xff] }
  0x16   : > { %v236_v31 = vmax.f32 %v220_v20, 0.0  ;;  %v237_v32 = vmax.f32 %v221_v21, 0.0  ;;  %v238_v33 = vmax.f32 %v222_v22, 0.0  ;;  %v224_v34 = vadd.f32 %v538_v1, %v201_v23 }
  0x17   : > { %v434_v37 = vpack.c.bf16 %v234_v27, %v233_v26  ;;  %v239_v38 = vmax.f32 %v223_v29, 0.0  ;;  %v202_v39 = vmul.f32 %v528_v0, %v179_v24  ;;  %v203_v40 = vmul.f32 %v528_v0, %v180_v25 }
  0x18   : > { %v439_v43 = vpack.c.bf16 %v236_v31, %v235_v28  ;;  %v444_v44 = vpack.c.bf16 %v238_v33, %v237_v32  ;;  %v240_v45 = vmax.f32 %v224_v34, 0.0  ;;  %v204_v46 = vmul.f32 %v528_v0, %v181_v30 }
  0x19   : > { %435 = vst [vmem:[%s570_s25] sm:$0xff] %v434_v37   ;;  %v225_v47 = vadd.f32 %v538_v1, %v202_v39  ;;  %v226_v48 = vadd.f32 %v538_v1, %v203_v40  ;;  %v205_v49 = vmul.f32 %v528_v0, %v182_v35  ;;  %v206_v50 = vmul.f32 %v528_v0, %v183_v36 }
  0x1a   : > { %471 = vst [vmem:[%s570_s25 + $0x8] sm:$0xff] %v439_v43   ;;  %472 = vst [vmem:[%s570_s25 + $0x10] sm:$0xff] %v444_v44   ;;  %v449_v52 = vpack.c.bf16 %v240_v45, %v239_v38  ;;  %v227_v53 = vadd.f32 %v538_v1, %v204_v46  ;;  %v207_v54 = vmul.f32 %v528_v0, %v184_v41 }
  0x1b   : > { %v208_v55 = vmul.f32 %v528_v0, %v185_v42  ;;  %v241_v56 = vmax.f32 %v225_v47, 0.0  ;;  %v242_v57 = vmax.f32 %v226_v48, 0.0  ;;  %v228_v58 = vadd.f32 %v538_v1, %v205_v49 }
  0x1c   : > { %v229_v59 = vadd.f32 %v538_v1, %v206_v50  ;;  %473 = vst [vmem:[%s570_s25 + $0x18] sm:$0xff] %v449_v52   ;;  %v243_v60 = vmax.f32 %v227_v53, 0.0  ;;  %v230_v61 = vadd.f32 %v538_v1, %v207_v54  ;;  %v209_v62 = vmul.f32 %v528_v0, %v186_v51 }
  0x1d   : > { %v231_v63 = vadd.f32 %v538_v1, %v208_v55  ;;  %v454_v2 = vpack.c.bf16 %v242_v57, %v241_v56  ;;  %v244_v3 = vmax.f32 %v228_v58, 0.0 }
  0x1e   : > { %v245_v4 = vmax.f32 %v229_v59, 0.0  ;;  %v246_v5 = vmax.f32 %v230_v61, 0.0  ;;  %v232_v6 = vadd.f32 %v538_v1, %v209_v62 }
  0x1f   : > { %v247_v7 = vmax.f32 %v231_v63, 0.0  ;;  %474 = vst [vmem:[%s570_s25 + $0x20] sm:$0xff] %v454_v2   ;;  %v459_v8 = vpack.c.bf16 %v244_v3, %v243_v60 }
  0x20   : > { %v464_v9 = vpack.c.bf16 %v246_v5, %v245_v4  ;;  %v248_v10 = vmax.f32 %v232_v6, 0.0 }
  0x21   : > { %475 = vst [vmem:[%s570_s25 + $0x28] sm:$0xff] %v459_v8  }
  0x22   : > { %476 = vst [vmem:[%s570_s25 + $0x30] sm:$0xff] %v464_v9   ;;  %v469_v11 = vpack.c.bf16 %v248_v10, %v247_v7 }
  0x24   : > { %477 = vst [vmem:[%s570_s25 + $0x38] sm:$0xff] %v469_v11  }
  0x25 PF: > { %s13_s12 = sadd.s32 1, %s492_s12  }
  0x26   : > { %p10_p4 = scmp.ge.s32.totalorder %s13_s12, 6  }
  0x28   :  { %12 = sbr.rel (!%p10_p4) target bundleno = 1 (0x1), region = 62 }

// kernel: conv_block_nested_forward.4
= control target key start
LH: loop header
LB: loop body
LE: loop exit
PB: predicated region body
PF: predicated region fallthrough
CT: control target
= control target key end

     0   :  { %s2363_s12 = smov 0   ;;  %s2789_s0 = inlined_call_operand.vmem [shape: bf16[4,10,18,4], index: 0, kind: input, shape index: {}]   ;;  %s2790_s1 = inlined_call_operand.vmem [shape: bf16[36,8], index: 1, kind: input, shape index: {}]   ;;  %s2791_s2 = inlined_call_operand.vmem [shape: f32[4,128,8], index: 2, kind: output, shape index: {0}]   ;;  %s2792_s3 = inlined_call_operand.vmem [shape: f32[4,2,8], index: 3, kind: output, shape index: {1}]  }
   0x1 LB: > { %s1875_s13 = sadd.s32 4294967295, %s2333_s12   ;;  %p1879_p0 = scmp.ge.s32.totalorder %s2333_s12, 1  ;;  %s2333_s12 = sphi %s2363_s12, %s14_s12  }
   0x2   : > { %p140_p1 = scmp.lt.s32.totalorder %s2333_s12, 5 }
   0x4   : > { %p141_p2 = pnand %p1879_p0, %p140_p1 }
   0x5   : > { %p168_p3 = scmp.lt.s32.totalorder (!%p141_p2), %s1875_s13, 3  ;;  %vm562_vm0 = vcmask (!%p141_p2), 1046528   ;;  %s2335_s18 = smov (!%p141_p2), 12   ;;  %vm344_vm1 = vsmask.f32 (!%p141_p2), 7424  ;;  %vm247_vm2 = vcmask (!%p141_p2), 31744  }
   0x6   : > { %144 = sbr.rel (%p141_p2) target bundleno = 506 (0x1fa), region = 28  ;;  %s2336_s19 = smov (!%p141_p2), 20   ;;  %vm465_vm3 = vcmask (!%p141_p2), 64544   ;;  %vm611_vm4 = vcmask (!%p141_p2), 97344   ;;  %vm701_vm5 = vcmask (!%p141_p2), 130144   ;;  %vm1577_vm6 = vcmask (!%p141_p2), 1041408  }
   0x7   : > { %s2337_s20 = smov (!%p141_p2), 8   ;;  %s2338_s21 = smov (!%p141_p2), 4   ;;  %vm918_vm7 = vcmask (!%p141_p2), 162944   ;;  %vm1063_vm8 = vcmask (!%p141_p2), 195744   ;;  %vm1153_vm9 = vcmask (!%p141_p2), 228544   ;;  %vm1370_vm10 = vcmask (!%p141_p2), 261344  }
   0x8   : > { %s2339_s22 = smov (!%p141_p2), 16   ;;  %s2340_s23 = smov (!%p141_p2), 24   ;;  %vm1515_vm11 = vcmask (!%p141_p2), 294144   ;;  %vm1552_vm12 = vcmask (!%p141_p2), 293888   ;;  %vm1678_vm13 = vcmask (!%p141_p2), 64512   ;;  %vm1785_vm14 = vcmask (!%p141_p2), 1040384  }
   0x9   : > { %s2341_s24 = smov (!%p141_p2), 28   ;;  %s2342_s25 = smov (!%p141_p2), 32   ;;  %vm1787_vm15 = vcmask (!%p141_p2), 58368  }
   0xd   : > { %s2794_s13 = smov (!%p168_p3, %s1875_s13), 3 }
   0xe   : > { %s2187_s14 = smul.u32 120, %s2794_s13  ;;  %s2145_s5 = sshll.u32 %s2794_s13, 7 }
   0xf   : > { %s2716_s8 = scalar_lea.vmem %s2791_s2, %s2145_s5  ;;  %s1883_s9 = sshll.u32 %s2794_s13, 1 }
  0x10   : > { %s2377_s17 = scalar_lea.vmem %s2789_s0, %s2187_s14  ;;  %s181_s14 = scalar_lea.vmem %s2792_s3, %s1883_s9 }
  0x11   : > { %v2204_v0 = vld [vmem:[%s2377_s17 + $0x18] sm:$0xff]   ;;  %v2205_v1 = vld [vmem:[%s2377_s17 + $0xc] sm:$0xff]   ;;  %v2207_v3 = vld [vmem:[%s2377_s17 + $0x14] ss:$0 sps:$4 sm:$0x11]  }
  0x12   : > { %679 = vrot.lane.b32.xlu1 %v2204_v0, %s2335_s18  ;;  %677 = vrot.lane.b32.xlu0 %v2205_v1, %s2335_s18  ;;  %v2206_v2 = vld [vmem:[%s2377_s17 + $0xc] sm:$0xfe]   ;;  %v2212_v4 = vld [vmem:[%s2377_s17] sm:$0xff]   ;;  %v1016_v6 = vrot.slane %v2207_v3, 1 }
  0x13   : > { %v1015_v5 = vrot.slane %v2206_v2, 1  ;;  %v2208_v7 = vld [vmem:[%s2377_s17] sm:$0xfe]   ;;  %v2209_v8 = vld [vmem:[%s2377_s17 + $0x8] ss:$0 sps:$4 sm:$0x11]  }
  0x14   : > { %v346_v9 = vshrl.u32 %v2212_v4, 16  ;;  %v563_v11 = vrot.slane %v2208_v7, 1  ;;  %v2210_v12 = vld [vmem:[%s2377_s17 + $0xc] sm:$0xfe]   ;;  %v348_v13 = vshll.u32 %v2212_v4, 16  ;;  %v564_v14 = vrot.slane %v2209_v8, 1 }
  0x15   : > { %v1017_v10 = vsel %vm562_vm0, %v1015_v5, %v1016_v6  ;;  %v2211_v15 = vld [vmem:[%s2377_s17 + $0x14] ss:$0 sps:$4 sm:$0x11]   ;;  %v566_v16 = vrot.slane %v2210_v12, 1  ;;  %v2214_v21 = vld [vmem:[%s2377_s17 + $0x18] sm:$0xfe]  }
  0x16   : > { %1039 = vrot.lane.b32.xlu0 %v1017_v10, %s2336_s19  ;;  %v350_v17 = vrot.slane %v348_v13, 1  ;;  %v565_v18 = vsel %vm562_vm0, %v563_v11, %v564_v14  ;;  %v567_v19 = vrot.slane %v2211_v15, 1  ;;  %v2213_v20 = vld [vmem:[%s2377_s17 + $0x8] ss:$0 sps:$4 sm:$0x11]   ;;  %v1018_v26 = vrot.slane %v2214_v21, 1 }
  0x17   : > { %587 = vrot.lane.b32.xlu1 %v565_v18, %s2337_s20  ;;  %v353_v24 = vshll.u32 %v2213_v20, 16  ;;  %v2215_v25 = vld [vmem:[%s2377_s17 + $0x20] ss:$0 sps:$4 sm:$0x11]   ;;  %v2216_v27 = vld [vmem:[%s2377_s17 + $0xc] sm:$0xff]   ;;  %v2218_v31 = vld [vmem:[%s2377_s17 + $0x18] sm:$0xff]  }
  0x18   : > { %v568_v22 = vsel %vm562_vm0, %v566_v16, %v567_v19  ;;  %v351_v23 = vor.u32 %v350_v17, %v346_v9  ;;  %v1019_v29 = vrot.slane %v2215_v25, 1  ;;  %v2217_v30 = vld [vmem:[%s2377_s17 + $0x14] ss:$0 sps:$4 sm:$0x11]   ;;  %v358_v32 = vshrl.u32 %v2216_v27, 16  ;;  %v2220_v41 = vld [vmem:[%s2377_s17 + $0xc] sm:$0xff]  }
  0x19   : > { %v355_v28 = vrot.slane %v353_v24, 1  ;;  %v360_v33 = vshll.u32 %v2216_v27, 16  ;;  %v365_v36 = vshll.u32 %v2217_v30, 16  ;;  %v2219_v37 = vld [vmem:[%s2377_s17 + $0x20] ss:$0 sps:$4 sm:$0x11]  }
  0x1a   : > { %v1020_v35 = vsel %vm562_vm0, %v1018_v26, %v1019_v29  ;;  %v811_v39 = vshrl.u32 %v2218_v31, 16  ;;  %v813_v40 = vshll.u32 %v2218_v31, 16  ;;  %v818_v43 = vshll.u32 %v2219_v37, 16  ;;  %v2221_v46 = vld [vmem:[%s2377_s17 + $0x14] ss:$0 sps:$4 sm:$0x11]  }
  0x1b   : > { %589 = vrot.lane.b32.xlu1 %v568_v22, %s2337_s20  ;;  %v356_v34 = vsel %vm344_vm1, %v351_v23, %v355_v28  ;;  %v362_v38 = vrot.slane %v360_v33, 1  ;;  %v367_v42 = vrot.slane %v365_v36, 1  ;;  %v799_v47 = vshrl.u32 %v2220_v41, 16  ;;  %v2223_v54 = vld [vmem:[%s2377_s17 + $0x24] sm:$0xff]   ;;  %v2224_v58 = vld [vmem:[%s2377_s17 + $0x18] sm:$0xff]  }
  0x1c   : > { %441 = vrot.lane.b32.xlu0 %v356_v34, %s2338_s21  ;;  %v815_v45 = vrot.slane %v813_v40, 1  ;;  %v801_v48 = vshll.u32 %v2220_v41, 16  ;;  %v820_v49 = vrot.slane %v818_v43, 1  ;;  %v806_v53 = vshll.u32 %v2221_v46, 16  ;;  %v2222_v59 = vld [vmem:[%s2377_s17 + $0x18] sm:$0xff]   ;;  %v2226_v61 = vld [vmem:[%s2377_s17 + $0x24] sm:$0xff]  }
  0x1d   : > { %v363_v44 = vor.u32 %v362_v38, %v358_v32  ;;  %v2225_v60 = vld [vmem:[%s2377_s17 + $0x20] ss:$0 sps:$4 sm:$0x11]   ;;  %v1251_v63 = vshrl.u32 %v2224_v58, 16  ;;  %v1253_v0 = vshll.u32 %v2224_v58, 16  ;;  %v1263_v3 = vshrl.u32 %v2226_v61, 16 }
  0x1e   : > { %v816_v51 = vor.u32 %v815_v45, %v811_v39  ;;  %v803_v52 = vrot.slane %v801_v48, 1  ;;  %v808_v57 = vrot.slane %v806_v53, 1  ;;  %v1258_v1 = vshll.u32 %v2225_v60, 16  ;;  %v2227_v2 = vld [vmem:[%s2377_s17 + $0x2c] ss:$0 sps:$4 sm:$0x11]  }
  0x1f   : > { %1041 = vrot.lane.b32.xlu1 %v1020_v35, %s2336_s19  ;;  %v368_v50 = vsel %vm344_vm1, %v363_v44, %v367_v42  ;;  %v1265_v4 = vshll.u32 %v2226_v61, 16  ;;  %v1255_v5 = vrot.slane %v1253_v0, 1  ;;  %v2230_v6 = vld [vmem:[%s2377_s17 + $0x18] sm:$0xff]   ;;  %v1270_v9 = vshll.u32 %v2227_v2, 16  ;;  %v2234_v11 = vld [vmem:[%s2377_s17 + $0x24] sm:$0xff]   ;;  %v2241_v58 = vld [vmem:[%s2377_s17 + $0x30] sm:$0xff]  }
  0x20   : > { %443 = vrot.lane.b32.xlu0 %v368_v50, %s2338_s21  ;;  %v821_v55 = vsel %vm344_vm1, %v816_v51, %v820_v49  ;;  %v804_v56 = vor.u32 %v803_v52, %v799_v47  ;;  %v1260_v7 = vrot.slane %v1258_v1, 1  ;;  %v2228_v10 = vld [vmem:[%s2377_s17 + $0x18] sm:$0xfe]   ;;  %v2229_v13 = vld [vmem:[%s2377_s17 + $0x20] ss:$0 sps:$4 sm:$0x11]  }
  0x21   : > { %v1267_v8 = vrot.slane %v1265_v4, 1  ;;  %v1256_v12 = vor.u32 %v1255_v5, %v1251_v63  ;;  %v370_v14 = vshrl.u32 %v2230_v6, 16  ;;  %v1272_v16 = vrot.slane %v1270_v9, 1  ;;  %v2231_v20 = vld [vmem:[%s2377_s17 + $0x20] ss:$0 sps:$4 sm:$0x11]  }
  0x22   : > { %v809_v62 = vsel %vm344_vm1, %v804_v56, %v808_v57  ;;  %v1467_v17 = vrot.slane %v2228_v10, 1  ;;  %v1468_v19 = vrot.slane %v2229_v13, 1  ;;  %v372_v21 = vshll.u32 %v2230_v6, 16  ;;  %v2232_v26 = vld [vmem:[%s2377_s17 + $0x24] sm:$0xfe]   ;;  %v2244_v50 = vld [vmem:[%s2377_s17 + $0x30] sm:$0xff]  }
  0x23   : > { %896 = vrot.lane.b32.xlu1 %v821_v55, %s2339_s22  ;;  %v1268_v15 = vor.u32 %v1267_v8, %v1263_v3  ;;  %v1261_v18 = vsel %vm344_vm1, %v1256_v12, %v1260_v7  ;;  %v382_v22 = vshrl.u32 %v2234_v11, 16  ;;  %v377_v25 = vshll.u32 %v2231_v20, 16  ;;  %v2233_v27 = vld [vmem:[%s2377_s17 + $0x2c] ss:$0 sps:$4 sm:$0x11]   ;;  %v2242_v47 = vld [vmem:[%s2377_s17 + $0x24] sm:$0xff]  }
  0x24   : > { %894 = vrot.lane.b32.xlu0 %v809_v62, %s2339_s22  ;;  %v374_v24 = vrot.slane %v372_v21, 1  ;;  %v384_v28 = vshll.u32 %v2234_v11, 16  ;;  %v1469_v29 = vsel %vm562_vm0, %v1467_v17, %v1468_v19  ;;  %v1470_v32 = vrot.slane %v2232_v26, 1  ;;  %v2235_v34 = vld [vmem:[%s2377_s17 + $0x2c] ss:$0 sps:$4 sm:$0x11]  }
  0x25   : > { %v1273_v23 = vsel %vm344_vm1, %v1268_v15, %v1272_v16  ;;  %v379_v31 = vrot.slane %v377_v25, 1  ;;  %v1471_v33 = vrot.slane %v2233_v27, 1  ;;  %v2236_v37 = vld [vmem:[%s2377_s17 + $0x18] sm:$0xfe]   ;;  %v389_v39 = vshll.u32 %v2235_v34, 16  ;;  %v2252_v16 = vld [vmem:[%s2377_s17 + $0x30] sm:$0xff]  }
  0x26   : > { %v375_v30 = vor.u32 %v374_v24, %v370_v14  ;;  %v386_v35 = vrot.slane %v384_v28, 1  ;;  %v2237_v40 = vld [vmem:[%s2377_s17 + $0x20] ss:$0 sps:$4 sm:$0x11]   ;;  %v569_v42 = vrot.slane %v2236_v37, 1  ;;  %v823_v53 = vshrl.u32 %v2242_v47, 16 }
  0x27   : > { %1131 = vrot.lane.b32.xlu1 %v2223_v54, %s2340_s23  ;;  %v1472_v41 = vsel %vm562_vm0, %v1470_v32, %v1471_v33  ;;  %v391_v43 = vrot.slane %v389_v39, 1  ;;  %v570_v44 = vrot.slane %v2237_v40, 1  ;;  %v2238_v45 = vld [vmem:[%s2377_s17 + $0x24] sm:$0xfe]   ;;  %v825_v56 = vshll.u32 %v2242_v47, 16  ;;  %v2254_v21 = vld [vmem:[%s2377_s17 + $0x3c] sm:$0xff]  }
  0x28   : > { %1129 = vrot.lane.b32.xlu0 %v2222_v59, %s2340_s23  ;;  %v380_v36 = vsel %vm344_vm1, %v375_v30, %v379_v31  ;;  %v387_v38 = vor.u32 %v386_v35, %v382_v22  ;;  %v2239_v46 = vld [vmem:[%s2377_s17 + $0x2c] ss:$0 sps:$4 sm:$0x11]   ;;  %v572_v49 = vrot.slane %v2238_v45, 1  ;;  %v2240_v54 = vld [vmem:[%s2377_s17 + $0x24] sm:$0xff]   ;;  %v835_v62 = vshrl.u32 %v2244_v50, 16 }
  0x29   : > { %v571_v51 = vsel %vm562_vm0, %v569_v42, %v570_v44  ;;  %v573_v52 = vrot.slane %v2239_v46, 1  ;;  %v2243_v55 = vld [vmem:[%s2377_s17 + $0x2c] ss:$0 sps:$4 sm:$0x11]   ;;  %v827_v59 = vrot.slane %v825_v56, 1  ;;  %v837_v63 = vshll.u32 %v2244_v50, 16 }
  0x2a   : > { %v392_v48 = vsel %vm344_vm1, %v387_v38, %v391_v43  ;;  %v830_v60 = vshll.u32 %v2243_v55, 16  ;;  %v2245_v61 = vld [vmem:[%s2377_s17 + $0x38] ss:$0 sps:$4 sm:$0x11]   ;;  %v2246_v3 = vld [vmem:[%s2377_s17 + $0x24] sm:$0xfe]  }
  0x2b   : > { %1348 = vrot.lane.b32.xlu1 %v1273_v23, %s2341_s24  ;;  %v574_v57 = vsel %vm562_vm0, %v572_v49, %v573_v52  ;;  %v828_v0 = vor.u32 %v827_v59, %v823_v53  ;;  %v842_v2 = vshll.u32 %v2245_v61, 16  ;;  %v839_v4 = vrot.slane %v837_v63, 1  ;;  %v2247_v5 = vld [vmem:[%s2377_s17 + $0x2c] ss:$0 sps:$4 sm:$0x11]   ;;  %v2250_v23 = vld [vmem:[%s2377_s17 + $0x30] sm:$0xff]  }
  0x2c   : > { %1346 = vrot.lane.b32.xlu0 %v1261_v18, %s2341_s24  ;;  %v832_v1 = vrot.slane %v830_v60, 1  ;;  %v1021_v7 = vrot.slane %v2246_v3, 1  ;;  %v1022_v10 = vrot.slane %v2247_v5, 1  ;;  %v2248_v11 = vld [vmem:[%s2377_s17 + $0x30] sm:$0xfe]   ;;  %v1275_v19 = vshrl.u32 %v2252_v16, 16 }
  0x2d   : > { %v844_v6 = vrot.slane %v842_v2, 1  ;;  %v840_v9 = vor.u32 %v839_v4, %v835_v62  ;;  %v2249_v12 = vld [vmem:[%s2377_s17 + $0x38] ss:$0 sps:$4 sm:$0x11]   ;;  %v1024_v14 = vrot.slane %v2248_v11, 1  ;;  %v1277_v20 = vshll.u32 %v2252_v16, 16 }
  0x2e   : > { %v833_v8 = vsel %vm344_vm1, %v828_v0, %v832_v1  ;;  %v1025_v15 = vrot.slane %v2249_v12, 1  ;;  %v1023_v17 = vsel %vm562_vm0, %v1021_v7, %v1022_v10  ;;  %v2253_v18 = vld [vmem:[%s2377_s17 + $0x38] ss:$0 sps:$4 sm:$0x11]   ;;  %v2251_v24 = vld [vmem:[%s2377_s17 + $0x3c] sm:$0xff]   ;;  %v1287_v28 = vshrl.u32 %v2254_v21, 16 }
  0x2f   : > { %445 = vrot.lane.b32.xlu1 %v380_v36, %s2338_s21  ;;  %v845_v13 = vsel %vm344_vm1, %v840_v9, %v844_v6  ;;  %v1279_v25 = vrot.slane %v1277_v20, 1  ;;  %v1282_v26 = vshll.u32 %v2253_v18, 16  ;;  %v2255_v27 = vld [vmem:[%s2377_s17 + $0x44] ss:$0 sps:$4 sm:$0x11]   ;;  %v2258_v30 = vld [vmem:[%s2377_s17 + $0x30] sm:$0xff]  }
  0x30   : > { %1491 = vrot.lane.b32.xlu0 %v1469_v29, %s2342_s25  ;;  %v1026_v22 = vsel %vm562_vm0, %v1024_v14, %v1025_v15  ;;  %v1289_v29 = vshll.u32 %v2254_v21, 16  ;;  %v1294_v33 = vshll.u32 %v2255_v27, 16  ;;  %v2256_v34 = vld [vmem:[%s2377_s17 + $0x30] sm:$0xfe]   ;;  %v394_v42 = vshrl.u32 %v2258_v30, 16  ;;  %v2262_v50 = vld [vmem:[%s2377_s17 + $0x3c] sm:$0xff]  }
  0x31   : > { %v1280_v31 = vor.u32 %v1279_v25, %v1275_v19  ;;  %v1284_v32 = vrot.slane %v1282_v26, 1  ;;  %v2257_v36 = vld [vmem:[%s2377_s17 + $0x38] ss:$0 sps:$4 sm:$0x11]   ;;  %v1473_v38 = vrot.slane %v2256_v34, 1  ;;  %v396_v43 = vshll.u32 %v2258_v30, 16 }
  0x32   : > { %v1291_v35 = vrot.slane %v1289_v29, 1  ;;  %v1296_v37 = vrot.slane %v1294_v33, 1  ;;  %v1474_v40 = vrot.slane %v2257_v36, 1  ;;  %v2261_v49 = vld [vmem:[%s2377_s17 + $0x44] ss:$0 sps:$4 sm:$0x11]  }
  0x33   : > { %447 = vrot.lane.b32.xlu1 %v392_v48, %s2338_s21  ;;  %v1285_v44 = vsel %vm344_vm1, %v1280_v31, %v1284_v32  ;;  %v398_v46 = vrot.slane %v396_v43, 1  ;;  %v2260_v48 = vld [vmem:[%s2377_s17 + $0x3c] sm:$0xfe]   ;;  %v1477_v55 = vrot.slane %v2261_v49, 1  ;;  %v2264_v60 = vld [vmem:[%s2377_s17 + $0x30] sm:$0xfe]  }
  0x34   : > { %1493 = vrot.lane.b32.xlu0 %v1472_v41, %s2342_s25  ;;  %v1292_v39 = vor.u32 %v1291_v35, %v1287_v28  ;;  %v2259_v41 = vld [vmem:[%s2377_s17 + $0x38] ss:$0 sps:$4 sm:$0x11]   ;;  %v1476_v53 = vrot.slane %v2260_v48, 1  ;;  %v575_v0 = vrot.slane %v2264_v60, 1  ;;  %v2270_v7 = vld [vmem:[%s2377_s17 + $0x3c] sm:$0xff]  }
  0x35   : > { %v401_v47 = vshll.u32 %v2259_v41, 16  ;;  %v2263_v56 = vld [vmem:[%s2377_s17 + $0x44] ss:$0 sps:$4 sm:$0x11]   ;;  %v2266_v5 = vld [vmem:[%s2377_s17 + $0x3c] sm:$0xfe]  }
  0x36   : > { %v1297_v45 = vsel %vm344_vm1, %v1292_v39, %v1296_v37  ;;  %v413_v62 = vshll.u32 %v2263_v56, 16  ;;  %v2265_v63 = vld [vmem:[%s2377_s17 + $0x38] ss:$0 sps:$4 sm:$0x11]   ;;  %v1478_v1 = vsel %vm562_vm0, %v1476_v53, %v1477_v55  ;;  %v578_v9 = vrot.slane %v2266_v5, 1  ;;  %v2272_v10 = vld [vmem:[%s2377_s17 + $0x48] sm:$0xff]  }
  0x37   : > { %593 = vrot.lane.b32.xlu1 %v574_v57, %s2337_s20  ;;  %v403_v52 = vrot.slane %v401_v47, 1  ;;  %v406_v57 = vshrl.u32 %v2262_v50, 16  ;;  %v576_v4 = vrot.slane %v2265_v63, 1  ;;  %v2267_v6 = vld [vmem:[%s2377_s17 + $0x44] ss:$0 sps:$4 sm:$0x11]  }
  0x38   : > { %591 = vrot.lane.b32.xlu0 %v571_v51, %s2337_s20  ;;  %v399_v51 = vor.u32 %v398_v46, %v394_v42  ;;  %v415_v3 = vrot.slane %v413_v62, 1  ;;  %v579_v11 = vrot.slane %v2267_v6, 1  ;;  %v847_v12 = vshrl.u32 %v2270_v7, 16  ;;  %v2268_v19 = vld [vmem:[%s2377_s17 + $0x3c] sm:$0xff]   ;;  %v2269_v21 = vld [vmem:[%s2377_s17 + $0x48] sm:$0xff]   ;;  %v2282_v48 = vld [vmem:[%s2377_s17 + $0x54] sm:$0xff]  }
  0x39   : > { %v849_v14 = vshll.u32 %v2270_v7, 16  ;;  %v859_v15 = vshrl.u32 %v2272_v10, 16  ;;  %v861_v18 = vshll.u32 %v2272_v10, 16  ;;  %v2274_v29 = vld [vmem:[%s2377_s17 + $0x3c] sm:$0xfe]   ;;  %v2280_v31 = vld [vmem:[%s2377_s17 + $0x48] sm:$0xff]  }
  0x3a   : > { %v404_v59 = vsel %vm344_vm1, %v399_v51, %v403_v52  ;;  %v580_v16 = vsel %vm562_vm0, %v578_v9, %v579_v11  ;;  %v2275_v30 = vld [vmem:[%s2377_s17 + $0x44] ss:$0 sps:$4 sm:$0x11]   ;;  %v1027_v33 = vrot.slane %v2274_v29, 1  ;;  %v2276_v34 = vld [vmem:[%s2377_s17 + $0x48] sm:$0xfe]  }
  0x3b   : > { %683 = vrot.lane.b32.xlu1 %v2241_v58, %s2335_s18  ;;  %v408_v58 = vshll.u32 %v2262_v50, 16  ;;  %v851_v20 = vrot.slane %v849_v14, 1  ;;  %v1028_v36 = vrot.slane %v2275_v30, 1  ;;  %v2277_v37 = vld [vmem:[%s2377_s17 + $0x50] ss:$0 sps:$4 sm:$0x11]  }
  0x3c   : > { %681 = vrot.lane.b32.xlu0 %v2240_v54, %s2335_s18  ;;  %v1475_v54 = vsel %vm562_vm0, %v1473_v38, %v1474_v40  ;;  %v1030_v39 = vrot.slane %v2276_v34, 1  ;;  %v1299_v40 = vshrl.u32 %v2280_v31, 16  ;;  %v1031_v41 = vrot.slane %v2277_v37, 1  ;;  %v2278_v47 = vld [vmem:[%s2377_s17 + $0x48] sm:$0xff]   ;;  %v2279_v50 = vld [vmem:[%s2377_s17 + $0x54] sm:$0xff]  }
  0x3d   : > { %v410_v61 = vrot.slane %v408_v58, 1  ;;  %v852_v25 = vor.u32 %v851_v20, %v847_v12  ;;  %v1301_v42 = vshll.u32 %v2280_v31, 16  ;;  %v1029_v43 = vsel %vm562_vm0, %v1027_v33, %v1028_v36  ;;  %v2283_v49 = vld [vmem:[%s2377_s17 + $0x5c] ss:$0 sps:$4 sm:$0x11]   ;;  %v2286_v55 = vld [vmem:[%s2377_s17 + $0x48] sm:$0xff]  }
  0x3e   : > { %v1032_v46 = vsel %vm562_vm0, %v1030_v39, %v1031_v41  ;;  %v1311_v52 = vshrl.u32 %v2282_v48, 16  ;;  %v1313_v53 = vshll.u32 %v2282_v48, 16  ;;  %v2284_v58 = vld [vmem:[%s2377_s17 + $0x48] sm:$0xfe]   ;;  %v2288_v6 = vld [vmem:[%s2377_s17 + $0x54] sm:$0xfe]  }
  0x3f   : > { %900 = vrot.lane.b32.xlu1 %v845_v13, %s2339_s22  ;;  %v411_v2 = vor.u32 %v410_v61, %v406_v57  ;;  %v577_v13 = vsel %vm562_vm0, %v575_v0, %v576_v4  ;;  %v1479_v62 = vrot.slane %v2284_v58, 1  ;;  %v418_v0 = vshrl.u32 %v2286_v55, 16  ;;  %v2289_v10 = vld [vmem:[%s2377_s17 + $0x5c] ss:$0 sps:$4 sm:$0x11]   ;;  %v2298_v31 = vld [vmem:[%s2377_s17 + $0x54] sm:$0xff]  }
  0x40   : > { %898 = vrot.lane.b32.xlu0 %v833_v8, %s2339_s22  ;;  %v1315_v60 = vrot.slane %v1313_v53, 1  ;;  %v420_v4 = vshll.u32 %v2286_v55, 16  ;;  %v1482_v12 = vrot.slane %v2288_v6, 1  ;;  %v2295_v30 = vld [vmem:[%s2377_s17 + $0x5c] ss:$0 sps:$4 sm:$0x11]  }
  0x41   : > { %v416_v8 = vsel %vm344_vm1, %v411_v2, %v415_v3  ;;  %v2287_v3 = vld [vmem:[%s2377_s17 + $0x50] ss:$0 sps:$4 sm:$0x11]   ;;  %v2300_v33 = vld [vmem:[%s2377_s17 + $0x60] sm:$0xff]   ;;  %v871_v36 = vshrl.u32 %v2298_v31, 16  ;;  %v873_v39 = vshll.u32 %v2298_v31, 16 }
  0x42   : > { %v1316_v2 = vor.u32 %v1315_v60, %v1311_v52  ;;  %v425_v9 = vshll.u32 %v2287_v3, 16  ;;  %v883_v41 = vshrl.u32 %v2300_v33, 16  ;;  %v2302_v52 = vld [vmem:[%s2377_s17 + $0x54] sm:$0xfe]   ;;  %v2308_v55 = vld [vmem:[%s2377_s17 + $0x60] sm:$0xff]   ;;  %v2310_v3 = vld [vmem:[%s2377_s17 + $0x6c] sm:$0xff]  }
  0x43   : > { %1045 = vrot.lane.b32.xlu1 %v1026_v22, %s2336_s19  ;;  %v2305_v60 = vld [vmem:[%s2377_s17 + $0x68] ss:$0 sps:$4 sm:$0x11]  }
  0x44   : > { %1043 = vrot.lane.b32.xlu0 %v1023_v17, %s2336_s19  ;;  %v2271_v17 = vld [vmem:[%s2377_s17 + $0x44] ss:$0 sps:$4 sm:$0x11]  }
  0x45   : > { %v854_v22 = vshll.u32 %v2271_v17, 16 }
  0x47   : > { %1135 = vrot.lane.b32.xlu1 %v2251_v24, %s2340_s23  ;;  %v863_v24 = vrot.slane %v861_v18, 1  ;;  %v856_v26 = vrot.slane %v854_v22, 1  ;;  %v2291_v18 = vld [vmem:[%s2377_s17 + $0x5c] ss:$0 sps:$4 sm:$0x11]  }
  0x48   : > { %1133 = vrot.lane.b32.xlu0 %v2250_v23, %s2340_s23  ;;  %v2273_v23 = vld [vmem:[%s2377_s17 + $0x50] ss:$0 sps:$4 sm:$0x11]  }
  0x49   : > { %v864_v27 = vor.u32 %v863_v24, %v859_v15  ;;  %v866_v28 = vshll.u32 %v2273_v23, 16  ;;  %v857_v35 = vsel %vm344_vm1, %v852_v25, %v856_v26  ;;  %v427_v15 = vrot.slane %v425_v9, 1  ;;  %v2293_v24 = vld [vmem:[%s2377_s17 + $0x50] ss:$0 sps:$4 sm:$0x11]  }
  0x4a   : > { %v437_v23 = vshll.u32 %v2291_v18, 16  ;;  %v2294_v26 = vld [vmem:[%s2377_s17 + $0x54] sm:$0xfe]   ;;  %v582_v29 = vrot.slane %v2293_v24, 1 }
  0x4b   : > { %1352 = vrot.lane.b32.xlu1 %v1297_v45, %s2341_s24  ;;  %v868_v32 = vrot.slane %v866_v28, 1  ;;  %v1303_v45 = vrot.slane %v1301_v42, 1  ;;  %v885_v42 = vshll.u32 %v2300_v33, 16 }
  0x4c   : > { %1350 = vrot.lane.b32.xlu0 %v1285_v44, %s2341_s24  ;;  %v2281_v44 = vld [vmem:[%s2377_s17 + $0x50] ss:$0 sps:$4 sm:$0x11]   ;;  %v439_v28 = vrot.slane %v437_v23, 1 }
  0x4d   : > { %v869_v38 = vsel %vm344_vm1, %v864_v27, %v868_v32  ;;  %v1306_v51 = vshll.u32 %v2281_v44, 16  ;;  %v1304_v56 = vor.u32 %v1303_v45, %v1299_v40  ;;  %v584_v32 = vrot.slane %v2294_v26, 1 }
  0x4e   : > { %v875_v44 = vrot.slane %v873_v39, 1  ;;  %v887_v48 = vrot.slane %v885_v42, 1  ;;  %v2320_v39 = vld [vmem:[%s2790_s1 + $0x8] sm:$0xff]  }
  0x4f   : > { %449 = vrot.lane.b32.xlu1 %v404_v59, %s2338_s21  ;;  %v1308_v57 = vrot.slane %v1306_v51, 1  ;;  %v2285_v59 = vld [vmem:[%s2377_s17 + $0x50] ss:$0 sps:$4 sm:$0x11]  }
  0x50   : > { %1495 = vrot.lane.b32.xlu0 %v1475_v54, %s2342_s25  ;;  %v1318_v54 = vshll.u32 %v2283_v49, 16  ;;  %v1480_v63 = vrot.slane %v2285_v59, 1  ;;  %v876_v49 = vor.u32 %v875_v44, %v871_v36  ;;  %v888_v53 = vor.u32 %v887_v48, %v883_v41  ;;  %v2304_v59 = vld [vmem:[%s2377_s17 + $0x60] sm:$0xfe]   ;;  %v2325_v48 = vld [vmem:[%s2377_s17 + $0x48] sm:$0xff]  }
  0x51   : > { %v1309_v5 = vsel %vm344_vm1, %v1304_v56, %v1308_v57  ;;  %v1033_v57 = vrot.slane %v2302_v52, 1  ;;  %v2318_v36 = vld [vmem:[%s2790_s1] sm:$0xff]   ;;  %254 = vst.msk [vmem:[#allocation2 + $0x30] sm:$0xff] %vm247_vm2, %v2325_v48 }
  0x52   : > { %v1320_v61 = vrot.slane %v1318_v54, 1  ;;  %v1481_v17 = vsel %vm562_vm0, %v1479_v62, %v1480_v63  ;;  %v2303_v54 = vld [vmem:[%s2377_s17 + $0x5c] ss:$0 sps:$4 sm:$0x11]   ;;  %v1036_v63 = vrot.slane %v2304_v59, 1  ;;  %2157 = vmatprep.subr.bf16.mxu0 %v2318_v36  ;;  %2179 = vmatprep.subr.bf16.mxu1 %v2318_v36 }
  0x53   : > { %451 = vrot.lane.b32.xlu1 %v416_v8, %s2338_s21  ;;  %v422_v8 = vrot.slane %v420_v4, 1  ;;  %v1034_v58 = vrot.slane %v2303_v54, 1  ;;  %2158 = vmatpush3.bf16.msra.mxu0 %v2318_v36 }
  0x54   : > { %1497 = vrot.lane.b32.xlu0 %v1478_v1, %s2342_s25  ;;  %v2290_v1 = vld [vmem:[%s2377_s17 + $0x54] sm:$0xff]   ;;  %v1321_v7 = vsel %vm344_vm1, %v1316_v2, %v1320_v61  ;;  %v2309_v2 = vld [vmem:[%s2377_s17 + $0x68] ss:$0 sps:$4 sm:$0x11]   ;;  %2159 = vmatprep.subr.bf16.mxu0 %v2320_v39 }
  0x55   : > { %v430_v11 = vshrl.u32 %v2290_v1, 16  ;;  %v423_v14 = vor.u32 %v422_v8, %v418_v0  ;;  %v1037_v0 = vrot.slane %v2305_v60, 1  ;;  %v1035_v4 = vsel %vm562_vm0, %v1033_v57, %v1034_v58  ;;  %2182 = vmatpush3.bf16.msra.mxu1 %v2318_v36 }
  0x56   : > { %2180 = vmatprep.subr.bf16.mxu1 %v2320_v39 }
  0x57   : > { %597 = vrot.lane.b32.xlu1 %v580_v16, %s2337_s20  ;;  %v1483_v16 = vrot.slane %v2289_v10, 1  ;;  %v428_v20 = vsel %vm344_vm1, %v423_v14, %v427_v15  ;;  %v1038_v9 = vsel %vm562_vm0, %v1036_v63, %v1037_v0  ;;  %v2306_v10 = vld [vmem:[%s2377_s17 + $0x60] sm:$0xff]   ;;  %v1337_v14 = vshll.u32 %v2310_v3, 16  ;;  %v2307_v15 = vld [vmem:[%s2377_s17 + $0x6c] sm:$0xff]   ;;  %2160 = vmatpush3.bf16.msra.mxu0 %v2320_v39 }
  0x58   : > { %595 = vrot.lane.b32.xlu0 %v577_v13, %s2337_s20  ;;  %v432_v13 = vshll.u32 %v2290_v1, 16  ;;  %v1325_v1 = vshll.u32 %v2308_v55, 16 }
  0x59   : > { %v1484_v27 = vsel %vm562_vm0, %v1482_v12, %v1483_v16  ;;  %v2311_v12 = vld [vmem:[%s2377_s17 + $0x74] ss:$0 sps:$4 sm:$0x11]   ;;  %v2312_v16 = vld [vmem:[%s2377_s17] sm:$0xff]   ;;  %v1339_v18 = vrot.slane %v1337_v14, 1  ;;  %2183 = vmatpush3.bf16.msra.mxu1 %v2320_v39 }
  0x5a   : > { %v1327_v8 = vrot.slane %v1325_v1, 1  ;;  %248 = vst.msk [vmem:[#allocation2] sm:$0xff] %vm247_vm2, %v2312_v16 }
  0x5b   : > { %687 = vrot.lane.b32.xlu1 %v2269_v21, %s2335_s18  ;;  %v2292_v21 = vld [vmem:[%s2377_s17 + $0x48] sm:$0xfe]  }
  0x5c   : > { %685 = vrot.lane.b32.xlu0 %v2268_v19, %s2335_s18  ;;  %v434_v19 = vrot.slane %v432_v13, 1  ;;  %v581_v25 = vrot.slane %v2292_v21, 1  ;;  %v1335_v13 = vshrl.u32 %v2310_v3, 16 }
  0x5e   : > { %v435_v22 = vor.u32 %v434_v19, %v430_v11  ;;  %v583_v37 = vsel %vm562_vm0, %v581_v25, %v582_v29  ;;  %v1330_v11 = vshll.u32 %v2309_v2, 16  ;;  %v1342_v19 = vshll.u32 %v2311_v12, 16  ;;  %v2314_v25 = vld [vmem:[%s2377_s17 + $0x68] ss:$0 sps:$4 sm:$0x11]  }
  0x5f   : > { %904 = vrot.lane.b32.xlu1 %v869_v38, %s2339_s22  ;;  %v2299_v38 = vld [vmem:[%s2377_s17 + $0x5c] ss:$0 sps:$4 sm:$0x11]   ;;  %v1340_v23 = vor.u32 %v1339_v18, %v1335_v13  ;;  %v2316_v29 = vld [vmem:[%s2377_s17 + $0x74] ss:$0 sps:$4 sm:$0x11]  }
  0x60   : > { %902 = vrot.lane.b32.xlu0 %v857_v35, %s2339_s22  ;;  %v440_v34 = vsel %vm344_vm1, %v435_v22, %v439_v28  ;;  %v585_v35 = vrot.slane %v2295_v30, 1  ;;  %v878_v45 = vshll.u32 %v2299_v38, 16  ;;  %v2313_v22 = vld [vmem:[%s2377_s17 + $0x60] sm:$0xfe]   ;;  %v1344_v24 = vrot.slane %v1342_v19, 1  ;;  %v2319_v38 = vld [vmem:[%s2377_s17 + $0x18] sm:$0xff]  }
  0x61   : > { %v2315_v28 = vld [vmem:[%s2377_s17 + $0x6c] sm:$0xfe]   ;;  %v1485_v31 = vrot.slane %v2313_v22, 1  ;;  %250 = vst.msk [vmem:[#allocation2 + $0x10] sm:$0xff] %vm247_vm2, %v2319_v38 }
  0x62   : > { %v586_v40 = vsel %vm562_vm0, %v584_v32, %v585_v35  ;;  %v1486_v32 = vrot.slane %v2314_v25, 1  ;;  %v1345_v33 = vsel %vm344_vm1, %v1340_v23, %v1344_v24  ;;  %v1489_v35 = vrot.slane %v2316_v29, 1 }
  0x63   : > { %1049 = vrot.lane.b32.xlu1 %v1032_v46, %s2336_s19  ;;  %v2301_v46 = vld [vmem:[%s2377_s17 + $0x68] ss:$0 sps:$4 sm:$0x11]  }
  0x64   : > { %1047 = vrot.lane.b32.xlu0 %v1029_v43, %s2336_s19  ;;  %v2296_v43 = vld [vmem:[%s2377_s17 + $0x54] sm:$0xff]   ;;  %v890_v51 = vshll.u32 %v2301_v46, 16  ;;  %v1487_v42 = vsel %vm562_vm0, %v1485_v31, %v1486_v32 }
  0x66   : > { %v892_v56 = vrot.slane %v890_v51, 1 }
  0x67   : > { %1139 = vrot.lane.b32.xlu1 %v2279_v50, %s2340_s23  ;;  %v880_v50 = vrot.slane %v878_v45, 1  ;;  %v2323_v45 = vld [vmem:[%s2377_s17 + $0x30] sm:$0xff]  }
  0x68   : > { %1137 = vrot.lane.b32.xlu0 %v2278_v47, %s2340_s23  ;;  %v2297_v47 = vld [vmem:[%s2377_s17 + $0x60] sm:$0xff]   ;;  %v893_v62 = vsel %vm344_vm1, %v888_v53, %v892_v56  ;;  %252 = vst.msk [vmem:[#allocation2 + $0x20] sm:$0xff] %vm247_vm2, %v2323_v45 }
  0x69   : > { %v881_v61 = vsel %vm344_vm1, %v876_v49, %v880_v50  ;;  %v2326_v49 = vld [vmem:[%s2377_s17 + $0x54] sm:$0xff]  }
  0x6a   : > { %255 = vst.msk [vmem:[#allocation2 + $0x38] sm:$0xff] %vm247_vm2, %v2326_v49 }
  0x6b   : > { %1356 = vrot.lane.b32.xlu1 %v1321_v7, %s2341_s24  ;;  %v1323_v7 = vshrl.u32 %v2308_v55, 16 }
  0x6c   : > { %1354 = vrot.lane.b32.xlu0 %v1309_v5, %s2341_s24 }
  0x6d   : > { %v1328_v21 = vor.u32 %v1327_v8, %v1323_v7 }
  0x6f   : > { %453 = vrot.lane.b32.xlu1 %v428_v20, %s2338_s21  ;;  %v2317_v20 = vld [vmem:[%s2377_s17 + $0xc] sm:$0xff]  }
  0x70   : > { %1499 = vrot.lane.b32.xlu0 %v1481_v17, %s2342_s25  ;;  %v1332_v17 = vrot.slane %v1330_v11, 1  ;;  %249 = vst.msk [vmem:[#allocation2 + $0x8] sm:$0xff] %vm247_vm2, %v2317_v20 }
  0x72   : > { %v1333_v30 = vsel %vm344_vm1, %v1328_v21, %v1332_v17 }
  0x73   : > { %455 = vrot.lane.b32.xlu1 %v440_v34, %s2338_s21  ;;  %v1488_v34 = vrot.slane %v2315_v28, 1 }
  0x74   : > { %1501 = vrot.lane.b32.xlu0 %v1484_v27, %s2342_s25 }
  0x75   : > { %v1490_v44 = vsel %vm562_vm0, %v1488_v34, %v1489_v35 }
  0x77   : > { %601 = vrot.lane.b32.xlu1 %v586_v40, %s2337_s20  ;;  %v2321_v40 = vld [vmem:[%s2377_s17 + $0x24] sm:$0xff]  }
  0x78   : > { %599 = vrot.lane.b32.xlu0 %v583_v37, %s2337_s20  ;;  %251 = vst.msk [vmem:[#allocation2 + $0x18] sm:$0xff] %vm247_vm2, %v2321_v40 }
  0x7b   : > { %691 = vrot.lane.b32.xlu1 %v2297_v47, %s2335_s18  ;;  %v2324_v47 = vld [vmem:[%s2377_s17 + $0x3c] sm:$0xff]  }
  0x7c   : > { %689 = vrot.lane.b32.xlu0 %v2296_v43, %s2335_s18  ;;  %v2322_v43 = vld [vmem:[%s2790_s1 + $0x10] ss:$0 sps:$4 sm:$0x33]   ;;  %253 = vst.msk [vmem:[#allocation2 + $0x28] sm:$0xff] %vm247_vm2, %v2324_v47 }
  0x7d   : > { %2185 = vmatprep.subr.msk.bf16.mxu0 %vm1577_vm6, %v2322_v43  ;;  %v1579_v51 = vsel %vm1577_vm6, %v2322_v43, 0  ;;  %2186 = vmatprep.subr.msk.bf16.mxu1 %vm1577_vm6, %v2322_v43 }
  0x7e   : > { %2162 = vmatpush3.bf16.msra.mxu0 %v1579_v51  ;;  %2184 = vmatpush3.bf16.msra.mxu1 %v1579_v51 }
  0x7f   : > { %908 = vrot.lane.b32.xlu1 %v893_v62, %s2339_s22 }
  0x80   : > { %906 = vrot.lane.b32.xlu0 %v881_v61, %s2339_s22 }
  0x83   : > { %1053 = vrot.lane.b32.xlu1 %v1038_v9, %s2336_s19 }
  0x84   : > { %v2583_v5 = vpop.permute.xlu1 %679  ;;  %v2585_v6 = vpop.permute.xlu0 %677  ;;  %1051 = vrot.lane.b32.xlu0 %v1035_v4, %s2336_s19 }
  0x87   : > { %1143 = vrot.lane.b32.xlu1 %v2307_v15, %s2340_s23 }
  0x88   : > { %v2599_v26 = vpop.permute.xlu0 %1039  ;;  %1141 = vrot.lane.b32.xlu0 %v2306_v10, %s2340_s23 }
  0x89   : > { %v588_v27 = vpop.permute.xlu1 %587 }
  0x8b   : > { %1360 = vrot.lane.b32.xlu1 %v1345_v33, %s2341_s24 }
  0x8c   : > { %1358 = vrot.lane.b32.xlu0 %v1333_v30, %s2341_s24 }
  0x8d   : > { %v590_v37 = vpop.permute.xlu1 %589 }
  0x8e   : > { %v442_v41 = vpop.permute.xlu0 %441 }
  0x8f   : > { %466 = vst.msk [vmem:[#allocation2] sm:$0xff] %vm465_vm3, %v442_v41  ;;  %1505 = vrot.lane.b32.xlu1 %v1490_v44, %s2342_s25 }
  0x90   : > { %612 = vst.msk [vmem:[#allocation2] sm:$0xff] %vm611_vm4, %v588_v27  ;;  %1503 = vrot.lane.b32.xlu0 %v1487_v42, %s2342_s25 }
  0x91   : > { %v1042_v46 = vpop.permute.xlu1 %1041  ;;  %702 = vst.msk [vmem:[#allocation2] sm:$0xff] %vm701_vm5, %v2585_v6 }
  0x92   : > { %v444_v50 = vpop.permute.xlu0 %443 }
  0x93   : > { %467 = vst.msk [vmem:[#allocation2 + $0x8] sm:$0xff] %vm465_vm3, %v444_v50 }
  0x94   : > { %613 = vst.msk [vmem:[#allocation2 + $0x8] sm:$0xff] %vm611_vm4, %v590_v37 }
  0x95   : > { %v897_v52 = vpop.permute.xlu1 %896  ;;  %703 = vst.msk [vmem:[#allocation2 + $0x8] sm:$0xff] %vm701_vm5, %v2583_v5 }
  0x96   : > { %920 = vst.msk [vmem:[#allocation2 + $0x8] sm:$0xff] %vm918_vm7, %v897_v52  ;;  %v895_v53 = vpop.permute.xlu0 %894 }
  0x97   : > { %919 = vst.msk [vmem:[#allocation2] sm:$0xff] %vm918_vm7, %v895_v53 }
  0x98   : > { %1065 = vst.msk [vmem:[#allocation2 + $0x8] sm:$0xff] %vm1063_vm8, %v1042_v46  ;;  %1064 = vst.msk [vmem:[#allocation2] sm:$0xff] %vm1063_vm8, %v2599_v26 }
  0x99   : > { %v1132_v54 = vpop.permute.xlu1 %1131 }
  0x9a   : > { %1155 = vst.msk [vmem:[#allocation2 + $0x8] sm:$0xff] %vm1153_vm9, %v1132_v54  ;;  %v1130_v55 = vpop.permute.xlu0 %1129 }
  0x9b   : > { %1154 = vst.msk [vmem:[#allocation2] sm:$0xff] %vm1153_vm9, %v1130_v55 }
  0x9d   : > { %v1349_v56 = vpop.permute.xlu1 %1348 }
  0x9e   : > { %v1347_v57 = vpop.permute.xlu0 %1346  ;;  %1372 = vst.msk [vmem:[#allocation2 + $0x8] sm:$0xff] %vm1370_vm10, %v1349_v56 }
  0x9f   : > { %1371 = vst.msk [vmem:[#allocation2] sm:$0xff] %vm1370_vm10, %v1347_v57 }
  0xa1   : > { %v446_v59 = vpop.permute.xlu1 %445 }
  0xa2   : > { %v1492_v58 = vpop.permute.xlu0 %1491  ;;  %468 = vst.msk [vmem:[#allocation2 + $0x10] sm:$0xff] %vm465_vm3, %v446_v59 }
  0xa3   : > { %1516 = vst.msk [vmem:[#allocation2] sm:$0xff] %vm1515_vm11, %v1492_v58 }
  0xa5   : > { %v448_v61 = vpop.permute.xlu1 %447 }
  0xa6   : > { %v1494_v60 = vpop.permute.xlu0 %1493  ;;  %469 = vst.msk [vmem:[#allocation2 + $0x18] sm:$0xff] %vm465_vm3, %v448_v61 }
  0xa7   : > { %1517 = vst.msk [vmem:[#allocation2 + $0x8] sm:$0xff] %vm1515_vm11, %v1494_v60 }
  0xa9   : > { %v594_v0 = vpop.permute.xlu1 %593 }
  0xaa   : > { %v592_v62 = vpop.permute.xlu0 %591  ;;  %v1524_v63 = vld [vmem:[#allocation2] sm:$0xff]  ;;  %615 = vst.msk [vmem:[#allocation2 + $0x18] sm:$0xff] %vm611_vm4, %v594_v0 }
  0xab   : > { %614 = vst.msk [vmem:[#allocation2 + $0x10] sm:$0xff] %vm611_vm4, %v592_v62  ;;  %2163 = vmatprep.mubr.msk.bf16.mxu0 %vm1552_vm12, %v1524_v63 }
  0xad   : > { %v684_v3 = vpop.permute.xlu1 %683 }
  0xae   : > { %v682_v1 = vpop.permute.xlu0 %681  ;;  %v1525_v2 = vld [vmem:[#allocation2 + $0x8] sm:$0xff]  ;;  %705 = vst.msk [vmem:[#allocation2 + $0x18] sm:$0xff] %vm701_vm5, %v684_v3 }
  0xaf   : > { %704 = vst.msk [vmem:[#allocation2 + $0x10] sm:$0xff] %vm701_vm5, %v682_v1  ;;  %2164 = vmatmul.mubr.msk.bf16.vlgmr.msra.gmra.mrb[0].mxu0 %vm1552_vm12, %v1525_v2 }
  0xb1   : > { %v901_v5 = vpop.permute.xlu1 %900 }
  0xb2   : > { %v899_v4 = vpop.permute.xlu0 %898  ;;  %922 = vst.msk [vmem:[#allocation2 + $0x18] sm:$0xff] %vm918_vm7, %v901_v5 }
  0xb3   : > { %921 = vst.msk [vmem:[#allocation2 + $0x10] sm:$0xff] %vm918_vm7, %v899_v4 }
  0xb5   : > { %v1046_v7 = vpop.permute.xlu1 %1045 }
  0xb6   : > { %v1044_v6 = vpop.permute.xlu0 %1043  ;;  %1067 = vst.msk [vmem:[#allocation2 + $0x18] sm:$0xff] %vm1063_vm8, %v1046_v7 }
  0xb7   : > { %1066 = vst.msk [vmem:[#allocation2 + $0x10] sm:$0xff] %vm1063_vm8, %v1044_v6 }
  0xb9   : > { %v1136_v9 = vpop.permute.xlu1 %1135 }
  0xba   : > { %v1134_v8 = vpop.permute.xlu0 %1133  ;;  %1157 = vst.msk [vmem:[#allocation2 + $0x18] sm:$0xff] %vm1153_vm9, %v1136_v9 }
  0xbb   : > { %1156 = vst.msk [vmem:[#allocation2 + $0x10] sm:$0xff] %vm1153_vm9, %v1134_v8 }
  0xbd   : > { %v1353_v11 = vpop.permute.xlu1 %1352 }
  0xbe   : > { %v1351_v10 = vpop.permute.xlu0 %1350  ;;  %1374 = vst.msk [vmem:[#allocation2 + $0x18] sm:$0xff] %vm1370_vm10, %v1353_v11 }
  0xbf   : > { %1373 = vst.msk [vmem:[#allocation2 + $0x10] sm:$0xff] %vm1370_vm10, %v1351_v10 }
  0xc1   : > { %v450_v13 = vpop.permute.xlu1 %449 }
  0xc2   : > { %v1496_v12 = vpop.permute.xlu0 %1495  ;;  %470 = vst.msk [vmem:[#allocation2 + $0x20] sm:$0xff] %vm465_vm3, %v450_v13 }
  0xc3   : > { %1518 = vst.msk [vmem:[#allocation2 + $0x10] sm:$0xff] %vm1515_vm11, %v1496_v12 }
  0xc5   : > { %v452_v15 = vpop.permute.xlu1 %451 }
  0xc6   : > { %v1498_v14 = vpop.permute.xlu0 %1497  ;;  %471 = vst.msk [vmem:[#allocation2 + $0x28] sm:$0xff] %vm465_vm3, %v452_v15 }
  0xc7   : > { %1519 = vst.msk [vmem:[#allocation2 + $0x18] sm:$0xff] %vm1515_vm11, %v1498_v14 }
  0xc9   : > { %v598_v18 = vpop.permute.xlu1 %597 }
  0xca   : > { %v596_v16 = vpop.permute.xlu0 %595  ;;  %v1526_v17 = vld [vmem:[#allocation2 + $0x10] sm:$0xff]  ;;  %617 = vst.msk [vmem:[#allocation2 + $0x28] sm:$0xff] %vm611_vm4, %v598_v18 }
  0xcb   : > { %616 = vst.msk [vmem:[#allocation2 + $0x20] sm:$0xff] %vm611_vm4, %v596_v16  ;;  %2167 = vmatprep.mubr.msk.bf16.mxu0 %vm1552_vm12, %v1526_v17 }
  0xcd   : > { %v688_v21 = vpop.permute.xlu1 %687 }
  0xce   : > { %v686_v19 = vpop.permute.xlu0 %685  ;;  %v1527_v20 = vld [vmem:[#allocation2 + $0x18] sm:$0xff]  ;;  %707 = vst.msk [vmem:[#allocation2 + $0x28] sm:$0xff] %vm701_vm5, %v688_v21 }
  0xcf   : > { %706 = vst.msk [vmem:[#allocation2 + $0x20] sm:$0xff] %vm701_vm5, %v686_v19  ;;  %2168 = vmatmul.mubr.msk.bf16.gmra.mrb[4].mxu0 %vm1552_vm12, %v1527_v20 }
  0xd1   : > { %v905_v23 = vpop.permute.xlu1 %904 }
  0xd2   : > { %v903_v22 = vpop.permute.xlu0 %902  ;;  %924 = vst.msk [vmem:[#allocation2 + $0x28] sm:$0xff] %vm918_vm7, %v905_v23 }
  0xd3   : > { %923 = vst.msk [vmem:[#allocation2 + $0x20] sm:$0xff] %vm918_vm7, %v903_v22 }
  0xd5   : > { %v1050_v25 = vpop.permute.xlu1 %1049 }
  0xd6   : > { %v1048_v24 = vpop.permute.xlu0 %1047  ;;  %1069 = vst.msk [vmem:[#allocation2 + $0x28] sm:$0xff] %vm1063_vm8, %v1050_v25 }
  0xd7   : > { %1068 = vst.msk [vmem:[#allocation2 + $0x20] sm:$0xff] %vm1063_vm8, %v1048_v24 }
  0xd9   : > { %v1140_v27 = vpop.permute.xlu1 %1139 }
  0xda   : > { %v1138_v26 = vpop.permute.xlu0 %1137  ;;  %1159 = vst.msk [vmem:[#allocation2 + $0x28] sm:$0xff] %vm1153_vm9, %v1140_v27 }
  0xdb   : > { %1158 = vst.msk [vmem:[#allocation2 + $0x20] sm:$0xff] %vm1153_vm9, %v1138_v26 }
  0xdd   : > { %v1357_v29 = vpop.permute.xlu1 %1356 }
  0xde   : > { %v1355_v28 = vpop.permute.xlu0 %1354  ;;  %1376 = vst.msk [vmem:[#allocation2 + $0x28] sm:$0xff] %vm1370_vm10, %v1357_v29 }
  0xdf   : > { %1375 = vst.msk [vmem:[#allocation2 + $0x20] sm:$0xff] %vm1370_vm10, %v1355_v28 }
  0xe1   : > { %v454_v31 = vpop.permute.xlu1 %453 }
  0xe2   : > { %v1500_v30 = vpop.permute.xlu0 %1499  ;;  %472 = vst.msk [vmem:[#allocation2 + $0x30] sm:$0xff] %vm465_vm3, %v454_v31 }
  0xe3   : > { %1520 = vst.msk [vmem:[#allocation2 + $0x20] sm:$0xff] %vm1515_vm11, %v1500_v30 }
  0xe5   : > { %v456_v33 = vpop.permute.xlu1 %455 }
  0xe6   : > { %v1502_v32 = vpop.permute.xlu0 %1501  ;;  %473 = vst.msk [vmem:[#allocation2 + $0x38] sm:$0xff] %vm465_vm3, %v456_v33 }
  0xe7   : > { %1521 = vst.msk [vmem:[#allocation2 + $0x28] sm:$0xff] %vm1515_vm11, %v1502_v32 }
  0xe9   : > { %v602_v36 = vpop.permute.xlu1 %601 }
  0xea   : > { %v600_v34 = vpop.permute.xlu0 %599  ;;  %v1528_v35 = vld [vmem:[#allocation2 + $0x20] sm:$0xff]  ;;  %619 = vst.msk [vmem:[#allocation2 + $0x38] sm:$0xff] %vm611_vm4, %v602_v36 }
  0xeb   : > { %618 = vst.msk [vmem:[#allocation2 + $0x30] sm:$0xff] %vm611_vm4, %v600_v34  ;;  %2171 = vmatprep.mubr.msk.bf16.mxu1 %vm1552_vm12, %v1528_v35 }
  0xed   : > { %v692_v39 = vpop.permute.xlu1 %691 }
  0xee   : > { %v690_v37 = vpop.permute.xlu0 %689  ;;  %v1529_v38 = vld [vmem:[#allocation2 + $0x28] sm:$0xff]  ;;  %709 = vst.msk [vmem:[#allocation2 + $0x38] sm:$0xff] %vm701_vm5, %v692_v39 }
  0xef   : > { %708 = vst.msk [vmem:[#allocation2 + $0x30] sm:$0xff] %vm701_vm5, %v690_v37  ;;  %2172 = vmatmul.mubr.msk.bf16.vlgmr.msra.gmra.mrb[0].mxu1 %vm1552_vm12, %v1529_v38 }
  0xf1   : > { %v909_v41 = vpop.permute.xlu1 %908 }
  0xf2   : > { %v907_v40 = vpop.permute.xlu0 %906  ;;  %926 = vst.msk [vmem:[#allocation2 + $0x38] sm:$0xff] %vm918_vm7, %v909_v41 }
  0xf3   : > { %925 = vst.msk [vmem:[#allocation2 + $0x30] sm:$0xff] %vm918_vm7, %v907_v40 }
  0xf5   : > { %v1054_v43 = vpop.permute.xlu1 %1053 }
  0xf6   : > { %v1052_v42 = vpop.permute.xlu0 %1051  ;;  %1071 = vst.msk [vmem:[#allocation2 + $0x38] sm:$0xff] %vm1063_vm8, %v1054_v43 }
  0xf7   : > { %1070 = vst.msk [vmem:[#allocation2 + $0x30] sm:$0xff] %vm1063_vm8, %v1052_v42 }
  0xf9   : > { %v1144_v45 = vpop.permute.xlu1 %1143 }
  0xfa   : > { %v1142_v44 = vpop.permute.xlu0 %1141  ;;  %1161 = vst.msk [vmem:[#allocation2 + $0x38] sm:$0xff] %vm1153_vm9, %v1144_v45 }
  0xfb   : > { %1160 = vst.msk [vmem:[#allocation2 + $0x30] sm:$0xff] %vm1153_vm9, %v1142_v44 }
  0xfd   : > { %v1361_v47 = vpop.permute.xlu1 %1360 }
  0xfe   : > { %v1359_v46 = vpop.permute.xlu0 %1358  ;;  %1378 = vst.msk [vmem:[#allocation2 + $0x38] sm:$0xff] %vm1370_vm10, %v1361_v47 }
  0xff   : > { %1377 = vst.msk [vmem:[#allocation2 + $0x30] sm:$0xff] %vm1370_vm10, %v1359_v46 }
 0x101   : > { %v1506_v49 = vpop.permute.xlu1 %1505 }
 0x102   : > { %v1504_v48 = vpop.permute.xlu0 %1503  ;;  %1523 = vst.msk [vmem:[#allocation2 + $0x38] sm:$0xff] %vm1515_vm11, %v1506_v49 }
 0x103   : > { %1522 = vst.msk [vmem:[#allocation2 + $0x30] sm:$0xff] %vm1515_vm11, %v1504_v48 }
 0x109   : > { %v1531_v51 = vld [vmem:[#allocation2 + $0x38] sm:$0xff] }
 0x10a   : > { %v1530_v50 = vld [vmem:[#allocation2 + $0x30] sm:$0xff] }
 0x10b   : > { %2175 = vmatprep.mubr.msk.bf16.mxu1 %vm1552_vm12, %v1530_v50 }
 0x10c   : > { %2176 = vmatmul.mubr.msk.bf16.gmra.mrb[4].mxu1 %vm1552_vm12, %v1531_v51 }
 0x182   : > { %v2165_v52 = vpop.f32.mrb[0].mxu0 }
 0x183   : > { %1681 = vst.msk [vmem:[%s2716_s8 + $0x10] sm:$0xff] %vm1678_vm13, %v2165_v52  ;;  %v1615_v53 = vpop.f32.mrb[1].mxu0  ;;  %v1734_v57 = vmul.f32 %v2165_v52, %v2165_v52  ;;  %v1698_v62 = vsel %vm1678_vm13, %v2165_v52, 0.0 }
 0x184   : > { %1679 = vst.msk [vmem:[%s2716_s8] sm:$0xff] %vm1678_vm13, %v1615_v53  ;;  %v1732_v54 = vmul.f32 %v1615_v53, %v1615_v53  ;;  %v2166_v55 = vpop.f32.mrb[2].mxu0  ;;  %v1695_v58 = vsel %vm1678_vm13, %v1615_v53, 0.0 }
 0x185   : > { %1682 = vst.msk [vmem:[%s2716_s8 + $0x18] sm:$0xff] %vm1678_vm13, %v2166_v55  ;;  %v1618_v56 = vpop.f32.mrb[3].mxu0  ;;  %v1735_v0 = vmul.f32 %v2166_v55, %v2166_v55  ;;  %v1751_v4 = vsel %vm1678_vm13, %v1734_v57, 0.0  ;;  %v1700_v5 = vsel %vm1678_vm13, %v2166_v55, 0.0 }
 0x186   : > { %1680 = vst.msk [vmem:[%s2716_s8 + $0x8] sm:$0xff] %vm1678_vm13, %v1618_v56  ;;  %v1696_v59 = vsel %vm1678_vm13, %v1618_v56, 0.0  ;;  %v1733_v60 = vmul.f32 %v1618_v56, %v1618_v56  ;;  %v1748_v63 = vsel %vm1678_vm13, %v1732_v54, 0.0 }
 0x187   : > { %v1697_v61 = vadd.f32 %v1696_v59, %v1695_v58  ;;  %v1753_v8 = vsel %vm1678_vm13, %v1735_v0, 0.0 }
 0x188   : > { %v1749_v1 = vsel %vm1678_vm13, %v1733_v60, 0.0 }
 0x189   : > { %v1699_v2 = vadd.f32 %v1698_v62, %v1697_v61  ;;  %v1750_v3 = vadd.f32 %v1749_v1, %v1748_v63 }
 0x18b   : > { %v1752_v6 = vadd.f32 %v1751_v4, %v1750_v3  ;;  %v1701_v7 = vadd.f32 %v1700_v5, %v1699_v2 }
 0x18d   : > { %v1754_v9 = vadd.f32 %v1753_v8, %v1752_v6 }
 0x1a2   : > { %v2169_v10 = vpop.f32.mrb[4].mxu0 }
 0x1a3   : > { %1685 = vst.msk [vmem:[%s2716_s8 + $0x30] sm:$0xff] %vm1678_vm13, %v2169_v10  ;;  %v1631_v11 = vpop.f32.mrb[5].mxu0  ;;  %v1738_v17 = vmul.f32 %v2169_v10, %v2169_v10  ;;  %v1706_v23 = vsel %vm1678_vm13, %v2169_v10, 0.0 }
 0x1a4   : > { %1683 = vst.msk [vmem:[%s2716_s8 + $0x20] sm:$0xff] %vm1678_vm13, %v1631_v11  ;;  %v1702_v12 = vsel %vm1678_vm13, %v1631_v11, 0.0  ;;  %v1736_v13 = vmul.f32 %v1631_v11, %v1631_v11  ;;  %v2170_v14 = vpop.f32.mrb[6].mxu0 }
 0x1a5   : > { %v1703_v15 = vadd.f32 %v1702_v12, %v1701_v7  ;;  %1686 = vst.msk [vmem:[%s2716_s8 + $0x38] sm:$0xff] %vm1678_vm13, %v2170_v14  ;;  %v1634_v16 = vpop.f32.mrb[7].mxu0  ;;  %v1739_v24 = vmul.f32 %v2170_v14, %v2170_v14  ;;  %v1759_v28 = vsel %vm1678_vm13, %v1738_v17, 0.0  ;;  %v1708_v29 = vsel %vm1678_vm13, %v2170_v14, 0.0 }
 0x1a6   : > { %v1755_v18 = vsel %vm1678_vm13, %v1736_v13, 0.0  ;;  %1684 = vst.msk [vmem:[%s2716_s8 + $0x28] sm:$0xff] %vm1678_vm13, %v1634_v16  ;;  %v1704_v19 = vsel %vm1678_vm13, %v1634_v16, 0.0  ;;  %v1737_v20 = vmul.f32 %v1634_v16, %v1634_v16 }
 0x1a7   : > { %v1756_v21 = vadd.f32 %v1755_v18, %v1754_v9  ;;  %v1705_v22 = vadd.f32 %v1704_v19, %v1703_v15  ;;  %v1761_v32 = vsel %vm1678_vm13, %v1739_v24, 0.0 }
 0x1a8   : > { %v1757_v25 = vsel %vm1678_vm13, %v1737_v20, 0.0 }
 0x1a9   : > { %v1707_v26 = vadd.f32 %v1706_v23, %v1705_v22  ;;  %v1758_v27 = vadd.f32 %v1757_v25, %v1756_v21 }
 0x1ab   : > { %v1760_v30 = vadd.f32 %v1759_v28, %v1758_v27  ;;  %v1709_v31 = vadd.f32 %v1708_v29, %v1707_v26 }
 0x1ad   : > { %v1762_v33 = vadd.f32 %v1761_v32, %v1760_v30 }
 0x1c2   : > { %v2173_v34 = vpop.f32.mrb[0].mxu1 }
 0x1c3   : > { %1689 = vst.msk [vmem:[%s2716_s8 + $0x50] sm:$0xff] %vm1678_vm13, %v2173_v34  ;;  %v1647_v35 = vpop.f32.mrb[1].mxu1  ;;  %v1742_v41 = vmul.f32 %v2173_v34, %v2173_v34  ;;  %v1714_v47 = vsel %vm1678_vm13, %v2173_v34, 0.0 }
 0x1c4   : > { %1687 = vst.msk [vmem:[%s2716_s8 + $0x40] sm:$0xff] %vm1678_vm13, %v1647_v35  ;;  %v1710_v36 = vsel %vm1678_vm13, %v1647_v35, 0.0  ;;  %v1740_v37 = vmul.f32 %v1647_v35, %v1647_v35  ;;  %v2174_v38 = vpop.f32.mrb[2].mxu1 }
 0x1c5   : > { %v1711_v39 = vadd.f32 %v1710_v36, %v1709_v31  ;;  %1690 = vst.msk [vmem:[%s2716_s8 + $0x58] sm:$0xff] %vm1678_vm13, %v2174_v38  ;;  %v1650_v40 = vpop.f32.mrb[3].mxu1  ;;  %v1743_v48 = vmul.f32 %v2174_v38, %v2174_v38  ;;  %v1767_v52 = vsel %vm1678_vm13, %v1742_v41, 0.0  ;;  %v1716_v53 = vsel %vm1678_vm13, %v2174_v38, 0.0 }
 0x1c6   : > { %v1763_v42 = vsel %vm1678_vm13, %v1740_v37, 0.0  ;;  %1688 = vst.msk [vmem:[%s2716_s8 + $0x48] sm:$0xff] %vm1678_vm13, %v1650_v40  ;;  %v1712_v43 = vsel %vm1678_vm13, %v1650_v40, 0.0  ;;  %v1741_v44 = vmul.f32 %v1650_v40, %v1650_v40 }
 0x1c7   : > { %v1764_v45 = vadd.f32 %v1763_v42, %v1762_v33  ;;  %v1713_v46 = vadd.f32 %v1712_v43, %v1711_v39  ;;  %v1769_v56 = vsel %vm1678_vm13, %v1743_v48, 0.0 }
 0x1c8   : > { %v1765_v49 = vsel %vm1678_vm13, %v1741_v44, 0.0 }
 0x1c9   : > { %v1715_v50 = vadd.f32 %v1714_v47, %v1713_v46  ;;  %v1766_v51 = vadd.f32 %v1765_v49, %v1764_v45 }
 0x1cb   : > { %v1768_v54 = vadd.f32 %v1767_v52, %v1766_v51  ;;  %v1717_v55 = vadd.f32 %v1716_v53, %v1715_v50 }
 0x1cd   : > { %v1770_v57 = vadd.f32 %v1769_v56, %v1768_v54 }
 0x1df   : > { %v2177_v58 = vpop.f32.mrb[4].mxu1 }
 0x1e0   : > { %1693 = vst.msk [vmem:[%s2716_s8 + $0x70] sm:$0xff] %vm1678_vm13, %v2177_v58  ;;  %v1663_v59 = vpop.f32.mrb[5].mxu1  ;;  %v1746_v1 = vmul.f32 %v2177_v58, %v2177_v58  ;;  %v1722_v7 = vsel %vm1678_vm13, %v2177_v58, 0.0 }
 0x1e1   : > { %1691 = vst.msk [vmem:[%s2716_s8 + $0x60] sm:$0xff] %vm1678_vm13, %v1663_v59  ;;  %v1718_v60 = vsel %vm1678_vm13, %v1663_v59, 0.0  ;;  %v1744_v61 = vmul.f32 %v1663_v59, %v1663_v59  ;;  %v2178_v62 = vpop.f32.mrb[6].mxu1 }
 0x1e2   : > { %v1719_v63 = vadd.f32 %v1718_v60, %v1717_v55  ;;  %1694 = vst.msk [vmem:[%s2716_s8 + $0x78] sm:$0xff] %vm1678_vm13, %v2178_v62  ;;  %v1666_v0 = vpop.f32.mrb[7].mxu1  ;;  %v1747_v8 = vmul.f32 %v2178_v62, %v2178_v62  ;;  %v1775_v12 = vsel %vm1678_vm13, %v1746_v1, 0.0  ;;  %v1724_v13 = vsel %vm1678_vm13, %v2178_v62, 0.0 }
 0x1e3   : > { %v1771_v2 = vsel %vm1678_vm13, %v1744_v61, 0.0  ;;  %1692 = vst.msk [vmem:[%s2716_s8 + $0x68] sm:$0xff] %vm1678_vm13, %v1666_v0  ;;  %v1720_v3 = vsel %vm1678_vm13, %v1666_v0, 0.0  ;;  %v1745_v4 = vmul.f32 %v1666_v0, %v1666_v0 }
 0x1e4   : > { %v1772_v5 = vadd.f32 %v1771_v2, %v1770_v57  ;;  %v1721_v6 = vadd.f32 %v1720_v3, %v1719_v63  ;;  %v1777_v16 = vsel %vm1678_vm13, %v1747_v8, 0.0 }
 0x1e5   : > { %v1773_v9 = vsel %vm1678_vm13, %v1745_v4, 0.0 }
 0x1e6   : > { %v1723_v10 = vadd.f32 %v1722_v7, %v1721_v6  ;;  %v1774_v11 = vadd.f32 %v1773_v9, %v1772_v5 }
 0x1e8   : > { %v1725_v14 = vadd.f32 %v1724_v13, %v1723_v10  ;;  %v1776_v15 = vadd.f32 %v1775_v12, %v1774_v11 }
 0x1ea   : > { %v1726_v17 = vrot.slane %v1725_v14, 4  ;;  %v1778_v18 = vadd.f32 %v1777_v16, %v1776_v15 }
 0x1ec   : > { %v1727_v19 = vadd.f32 %v1726_v17, %v1725_v14  ;;  %v1779_v20 = vrot.slane %v1778_v18, 4 }
 0x1ee   : > { %v1728_v21 = vrot.slane %v1727_v19, 2  ;;  %v1780_v22 = vadd.f32 %v1779_v20, %v1778_v18 }
 0x1f0   : > { %v1729_v23 = vadd.f32 %v1728_v21, %v1727_v19  ;;  %v1781_v24 = vrot.slane %v1780_v22, 2 }
 0x1f2   : > { %v1730_v25 = vrot.slane %v1729_v23, 1  ;;  %v1782_v26 = vadd.f32 %v1781_v24, %v1780_v22 }
 0x1f4   : > { %v1783_v27 = vrot.slane %v1782_v26, 1  ;;  %v1731_v28 = vadd.f32 %v1730_v25, %v1729_v23 }
 0x1f6   : > { %v1784_v29 = vadd.f32 %v1783_v27, %v1782_v26 }
 0x1f8   : > { %v1786_v30 = vsel %vm1785_vm14, %v1731_v28, %v1784_v29 }
 0x1f9   : > { %1788 = vst.msk [vmem:[%s181_s14] sm:$0x3] %vm1787_vm15, %v1786_v30 }
 0x1fa PF: > { %s14_s12 = sadd.s32 1, %s2333_s12  }
 0x1fb   : > { %p11_p4 = scmp.ge.s32.totalorder %s14_s12, 6  }
 0x1fd   :  { %13 = sbr.rel (!%p11_p4) target bundleno = 1 (0x1), region = 72 }

// kernel: conv_block_nested_forward.6
= control target key start
LH: loop header
LB: loop body
LE: loop exit
PB: predicated region body
PF: predicated region fallthrough
CT: control target
= control target key end

     0   :  { %s2359_s12 = smov 0   ;;  %s2740_s0 = inlined_call_operand.vmem [shape: bf16[4,10,18,8], index: 0, kind: input, shape index: {}]   ;;  %s2741_s1 = inlined_call_operand.vmem [shape: bf16[72,128], index: 1, kind: input, shape index: {}]   ;;  %s2742_s2 = inlined_call_operand.vmem [shape: f32[4,128,128], index: 2, kind: output, shape index: {0}]   ;;  %s2743_s3 = inlined_call_operand.vmem [shape: f32[4,2,128], index: 3, kind: output, shape index: {1}]  }
   0x1 LB: > { %s1857_s13 = sadd.s32 4294967295, %s2329_s12   ;;  %p1861_p0 = scmp.ge.s32.totalorder %s2329_s12, 1  ;;  %s2329_s12 = sphi %s2359_s12, %s14_s12  }
   0x2   : > { %p140_p1 = scmp.lt.s32.totalorder %s2329_s12, 5 }
   0x4   : > { %p141_p2 = pnand %p1861_p0, %p140_p1 }
   0x5   : > { %p168_p3 = scmp.lt.s32.totalorder (!%p141_p2), %s1857_s13, 3  ;;  %vm562_vm0 = vcmask (!%p141_p2), 1046528   ;;  %s2331_s18 = smov (!%p141_p2), 24   ;;  %vm344_vm1 = vsmask.f32 (!%p141_p2), 7424  ;;  %vm247_vm2 = vcmask (!%p141_p2), 64512  }
   0x6   : > { %144 = sbr.rel (%p141_p2) target bundleno = 505 (0x1f9), region = 28  ;;  %s2332_s19 = smov (!%p141_p2), 40   ;;  %vm465_vm3 = vcmask (!%p141_p2), 130112   ;;  %vm611_vm4 = vcmask (!%p141_p2), 195712   ;;  %vm701_vm5 = vcmask (!%p141_p2), 261312   ;;  %vm918_vm6 = vcmask (!%p141_p2), 326912  }
   0x7   : > { %s2333_s20 = smov (!%p141_p2), 16   ;;  %s2334_s21 = smov (!%p141_p2), 8   ;;  %vm1063_vm7 = vcmask (!%p141_p2), 392512   ;;  %vm1153_vm8 = vcmask (!%p141_p2), 458112   ;;  %vm1593_vm9 = vcmask (!%p141_p2), 1043456   ;;  %vm1370_vm10 = vcmask (!%p141_p2), 523712  }
   0x8   : > { %s2335_s22 = smov (!%p141_p2), 32   ;;  %s2336_s23 = smov (!%p141_p2), 48   ;;  %vm1515_vm11 = vcmask (!%p141_p2), 589312   ;;  %vm1568_vm12 = vcmask (!%p141_p2), 588800   ;;  %vm1768_vm13 = vcmask (!%p141_p2), 1040384  }
   0x9   : > { %s2337_s24 = smov (!%p141_p2), 56   ;;  %s2338_s25 = smov (!%p141_p2), 64  }
   0xd   : > { %s2745_s13 = smov (!%p168_p3, %s1857_s13), 3 }
   0xe   : > { %s2181_s14 = smul.u32 120, %s2745_s13  ;;  %s2129_s9 = sshll.u32 %s2745_s13, 7 }
   0xf   : > { %s1865_s15 = sshll.u32 %s2745_s13, 1 }
  0x10   : > { %s2373_s17 = scalar_lea.vmem %s2740_s0, %s2181_s14  ;;  %s2715_s14 = scalar_lea.vmem %s2742_s2, %s2129_s9 }
  0x11   : > { %v2198_v0 = vld [vmem:[%s2373_s17 + $0x18] sm:$0xff]   ;;  %v2199_v1 = vld [vmem:[%s2373_s17 + $0xc] sm:$0xff]   ;;  %v2201_v3 = vld [vmem:[%s2373_s17 + $0x14] ss:$0 sps:$4 sm:$0x11]  }
  0x12   : > { %679 = vrot.lane.b32.xlu1 %v2198_v0, %s2331_s18  ;;  %677 = vrot.lane.b32.xlu0 %v2199_v1, %s2331_s18  ;;  %v2200_v2 = vld [vmem:[%s2373_s17 + $0xc] sm:$0xfe]   ;;  %v2206_v4 = vld [vmem:[%s2373_s17] sm:$0xff]   ;;  %v1016_v6 = vrot.slane %v2201_v3, 1 }
  0x13   : > { %v1015_v5 = vrot.slane %v2200_v2, 1  ;;  %v2202_v7 = vld [vmem:[%s2373_s17] sm:$0xfe]   ;;  %v2203_v8 = vld [vmem:[%s2373_s17 + $0x8] ss:$0 sps:$4 sm:$0x11]  }
  0x14   : > { %v346_v9 = vshrl.u32 %v2206_v4, 16  ;;  %v563_v11 = vrot.slane %v2202_v7, 1  ;;  %v2204_v12 = vld [vmem:[%s2373_s17 + $0xc] sm:$0xfe]   ;;  %v348_v13 = vshll.u32 %v2206_v4, 16  ;;  %v564_v14 = vrot.slane %v2203_v8, 1 }
  0x15   : > { %v1017_v10 = vsel %vm562_vm0, %v1015_v5, %v1016_v6  ;;  %v2205_v15 = vld [vmem:[%s2373_s17 + $0x14] ss:$0 sps:$4 sm:$0x11]   ;;  %v566_v16 = vrot.slane %v2204_v12, 1  ;;  %v2208_v21 = vld [vmem:[%s2373_s17 + $0x18] sm:$0xfe]  }
  0x16   : > { %1039 = vrot.lane.b32.xlu0 %v1017_v10, %s2332_s19  ;;  %v350_v17 = vrot.slane %v348_v13, 1  ;;  %v565_v18 = vsel %vm562_vm0, %v563_v11, %v564_v14  ;;  %v567_v19 = vrot.slane %v2205_v15, 1  ;;  %v2207_v20 = vld [vmem:[%s2373_s17 + $0x8] ss:$0 sps:$4 sm:$0x11]   ;;  %v1018_v26 = vrot.slane %v2208_v21, 1 }
  0x17   : > { %587 = vrot.lane.b32.xlu1 %v565_v18, %s2333_s20  ;;  %v353_v24 = vshll.u32 %v2207_v20, 16  ;;  %v2209_v25 = vld [vmem:[%s2373_s17 + $0x20] ss:$0 sps:$4 sm:$0x11]   ;;  %v2210_v27 = vld [vmem:[%s2373_s17 + $0xc] sm:$0xff]   ;;  %v2212_v31 = vld [vmem:[%s2373_s17 + $0x18] sm:$0xff]  }
  0x18   : > { %v568_v22 = vsel %vm562_vm0, %v566_v16, %v567_v19  ;;  %v351_v23 = vor.u32 %v350_v17, %v346_v9  ;;  %v1019_v29 = vrot.slane %v2209_v25, 1  ;;  %v2211_v30 = vld [vmem:[%s2373_s17 + $0x14] ss:$0 sps:$4 sm:$0x11]   ;;  %v358_v32 = vshrl.u32 %v2210_v27, 16  ;;  %v2214_v41 = vld [vmem:[%s2373_s17 + $0xc] sm:$0xff]  }
  0x19   : > { %v355_v28 = vrot.slane %v353_v24, 1  ;;  %v360_v33 = vshll.u32 %v2210_v27, 16  ;;  %v365_v36 = vshll.u32 %v2211_v30, 16  ;;  %v2213_v37 = vld [vmem:[%s2373_s17 + $0x20] ss:$0 sps:$4 sm:$0x11]  }
  0x1a   : > { %v1020_v35 = vsel %vm562_vm0, %v1018_v26, %v1019_v29  ;;  %v811_v39 = vshrl.u32 %v2212_v31, 16  ;;  %v813_v40 = vshll.u32 %v2212_v31, 16  ;;  %v818_v43 = vshll.u32 %v2213_v37, 16  ;;  %v2215_v46 = vld [vmem:[%s2373_s17 + $0x14] ss:$0 sps:$4 sm:$0x11]  }
  0x1b   : > { %589 = vrot.lane.b32.xlu1 %v568_v22, %s2333_s20  ;;  %v356_v34 = vsel %vm344_vm1, %v351_v23, %v355_v28  ;;  %v362_v38 = vrot.slane %v360_v33, 1  ;;  %v367_v42 = vrot.slane %v365_v36, 1  ;;  %v799_v47 = vshrl.u32 %v2214_v41, 16  ;;  %v2217_v54 = vld [vmem:[%s2373_s17 + $0x24] sm:$0xff]   ;;  %v2218_v58 = vld [vmem:[%s2373_s17 + $0x18] sm:$0xff]  }
  0x1c   : > { %441 = vrot.lane.b32.xlu0 %v356_v34, %s2334_s21  ;;  %v815_v45 = vrot.slane %v813_v40, 1  ;;  %v801_v48 = vshll.u32 %v2214_v41, 16  ;;  %v820_v49 = vrot.slane %v818_v43, 1  ;;  %v806_v53 = vshll.u32 %v2215_v46, 16  ;;  %v2216_v59 = vld [vmem:[%s2373_s17 + $0x18] sm:$0xff]   ;;  %v2220_v61 = vld [vmem:[%s2373_s17 + $0x24] sm:$0xff]  }
  0x1d   : > { %v363_v44 = vor.u32 %v362_v38, %v358_v32  ;;  %v2219_v60 = vld [vmem:[%s2373_s17 + $0x20] ss:$0 sps:$4 sm:$0x11]   ;;  %v1251_v63 = vshrl.u32 %v2218_v58, 16  ;;  %v1253_v0 = vshll.u32 %v2218_v58, 16  ;;  %v1263_v3 = vshrl.u32 %v2220_v61, 16 }
  0x1e   : > { %v816_v51 = vor.u32 %v815_v45, %v811_v39  ;;  %v803_v52 = vrot.slane %v801_v48, 1  ;;  %v808_v57 = vrot.slane %v806_v53, 1  ;;  %v1258_v1 = vshll.u32 %v2219_v60, 16  ;;  %v2221_v2 = vld [vmem:[%s2373_s17 + $0x2c] ss:$0 sps:$4 sm:$0x11]  }
  0x1f   : > { %1041 = vrot.lane.b32.xlu1 %v1020_v35, %s2332_s19  ;;  %v368_v50 = vsel %vm344_vm1, %v363_v44, %v367_v42  ;;  %v1265_v4 = vshll.u32 %v2220_v61, 16  ;;  %v1255_v5 = vrot.slane %v1253_v0, 1  ;;  %v2224_v6 = vld [vmem:[%s2373_s17 + $0x18] sm:$0xff]   ;;  %v1270_v9 = vshll.u32 %v2221_v2, 16  ;;  %v2228_v11 = vld [vmem:[%s2373_s17 + $0x24] sm:$0xff]   ;;  %v2235_v58 = vld [vmem:[%s2373_s17 + $0x30] sm:$0xff]  }
  0x20   : > { %443 = vrot.lane.b32.xlu0 %v368_v50, %s2334_s21  ;;  %v821_v55 = vsel %vm344_vm1, %v816_v51, %v820_v49  ;;  %v804_v56 = vor.u32 %v803_v52, %v799_v47  ;;  %v1260_v7 = vrot.slane %v1258_v1, 1  ;;  %v2222_v10 = vld [vmem:[%s2373_s17 + $0x18] sm:$0xfe]   ;;  %v2223_v13 = vld [vmem:[%s2373_s17 + $0x20] ss:$0 sps:$4 sm:$0x11]  }
  0x21   : > { %v1267_v8 = vrot.slane %v1265_v4, 1  ;;  %v1256_v12 = vor.u32 %v1255_v5, %v1251_v63  ;;  %v370_v14 = vshrl.u32 %v2224_v6, 16  ;;  %v1272_v16 = vrot.slane %v1270_v9, 1  ;;  %v2225_v20 = vld [vmem:[%s2373_s17 + $0x20] ss:$0 sps:$4 sm:$0x11]  }
  0x22   : > { %v809_v62 = vsel %vm344_vm1, %v804_v56, %v808_v57  ;;  %v1467_v17 = vrot.slane %v2222_v10, 1  ;;  %v1468_v19 = vrot.slane %v2223_v13, 1  ;;  %v372_v21 = vshll.u32 %v2224_v6, 16  ;;  %v2226_v26 = vld [vmem:[%s2373_s17 + $0x24] sm:$0xfe]   ;;  %v2238_v50 = vld [vmem:[%s2373_s17 + $0x30] sm:$0xff]  }
  0x23   : > { %896 = vrot.lane.b32.xlu1 %v821_v55, %s2335_s22  ;;  %v1268_v15 = vor.u32 %v1267_v8, %v1263_v3  ;;  %v1261_v18 = vsel %vm344_vm1, %v1256_v12, %v1260_v7  ;;  %v382_v22 = vshrl.u32 %v2228_v11, 16  ;;  %v377_v25 = vshll.u32 %v2225_v20, 16  ;;  %v2227_v27 = vld [vmem:[%s2373_s17 + $0x2c] ss:$0 sps:$4 sm:$0x11]   ;;  %v2236_v47 = vld [vmem:[%s2373_s17 + $0x24] sm:$0xff]  }
  0x24   : > { %894 = vrot.lane.b32.xlu0 %v809_v62, %s2335_s22  ;;  %v374_v24 = vrot.slane %v372_v21, 1  ;;  %v384_v28 = vshll.u32 %v2228_v11, 16  ;;  %v1469_v29 = vsel %vm562_vm0, %v1467_v17, %v1468_v19  ;;  %v1470_v32 = vrot.slane %v2226_v26, 1  ;;  %v2229_v34 = vld [vmem:[%s2373_s17 + $0x2c] ss:$0 sps:$4 sm:$0x11]  }
  0x25   : > { %v1273_v23 = vsel %vm344_vm1, %v1268_v15, %v1272_v16  ;;  %v379_v31 = vrot.slane %v377_v25, 1  ;;  %v1471_v33 = vrot.slane %v2227_v27, 1  ;;  %v2230_v37 = vld [vmem:[%s2373_s17 + $0x18] sm:$0xfe]   ;;  %v389_v39 = vshll.u32 %v2229_v34, 16  ;;  %v2246_v16 = vld [vmem:[%s2373_s17 + $0x30] sm:$0xff]  }
  0x26   : > { %v375_v30 = vor.u32 %v374_v24, %v370_v14  ;;  %v386_v35 = vrot.slane %v384_v28, 1  ;;  %v2231_v40 = vld [vmem:[%s2373_s17 + $0x20] ss:$0 sps:$4 sm:$0x11]   ;;  %v569_v42 = vrot.slane %v2230_v37, 1  ;;  %v823_v53 = vshrl.u32 %v2236_v47, 16 }
  0x27   : > { %1131 = vrot.lane.b32.xlu1 %v2217_v54, %s2336_s23  ;;  %v1472_v41 = vsel %vm562_vm0, %v1470_v32, %v1471_v33  ;;  %v391_v43 = vrot.slane %v389_v39, 1  ;;  %v570_v44 = vrot.slane %v2231_v40, 1  ;;  %v2232_v45 = vld [vmem:[%s2373_s17 + $0x24] sm:$0xfe]   ;;  %v825_v56 = vshll.u32 %v2236_v47, 16  ;;  %v2248_v21 = vld [vmem:[%s2373_s17 + $0x3c] sm:$0xff]  }
  0x28   : > { %1129 = vrot.lane.b32.xlu0 %v2216_v59, %s2336_s23  ;;  %v380_v36 = vsel %vm344_vm1, %v375_v30, %v379_v31  ;;  %v387_v38 = vor.u32 %v386_v35, %v382_v22  ;;  %v2233_v46 = vld [vmem:[%s2373_s17 + $0x2c] ss:$0 sps:$4 sm:$0x11]   ;;  %v572_v49 = vrot.slane %v2232_v45, 1  ;;  %v2234_v54 = vld [vmem:[%s2373_s17 + $0x24] sm:$0xff]   ;;  %v835_v62 = vshrl.u32 %v2238_v50, 16 }
  0x29   : > { %v571_v51 = vsel %vm562_vm0, %v569_v42, %v570_v44  ;;  %v573_v52 = vrot.slane %v2233_v46, 1  ;;  %v2237_v55 = vld [vmem:[%s2373_s17 + $0x2c] ss:$0 sps:$4 sm:$0x11]   ;;  %v827_v59 = vrot.slane %v825_v56, 1  ;;  %v837_v63 = vshll.u32 %v2238_v50, 16 }
  0x2a   : > { %v392_v48 = vsel %vm344_vm1, %v387_v38, %v391_v43  ;;  %v830_v60 = vshll.u32 %v2237_v55, 16  ;;  %v2239_v61 = vld [vmem:[%s2373_s17 + $0x38] ss:$0 sps:$4 sm:$0x11]   ;;  %v2240_v3 = vld [vmem:[%s2373_s17 + $0x24] sm:$0xfe]  }
  0x2b   : > { %1348 = vrot.lane.b32.xlu1 %v1273_v23, %s2337_s24  ;;  %v574_v57 = vsel %vm562_vm0, %v572_v49, %v573_v52  ;;  %v828_v0 = vor.u32 %v827_v59, %v823_v53  ;;  %v842_v2 = vshll.u32 %v2239_v61, 16  ;;  %v839_v4 = vrot.slane %v837_v63, 1  ;;  %v2241_v5 = vld [vmem:[%s2373_s17 + $0x2c] ss:$0 sps:$4 sm:$0x11]   ;;  %v2244_v23 = vld [vmem:[%s2373_s17 + $0x30] sm:$0xff]  }
  0x2c   : > { %1346 = vrot.lane.b32.xlu0 %v1261_v18, %s2337_s24  ;;  %v832_v1 = vrot.slane %v830_v60, 1  ;;  %v1021_v7 = vrot.slane %v2240_v3, 1  ;;  %v1022_v10 = vrot.slane %v2241_v5, 1  ;;  %v2242_v11 = vld [vmem:[%s2373_s17 + $0x30] sm:$0xfe]   ;;  %v1275_v19 = vshrl.u32 %v2246_v16, 16 }
  0x2d   : > { %v844_v6 = vrot.slane %v842_v2, 1  ;;  %v840_v9 = vor.u32 %v839_v4, %v835_v62  ;;  %v2243_v12 = vld [vmem:[%s2373_s17 + $0x38] ss:$0 sps:$4 sm:$0x11]   ;;  %v1024_v14 = vrot.slane %v2242_v11, 1  ;;  %v1277_v20 = vshll.u32 %v2246_v16, 16 }
  0x2e   : > { %v833_v8 = vsel %vm344_vm1, %v828_v0, %v832_v1  ;;  %v1025_v15 = vrot.slane %v2243_v12, 1  ;;  %v1023_v17 = vsel %vm562_vm0, %v1021_v7, %v1022_v10  ;;  %v2247_v18 = vld [vmem:[%s2373_s17 + $0x38] ss:$0 sps:$4 sm:$0x11]   ;;  %v2245_v24 = vld [vmem:[%s2373_s17 + $0x3c] sm:$0xff]   ;;  %v1287_v28 = vshrl.u32 %v2248_v21, 16 }
  0x2f   : > { %445 = vrot.lane.b32.xlu1 %v380_v36, %s2334_s21  ;;  %v845_v13 = vsel %vm344_vm1, %v840_v9, %v844_v6  ;;  %v1279_v25 = vrot.slane %v1277_v20, 1  ;;  %v1282_v26 = vshll.u32 %v2247_v18, 16  ;;  %v2249_v27 = vld [vmem:[%s2373_s17 + $0x44] ss:$0 sps:$4 sm:$0x11]   ;;  %v2252_v30 = vld [vmem:[%s2373_s17 + $0x30] sm:$0xff]  }
  0x30   : > { %1491 = vrot.lane.b32.xlu0 %v1469_v29, %s2338_s25  ;;  %v1026_v22 = vsel %vm562_vm0, %v1024_v14, %v1025_v15  ;;  %v1289_v29 = vshll.u32 %v2248_v21, 16  ;;  %v1294_v33 = vshll.u32 %v2249_v27, 16  ;;  %v2250_v34 = vld [vmem:[%s2373_s17 + $0x30] sm:$0xfe]   ;;  %v394_v42 = vshrl.u32 %v2252_v30, 16  ;;  %v2256_v50 = vld [vmem:[%s2373_s17 + $0x3c] sm:$0xff]  }
  0x31   : > { %v1280_v31 = vor.u32 %v1279_v25, %v1275_v19  ;;  %v1284_v32 = vrot.slane %v1282_v26, 1  ;;  %v2251_v36 = vld [vmem:[%s2373_s17 + $0x38] ss:$0 sps:$4 sm:$0x11]   ;;  %v1473_v38 = vrot.slane %v2250_v34, 1  ;;  %v396_v43 = vshll.u32 %v2252_v30, 16 }
  0x32   : > { %v1291_v35 = vrot.slane %v1289_v29, 1  ;;  %v1296_v37 = vrot.slane %v1294_v33, 1  ;;  %v1474_v40 = vrot.slane %v2251_v36, 1  ;;  %v2255_v49 = vld [vmem:[%s2373_s17 + $0x44] ss:$0 sps:$4 sm:$0x11]  }
  0x33   : > { %447 = vrot.lane.b32.xlu1 %v392_v48, %s2334_s21  ;;  %v1285_v44 = vsel %vm344_vm1, %v1280_v31, %v1284_v32  ;;  %v398_v46 = vrot.slane %v396_v43, 1  ;;  %v2254_v48 = vld [vmem:[%s2373_s17 + $0x3c] sm:$0xfe]   ;;  %v1477_v55 = vrot.slane %v2255_v49, 1  ;;  %v2258_v60 = vld [vmem:[%s2373_s17 + $0x30] sm:$0xfe]  }
  0x34   : > { %1493 = vrot.lane.b32.xlu0 %v1472_v41, %s2338_s25  ;;  %v1292_v39 = vor.u32 %v1291_v35, %v1287_v28  ;;  %v2253_v41 = vld [vmem:[%s2373_s17 + $0x38] ss:$0 sps:$4 sm:$0x11]   ;;  %v1476_v53 = vrot.slane %v2254_v48, 1  ;;  %v575_v0 = vrot.slane %v2258_v60, 1  ;;  %v2264_v7 = vld [vmem:[%s2373_s17 + $0x3c] sm:$0xff]  }
  0x35   : > { %v401_v47 = vshll.u32 %v2253_v41, 16  ;;  %v2257_v56 = vld [vmem:[%s2373_s17 + $0x44] ss:$0 sps:$4 sm:$0x11]   ;;  %v2260_v5 = vld [vmem:[%s2373_s17 + $0x3c] sm:$0xfe]  }
  0x36   : > { %v1297_v45 = vsel %vm344_vm1, %v1292_v39, %v1296_v37  ;;  %v413_v62 = vshll.u32 %v2257_v56, 16  ;;  %v2259_v63 = vld [vmem:[%s2373_s17 + $0x38] ss:$0 sps:$4 sm:$0x11]   ;;  %v1478_v1 = vsel %vm562_vm0, %v1476_v53, %v1477_v55  ;;  %v578_v9 = vrot.slane %v2260_v5, 1  ;;  %v2266_v10 = vld [vmem:[%s2373_s17 + $0x48] sm:$0xff]  }
  0x37   : > { %593 = vrot.lane.b32.xlu1 %v574_v57, %s2333_s20  ;;  %v403_v52 = vrot.slane %v401_v47, 1  ;;  %v406_v57 = vshrl.u32 %v2256_v50, 16  ;;  %v576_v4 = vrot.slane %v2259_v63, 1  ;;  %v2261_v6 = vld [vmem:[%s2373_s17 + $0x44] ss:$0 sps:$4 sm:$0x11]  }
  0x38   : > { %591 = vrot.lane.b32.xlu0 %v571_v51, %s2333_s20  ;;  %v399_v51 = vor.u32 %v398_v46, %v394_v42  ;;  %v415_v3 = vrot.slane %v413_v62, 1  ;;  %v579_v11 = vrot.slane %v2261_v6, 1  ;;  %v847_v12 = vshrl.u32 %v2264_v7, 16  ;;  %v2262_v19 = vld [vmem:[%s2373_s17 + $0x3c] sm:$0xff]   ;;  %v2263_v21 = vld [vmem:[%s2373_s17 + $0x48] sm:$0xff]   ;;  %v2276_v48 = vld [vmem:[%s2373_s17 + $0x54] sm:$0xff]  }
  0x39   : > { %v849_v14 = vshll.u32 %v2264_v7, 16  ;;  %v859_v15 = vshrl.u32 %v2266_v10, 16  ;;  %v861_v18 = vshll.u32 %v2266_v10, 16  ;;  %v2268_v29 = vld [vmem:[%s2373_s17 + $0x3c] sm:$0xfe]   ;;  %v2274_v31 = vld [vmem:[%s2373_s17 + $0x48] sm:$0xff]  }
  0x3a   : > { %v404_v59 = vsel %vm344_vm1, %v399_v51, %v403_v52  ;;  %v580_v16 = vsel %vm562_vm0, %v578_v9, %v579_v11  ;;  %v2269_v30 = vld [vmem:[%s2373_s17 + $0x44] ss:$0 sps:$4 sm:$0x11]   ;;  %v1027_v33 = vrot.slane %v2268_v29, 1  ;;  %v2270_v34 = vld [vmem:[%s2373_s17 + $0x48] sm:$0xfe]  }
  0x3b   : > { %683 = vrot.lane.b32.xlu1 %v2235_v58, %s2331_s18  ;;  %v408_v58 = vshll.u32 %v2256_v50, 16  ;;  %v851_v20 = vrot.slane %v849_v14, 1  ;;  %v1028_v36 = vrot.slane %v2269_v30, 1  ;;  %v2271_v37 = vld [vmem:[%s2373_s17 + $0x50] ss:$0 sps:$4 sm:$0x11]  }
  0x3c   : > { %681 = vrot.lane.b32.xlu0 %v2234_v54, %s2331_s18  ;;  %v1475_v54 = vsel %vm562_vm0, %v1473_v38, %v1474_v40  ;;  %v1030_v39 = vrot.slane %v2270_v34, 1  ;;  %v1299_v40 = vshrl.u32 %v2274_v31, 16  ;;  %v1031_v41 = vrot.slane %v2271_v37, 1  ;;  %v2272_v47 = vld [vmem:[%s2373_s17 + $0x48] sm:$0xff]   ;;  %v2273_v50 = vld [vmem:[%s2373_s17 + $0x54] sm:$0xff]  }
  0x3d   : > { %v410_v61 = vrot.slane %v408_v58, 1  ;;  %v852_v25 = vor.u32 %v851_v20, %v847_v12  ;;  %v1301_v42 = vshll.u32 %v2274_v31, 16  ;;  %v1029_v43 = vsel %vm562_vm0, %v1027_v33, %v1028_v36  ;;  %v2277_v49 = vld [vmem:[%s2373_s17 + $0x5c] ss:$0 sps:$4 sm:$0x11]   ;;  %v2280_v55 = vld [vmem:[%s2373_s17 + $0x48] sm:$0xff]  }
  0x3e   : > { %v1032_v46 = vsel %vm562_vm0, %v1030_v39, %v1031_v41  ;;  %v1311_v52 = vshrl.u32 %v2276_v48, 16  ;;  %v1313_v53 = vshll.u32 %v2276_v48, 16  ;;  %v2278_v58 = vld [vmem:[%s2373_s17 + $0x48] sm:$0xfe]   ;;  %v2282_v6 = vld [vmem:[%s2373_s17 + $0x54] sm:$0xfe]  }
  0x3f   : > { %900 = vrot.lane.b32.xlu1 %v845_v13, %s2335_s22  ;;  %v411_v2 = vor.u32 %v410_v61, %v406_v57  ;;  %v577_v13 = vsel %vm562_vm0, %v575_v0, %v576_v4  ;;  %v1479_v62 = vrot.slane %v2278_v58, 1  ;;  %v418_v0 = vshrl.u32 %v2280_v55, 16  ;;  %v2283_v10 = vld [vmem:[%s2373_s17 + $0x5c] ss:$0 sps:$4 sm:$0x11]   ;;  %v2292_v31 = vld [vmem:[%s2373_s17 + $0x54] sm:$0xff]  }
  0x40   : > { %898 = vrot.lane.b32.xlu0 %v833_v8, %s2335_s22  ;;  %v1315_v60 = vrot.slane %v1313_v53, 1  ;;  %v420_v4 = vshll.u32 %v2280_v55, 16  ;;  %v1482_v12 = vrot.slane %v2282_v6, 1  ;;  %v2289_v30 = vld [vmem:[%s2373_s17 + $0x5c] ss:$0 sps:$4 sm:$0x11]  }
  0x41   : > { %v416_v8 = vsel %vm344_vm1, %v411_v2, %v415_v3  ;;  %v2281_v3 = vld [vmem:[%s2373_s17 + $0x50] ss:$0 sps:$4 sm:$0x11]   ;;  %v2294_v33 = vld [vmem:[%s2373_s17 + $0x60] sm:$0xff]   ;;  %v871_v36 = vshrl.u32 %v2292_v31, 16  ;;  %v873_v39 = vshll.u32 %v2292_v31, 16 }
  0x42   : > { %v1316_v2 = vor.u32 %v1315_v60, %v1311_v52  ;;  %v425_v9 = vshll.u32 %v2281_v3, 16  ;;  %v883_v41 = vshrl.u32 %v2294_v33, 16  ;;  %v2296_v52 = vld [vmem:[%s2373_s17 + $0x54] sm:$0xfe]   ;;  %v2302_v55 = vld [vmem:[%s2373_s17 + $0x60] sm:$0xff]   ;;  %v2304_v3 = vld [vmem:[%s2373_s17 + $0x6c] sm:$0xff]  }
  0x43   : > { %1045 = vrot.lane.b32.xlu1 %v1026_v22, %s2332_s19  ;;  %v2299_v60 = vld [vmem:[%s2373_s17 + $0x68] ss:$0 sps:$4 sm:$0x11]  }
  0x44   : > { %1043 = vrot.lane.b32.xlu0 %v1023_v17, %s2332_s19  ;;  %v2265_v17 = vld [vmem:[%s2373_s17 + $0x44] ss:$0 sps:$4 sm:$0x11]  }
  0x45   : > { %v854_v22 = vshll.u32 %v2265_v17, 16 }
  0x47   : > { %1135 = vrot.lane.b32.xlu1 %v2245_v24, %s2336_s23  ;;  %v863_v24 = vrot.slane %v861_v18, 1  ;;  %v856_v26 = vrot.slane %v854_v22, 1  ;;  %v2285_v18 = vld [vmem:[%s2373_s17 + $0x5c] ss:$0 sps:$4 sm:$0x11]  }
  0x48   : > { %1133 = vrot.lane.b32.xlu0 %v2244_v23, %s2336_s23  ;;  %v2267_v23 = vld [vmem:[%s2373_s17 + $0x50] ss:$0 sps:$4 sm:$0x11]  }
  0x49   : > { %v864_v27 = vor.u32 %v863_v24, %v859_v15  ;;  %v866_v28 = vshll.u32 %v2267_v23, 16  ;;  %v857_v35 = vsel %vm344_vm1, %v852_v25, %v856_v26  ;;  %v427_v15 = vrot.slane %v425_v9, 1  ;;  %v2287_v24 = vld [vmem:[%s2373_s17 + $0x50] ss:$0 sps:$4 sm:$0x11]  }
  0x4a   : > { %v437_v23 = vshll.u32 %v2285_v18, 16  ;;  %v2288_v26 = vld [vmem:[%s2373_s17 + $0x54] sm:$0xfe]   ;;  %v582_v29 = vrot.slane %v2287_v24, 1 }
  0x4b   : > { %1352 = vrot.lane.b32.xlu1 %v1297_v45, %s2337_s24  ;;  %v868_v32 = vrot.slane %v866_v28, 1  ;;  %v1303_v45 = vrot.slane %v1301_v42, 1  ;;  %v885_v42 = vshll.u32 %v2294_v33, 16 }
  0x4c   : > { %1350 = vrot.lane.b32.xlu0 %v1285_v44, %s2337_s24  ;;  %v2275_v44 = vld [vmem:[%s2373_s17 + $0x50] ss:$0 sps:$4 sm:$0x11]   ;;  %v439_v28 = vrot.slane %v437_v23, 1 }
  0x4d   : > { %v869_v38 = vsel %vm344_vm1, %v864_v27, %v868_v32  ;;  %v1306_v51 = vshll.u32 %v2275_v44, 16  ;;  %v1304_v56 = vor.u32 %v1303_v45, %v1299_v40  ;;  %v584_v32 = vrot.slane %v2288_v26, 1 }
  0x4e   : > { %v875_v44 = vrot.slane %v873_v39, 1  ;;  %v887_v48 = vrot.slane %v885_v42, 1  ;;  %v2315_v39 = vld [vmem:[%s2373_s17 + $0x18] sm:$0xff]   ;;  %v2314_v42 = vld [vmem:[%s2741_s1 + $0x10] sm:$0xff]  }
  0x4f   : > { %449 = vrot.lane.b32.xlu1 %v404_v59, %s2334_s21  ;;  %v1308_v57 = vrot.slane %v1306_v51, 1  ;;  %v2279_v59 = vld [vmem:[%s2373_s17 + $0x50] ss:$0 sps:$4 sm:$0x11]   ;;  %250 = vst.msk [vmem:[#allocation2 + $0x10] sm:$0xff] %vm247_vm2, %v2315_v39 }
  0x50   : > { %1495 = vrot.lane.b32.xlu0 %v1475_v54, %s2338_s25  ;;  %v1318_v54 = vshll.u32 %v2277_v49, 16  ;;  %v1480_v63 = vrot.slane %v2279_v59, 1  ;;  %v876_v49 = vor.u32 %v875_v44, %v871_v36  ;;  %v888_v53 = vor.u32 %v887_v48, %v883_v41  ;;  %v2298_v59 = vld [vmem:[%s2373_s17 + $0x60] sm:$0xfe]   ;;  %v2321_v48 = vld [vmem:[%s2373_s17 + $0x48] sm:$0xff]  }
  0x51   : > { %v1309_v5 = vsel %vm344_vm1, %v1304_v56, %v1308_v57  ;;  %v1033_v57 = vrot.slane %v2296_v52, 1  ;;  %v2312_v36 = vld [vmem:[%s2741_s1] sm:$0xff]   ;;  %254 = vst.msk [vmem:[#allocation2 + $0x30] sm:$0xff] %vm247_vm2, %v2321_v48 }
  0x52   : > { %v1320_v61 = vrot.slane %v1318_v54, 1  ;;  %v1481_v17 = vsel %vm562_vm0, %v1479_v62, %v1480_v63  ;;  %v2297_v54 = vld [vmem:[%s2373_s17 + $0x5c] ss:$0 sps:$4 sm:$0x11]   ;;  %v1036_v63 = vrot.slane %v2298_v59, 1  ;;  %2143 = vmatprep.subr.bf16.mxu0 %v2312_v36  ;;  %2169 = vmatprep.subr.bf16.mxu1 %v2312_v36 }
  0x53   : > { %451 = vrot.lane.b32.xlu1 %v416_v8, %s2334_s21  ;;  %v422_v8 = vrot.slane %v420_v4, 1  ;;  %v1034_v58 = vrot.slane %v2297_v54, 1  ;;  %2144 = vmatpush3.bf16.msra.mxu0 %v2312_v36  ;;  %v2318_v54 = vld [vmem:[%s2741_s1 + $0x20] ss:$0 sps:$4 sm:$0xff]  }
  0x54   : > { %1497 = vrot.lane.b32.xlu0 %v1478_v1, %s2338_s25  ;;  %v2284_v1 = vld [vmem:[%s2373_s17 + $0x54] sm:$0xff]   ;;  %v1321_v7 = vsel %vm344_vm1, %v1316_v2, %v1320_v61  ;;  %v2303_v2 = vld [vmem:[%s2373_s17 + $0x68] ss:$0 sps:$4 sm:$0x11]   ;;  %2174 = vmatpush3.bf16.msra.mxu1 %v2312_v36 }
  0x55   : > { %v430_v11 = vshrl.u32 %v2284_v1, 16  ;;  %v423_v14 = vor.u32 %v422_v8, %v418_v0  ;;  %v1037_v0 = vrot.slane %v2299_v60, 1  ;;  %v1035_v4 = vsel %vm562_vm0, %v1033_v57, %v1034_v58 }
  0x56   : > { %v1595_v57 = vsel %vm1593_vm9, %v2318_v54, 0 }
  0x57   : > { %597 = vrot.lane.b32.xlu1 %v580_v16, %s2333_s20  ;;  %v1483_v16 = vrot.slane %v2283_v10, 1  ;;  %v428_v20 = vsel %vm344_vm1, %v423_v14, %v427_v15  ;;  %v1038_v9 = vsel %vm562_vm0, %v1036_v63, %v1037_v0  ;;  %v2300_v10 = vld [vmem:[%s2373_s17 + $0x60] sm:$0xff]   ;;  %v1337_v14 = vshll.u32 %v2304_v3, 16  ;;  %v2301_v15 = vld [vmem:[%s2373_s17 + $0x6c] sm:$0xff]  }
  0x58   : > { %595 = vrot.lane.b32.xlu0 %v577_v13, %s2333_s20  ;;  %v432_v13 = vshll.u32 %v2284_v1, 16  ;;  %v1325_v1 = vshll.u32 %v2302_v55, 16 }
  0x59   : > { %v1484_v27 = vsel %vm562_vm0, %v1482_v12, %v1483_v16  ;;  %v2305_v12 = vld [vmem:[%s2373_s17 + $0x74] ss:$0 sps:$4 sm:$0x11]   ;;  %v2306_v16 = vld [vmem:[%s2373_s17] sm:$0xff]   ;;  %v1339_v18 = vrot.slane %v1337_v14, 1 }
  0x5a   : > { %v1327_v8 = vrot.slane %v1325_v1, 1  ;;  %248 = vst.msk [vmem:[#allocation2] sm:$0xff] %vm247_vm2, %v2306_v16 }
  0x5b   : > { %687 = vrot.lane.b32.xlu1 %v2263_v21, %s2331_s18  ;;  %v2286_v21 = vld [vmem:[%s2373_s17 + $0x48] sm:$0xfe]  }
  0x5c   : > { %685 = vrot.lane.b32.xlu0 %v2262_v19, %s2331_s18  ;;  %v434_v19 = vrot.slane %v432_v13, 1  ;;  %v581_v25 = vrot.slane %v2286_v21, 1  ;;  %v1335_v13 = vshrl.u32 %v2304_v3, 16 }
  0x5e   : > { %v435_v22 = vor.u32 %v434_v19, %v430_v11  ;;  %v583_v37 = vsel %vm562_vm0, %v581_v25, %v582_v29  ;;  %v1330_v11 = vshll.u32 %v2303_v2, 16  ;;  %v1342_v19 = vshll.u32 %v2305_v12, 16  ;;  %v2308_v25 = vld [vmem:[%s2373_s17 + $0x68] ss:$0 sps:$4 sm:$0x11]  }
  0x5f   : > { %904 = vrot.lane.b32.xlu1 %v869_v38, %s2335_s22  ;;  %v2293_v38 = vld [vmem:[%s2373_s17 + $0x5c] ss:$0 sps:$4 sm:$0x11]   ;;  %v1340_v23 = vor.u32 %v1339_v18, %v1335_v13  ;;  %v2310_v29 = vld [vmem:[%s2373_s17 + $0x74] ss:$0 sps:$4 sm:$0x11]  }
  0x60   : > { %902 = vrot.lane.b32.xlu0 %v857_v35, %s2335_s22  ;;  %v440_v34 = vsel %vm344_vm1, %v435_v22, %v439_v28  ;;  %v585_v35 = vrot.slane %v2289_v30, 1  ;;  %v878_v45 = vshll.u32 %v2293_v38, 16  ;;  %v2307_v22 = vld [vmem:[%s2373_s17 + $0x60] sm:$0xfe]   ;;  %v1344_v24 = vrot.slane %v1342_v19, 1 }
  0x61   : > { %v2309_v28 = vld [vmem:[%s2373_s17 + $0x6c] sm:$0xfe]   ;;  %v1485_v31 = vrot.slane %v2307_v22, 1 }
  0x62   : > { %v586_v40 = vsel %vm562_vm0, %v584_v32, %v585_v35  ;;  %v1486_v32 = vrot.slane %v2308_v25, 1  ;;  %v1345_v33 = vsel %vm344_vm1, %v1340_v23, %v1344_v24  ;;  %v1489_v35 = vrot.slane %v2310_v29, 1 }
  0x63   : > { %1049 = vrot.lane.b32.xlu1 %v1032_v46, %s2332_s19  ;;  %v2295_v46 = vld [vmem:[%s2373_s17 + $0x68] ss:$0 sps:$4 sm:$0x11]  }
  0x64   : > { %1047 = vrot.lane.b32.xlu0 %v1029_v43, %s2332_s19  ;;  %v2290_v43 = vld [vmem:[%s2373_s17 + $0x54] sm:$0xff]   ;;  %v890_v51 = vshll.u32 %v2295_v46, 16  ;;  %v1487_v41 = vsel %vm562_vm0, %v1485_v31, %v1486_v32 }
  0x66   : > { %v892_v56 = vrot.slane %v890_v51, 1  ;;  %v2316_v51 = vld [vmem:[%s2741_s1 + $0x18] sm:$0xff]  }
  0x67   : > { %1139 = vrot.lane.b32.xlu1 %v2273_v50, %s2336_s23  ;;  %v880_v50 = vrot.slane %v878_v45, 1  ;;  %v2319_v45 = vld [vmem:[%s2373_s17 + $0x30] sm:$0xff]  }
  0x68   : > { %1137 = vrot.lane.b32.xlu0 %v2272_v47, %s2336_s23  ;;  %v2291_v47 = vld [vmem:[%s2373_s17 + $0x60] sm:$0xff]   ;;  %v893_v62 = vsel %vm344_vm1, %v888_v53, %v892_v56  ;;  %252 = vst.msk [vmem:[#allocation2 + $0x20] sm:$0xff] %vm247_vm2, %v2319_v45 }
  0x69   : > { %v881_v61 = vsel %vm344_vm1, %v876_v49, %v880_v50  ;;  %v2322_v49 = vld [vmem:[%s2373_s17 + $0x54] sm:$0xff]  }
  0x6a   : > { %255 = vst.msk [vmem:[#allocation2 + $0x38] sm:$0xff] %vm247_vm2, %v2322_v49 }
  0x6b   : > { %1356 = vrot.lane.b32.xlu1 %v1321_v7, %s2337_s24  ;;  %v1323_v7 = vshrl.u32 %v2302_v55, 16 }
  0x6c   : > { %1354 = vrot.lane.b32.xlu0 %v1309_v5, %s2337_s24 }
  0x6d   : > { %v1328_v21 = vor.u32 %v1327_v8, %v1323_v7 }
  0x6f   : > { %453 = vrot.lane.b32.xlu1 %v428_v20, %s2334_s21  ;;  %v2311_v20 = vld [vmem:[%s2373_s17 + $0xc] sm:$0xff]  }
  0x70   : > { %1499 = vrot.lane.b32.xlu0 %v1481_v17, %s2338_s25  ;;  %v1332_v17 = vrot.slane %v1330_v11, 1  ;;  %249 = vst.msk [vmem:[#allocation2 + $0x8] sm:$0xff] %vm247_vm2, %v2311_v20 }
  0x72   : > { %v1333_v30 = vsel %vm344_vm1, %v1328_v21, %v1332_v17 }
  0x73   : > { %455 = vrot.lane.b32.xlu1 %v440_v34, %s2334_s21  ;;  %v1488_v34 = vrot.slane %v2309_v28, 1 }
  0x74   : > { %1501 = vrot.lane.b32.xlu0 %v1484_v27, %s2338_s25 }
  0x75   : > { %v1490_v44 = vsel %vm562_vm0, %v1488_v34, %v1489_v35 }
  0x77   : > { %601 = vrot.lane.b32.xlu1 %v586_v40, %s2333_s20 }
  0x78   : > { %599 = vrot.lane.b32.xlu0 %v583_v37, %s2333_s20  ;;  %v2313_v37 = vld [vmem:[%s2741_s1 + $0x8] sm:$0xff]  }
  0x79   : > { %2145 = vmatprep.subr.bf16.mxu0 %v2313_v37  ;;  %2170 = vmatprep.subr.bf16.mxu1 %v2313_v37 }
  0x7a   : > { %2146 = vmatpush3.bf16.msra.mxu0 %v2313_v37  ;;  %2175 = vmatpush3.bf16.msra.mxu1 %v2313_v37 }
  0x7b   : > { %691 = vrot.lane.b32.xlu1 %v2291_v47, %s2331_s18  ;;  %v2320_v47 = vld [vmem:[%s2373_s17 + $0x3c] sm:$0xff]   ;;  %2147 = vmatprep.subr.bf16.mxu0 %v2314_v42 }
  0x7c   : > { %689 = vrot.lane.b32.xlu0 %v2290_v43, %s2331_s18  ;;  %v2317_v43 = vld [vmem:[%s2373_s17 + $0x24] sm:$0xff]   ;;  %253 = vst.msk [vmem:[#allocation2 + $0x28] sm:$0xff] %vm247_vm2, %v2320_v47  ;;  %2171 = vmatprep.subr.bf16.mxu1 %v2314_v42  ;;  %s181_s18 = scalar_lea.vmem %s2743_s3, %s1865_s15 }
  0x7d   : > { %251 = vst.msk [vmem:[#allocation2 + $0x18] sm:$0xff] %vm247_vm2, %v2317_v43 }
  0x7e   : > { %2148 = vmatpush3.bf16.msra.mxu0 %v2314_v42  ;;  %2176 = vmatpush3.bf16.msra.mxu1 %v2314_v42 }
  0x7f   : > { %908 = vrot.lane.b32.xlu1 %v893_v62, %s2335_s22  ;;  %2149 = vmatprep.subr.bf16.mxu0 %v2316_v51 }
  0x80   : > { %906 = vrot.lane.b32.xlu0 %v881_v61, %s2335_s22  ;;  %2172 = vmatprep.subr.bf16.mxu1 %v2316_v51 }
  0x82   : > { %2150 = vmatpush3.bf16.msra.mxu0 %v2316_v51  ;;  %2177 = vmatpush3.bf16.msra.mxu1 %v2316_v51 }
  0x83   : > { %1053 = vrot.lane.b32.xlu1 %v1038_v9, %s2332_s19  ;;  %2179 = vmatprep.subr.msk.bf16.mxu0 %vm1593_vm9, %v2318_v54 }
  0x84   : > { %v2579_v5 = vpop.permute.xlu1 %679  ;;  %v2581_v6 = vpop.permute.xlu0 %677  ;;  %1051 = vrot.lane.b32.xlu0 %v1035_v4, %s2332_s19  ;;  %2180 = vmatprep.subr.msk.bf16.mxu1 %vm1593_vm9, %v2318_v54 }
  0x86   : > { %2152 = vmatpush3.bf16.msra.mxu0 %v1595_v57  ;;  %2178 = vmatpush3.bf16.msra.mxu1 %v1595_v57 }
  0x87   : > { %1143 = vrot.lane.b32.xlu1 %v2301_v15, %s2336_s23 }
  0x88   : > { %v2595_v26 = vpop.permute.xlu0 %1039  ;;  %1141 = vrot.lane.b32.xlu0 %v2300_v10, %s2336_s23 }
  0x89   : > { %v588_v27 = vpop.permute.xlu1 %587 }
  0x8b   : > { %1360 = vrot.lane.b32.xlu1 %v1345_v33, %s2337_s24 }
  0x8c   : > { %1358 = vrot.lane.b32.xlu0 %v1333_v30, %s2337_s24 }
  0x8d   : > { %v590_v38 = vpop.permute.xlu1 %589 }
  0x8e   : > { %v442_v40 = vpop.permute.xlu0 %441 }
  0x8f   : > { %466 = vst.msk [vmem:[#allocation2] sm:$0xff] %vm465_vm3, %v442_v40  ;;  %1505 = vrot.lane.b32.xlu1 %v1490_v44, %s2338_s25 }
  0x90   : > { %612 = vst.msk [vmem:[#allocation2] sm:$0xff] %vm611_vm4, %v588_v27  ;;  %1503 = vrot.lane.b32.xlu0 %v1487_v41, %s2338_s25 }
  0x91   : > { %v1042_v46 = vpop.permute.xlu1 %1041  ;;  %702 = vst.msk [vmem:[#allocation2] sm:$0xff] %vm701_vm5, %v2581_v6 }
  0x92   : > { %v444_v50 = vpop.permute.xlu0 %443 }
  0x93   : > { %467 = vst.msk [vmem:[#allocation2 + $0x8] sm:$0xff] %vm465_vm3, %v444_v50 }
  0x94   : > { %613 = vst.msk [vmem:[#allocation2 + $0x8] sm:$0xff] %vm611_vm4, %v590_v38 }
  0x95   : > { %v897_v52 = vpop.permute.xlu1 %896  ;;  %703 = vst.msk [vmem:[#allocation2 + $0x8] sm:$0xff] %vm701_vm5, %v2579_v5 }
  0x96   : > { %920 = vst.msk [vmem:[#allocation2 + $0x8] sm:$0xff] %vm918_vm6, %v897_v52  ;;  %v895_v53 = vpop.permute.xlu0 %894 }
  0x97   : > { %919 = vst.msk [vmem:[#allocation2] sm:$0xff] %vm918_vm6, %v895_v53 }
  0x98   : > { %1065 = vst.msk [vmem:[#allocation2 + $0x8] sm:$0xff] %vm1063_vm7, %v1042_v46  ;;  %1064 = vst.msk [vmem:[#allocation2] sm:$0xff] %vm1063_vm7, %v2595_v26 }
  0x99   : > { %v1132_v55 = vpop.permute.xlu1 %1131 }
  0x9a   : > { %1155 = vst.msk [vmem:[#allocation2 + $0x8] sm:$0xff] %vm1153_vm8, %v1132_v55  ;;  %v1130_v56 = vpop.permute.xlu0 %1129 }
  0x9b   : > { %1154 = vst.msk [vmem:[#allocation2] sm:$0xff] %vm1153_vm8, %v1130_v56 }
  0x9d   : > { %v1349_v58 = vpop.permute.xlu1 %1348 }
  0x9e   : > { %v1347_v59 = vpop.permute.xlu0 %1346  ;;  %1372 = vst.msk [vmem:[#allocation2 + $0x8] sm:$0xff] %vm1370_vm10, %v1349_v58 }
  0x9f   : > { %1371 = vst.msk [vmem:[#allocation2] sm:$0xff] %vm1370_vm10, %v1347_v59 }
  0xa1   : > { %v446_v61 = vpop.permute.xlu1 %445 }
  0xa2   : > { %v1492_v60 = vpop.permute.xlu0 %1491  ;;  %468 = vst.msk [vmem:[#allocation2 + $0x10] sm:$0xff] %vm465_vm3, %v446_v61 }
  0xa3   : > { %1516 = vst.msk [vmem:[#allocation2] sm:$0xff] %vm1515_vm11, %v1492_v60 }
  0xa5   : > { %v448_v63 = vpop.permute.xlu1 %447 }
  0xa6   : > { %v1494_v62 = vpop.permute.xlu0 %1493  ;;  %469 = vst.msk [vmem:[#allocation2 + $0x18] sm:$0xff] %vm465_vm3, %v448_v63 }
  0xa7   : > { %1517 = vst.msk [vmem:[#allocation2 + $0x8] sm:$0xff] %vm1515_vm11, %v1494_v62 }
  0xa9   : > { %v594_v2 = vpop.permute.xlu1 %593 }
  0xaa   : > { %v592_v0 = vpop.permute.xlu0 %591  ;;  %v1524_v1 = vld [vmem:[#allocation2] sm:$0xff]  ;;  %615 = vst.msk [vmem:[#allocation2 + $0x18] sm:$0xff] %vm611_vm4, %v594_v2 }
  0xab   : > { %614 = vst.msk [vmem:[#allocation2 + $0x10] sm:$0xff] %vm611_vm4, %v592_v0  ;;  %2153 = vmatprep.mubr.msk.bf16.mxu0 %vm1568_vm12, %v1524_v1 }
  0xad   : > { %v684_v5 = vpop.permute.xlu1 %683 }
  0xae   : > { %v682_v3 = vpop.permute.xlu0 %681  ;;  %v1525_v4 = vld [vmem:[#allocation2 + $0x8] sm:$0xff]  ;;  %705 = vst.msk [vmem:[#allocation2 + $0x18] sm:$0xff] %vm701_vm5, %v684_v5 }
  0xaf   : > { %704 = vst.msk [vmem:[#allocation2 + $0x10] sm:$0xff] %vm701_vm5, %v682_v3  ;;  %2154 = vmatmul.mubr.msk.bf16.vlgmr.msra.gmra.mrb[0].mxu0 %vm1568_vm12, %v1525_v4 }
  0xb1   : > { %v901_v7 = vpop.permute.xlu1 %900 }
  0xb2   : > { %v899_v6 = vpop.permute.xlu0 %898  ;;  %922 = vst.msk [vmem:[#allocation2 + $0x18] sm:$0xff] %vm918_vm6, %v901_v7 }
  0xb3   : > { %921 = vst.msk [vmem:[#allocation2 + $0x10] sm:$0xff] %vm918_vm6, %v899_v6 }
  0xb5   : > { %v1046_v9 = vpop.permute.xlu1 %1045 }
  0xb6   : > { %v1044_v8 = vpop.permute.xlu0 %1043  ;;  %1067 = vst.msk [vmem:[#allocation2 + $0x18] sm:$0xff] %vm1063_vm7, %v1046_v9 }
  0xb7   : > { %1066 = vst.msk [vmem:[#allocation2 + $0x10] sm:$0xff] %vm1063_vm7, %v1044_v8 }
  0xb9   : > { %v1136_v11 = vpop.permute.xlu1 %1135 }
  0xba   : > { %v1134_v10 = vpop.permute.xlu0 %1133  ;;  %1157 = vst.msk [vmem:[#allocation2 + $0x18] sm:$0xff] %vm1153_vm8, %v1136_v11 }
  0xbb   : > { %1156 = vst.msk [vmem:[#allocation2 + $0x10] sm:$0xff] %vm1153_vm8, %v1134_v10 }
  0xbd   : > { %v1353_v13 = vpop.permute.xlu1 %1352 }
  0xbe   : > { %v1351_v12 = vpop.permute.xlu0 %1350  ;;  %1374 = vst.msk [vmem:[#allocation2 + $0x18] sm:$0xff] %vm1370_vm10, %v1353_v13 }
  0xbf   : > { %1373 = vst.msk [vmem:[#allocation2 + $0x10] sm:$0xff] %vm1370_vm10, %v1351_v12 }
  0xc1   : > { %v450_v15 = vpop.permute.xlu1 %449 }
  0xc2   : > { %v1496_v14 = vpop.permute.xlu0 %1495  ;;  %470 = vst.msk [vmem:[#allocation2 + $0x20] sm:$0xff] %vm465_vm3, %v450_v15 }
  0xc3   : > { %1518 = vst.msk [vmem:[#allocation2 + $0x10] sm:$0xff] %vm1515_vm11, %v1496_v14 }
  0xc5   : > { %v452_v17 = vpop.permute.xlu1 %451 }
  0xc6   : > { %v1498_v16 = vpop.permute.xlu0 %1497  ;;  %471 = vst.msk [vmem:[#allocation2 + $0x28] sm:$0xff] %vm465_vm3, %v452_v17 }
  0xc7   : > { %1519 = vst.msk [vmem:[#allocation2 + $0x18] sm:$0xff] %vm1515_vm11, %v1498_v16 }
  0xc9   : > { %v598_v20 = vpop.permute.xlu1 %597 }
  0xca   : > { %v596_v18 = vpop.permute.xlu0 %595  ;;  %v1526_v19 = vld [vmem:[#allocation2 + $0x10] sm:$0xff]  ;;  %617 = vst.msk [vmem:[#allocation2 + $0x28] sm:$0xff] %vm611_vm4, %v598_v20 }
  0xcb   : > { %616 = vst.msk [vmem:[#allocation2 + $0x20] sm:$0xff] %vm611_vm4, %v596_v18  ;;  %2157 = vmatprep.mubr.msk.bf16.mxu0 %vm1568_vm12, %v1526_v19 }
  0xcd   : > { %v688_v23 = vpop.permute.xlu1 %687 }
  0xce   : > { %v686_v21 = vpop.permute.xlu0 %685  ;;  %v1527_v22 = vld [vmem:[#allocation2 + $0x18] sm:$0xff]  ;;  %707 = vst.msk [vmem:[#allocation2 + $0x28] sm:$0xff] %vm701_vm5, %v688_v23 }
  0xcf   : > { %706 = vst.msk [vmem:[#allocation2 + $0x20] sm:$0xff] %vm701_vm5, %v686_v21  ;;  %2158 = vmatmul.mubr.msk.bf16.gmra.mrb[4].mxu0 %vm1568_vm12, %v1527_v22 }
  0xd1   : > { %v905_v25 = vpop.permute.xlu1 %904 }
  0xd2   : > { %v903_v24 = vpop.permute.xlu0 %902  ;;  %924 = vst.msk [vmem:[#allocation2 + $0x28] sm:$0xff] %vm918_vm6, %v905_v25 }
  0xd3   : > { %923 = vst.msk [vmem:[#allocation2 + $0x20] sm:$0xff] %vm918_vm6, %v903_v24 }
  0xd5   : > { %v1050_v27 = vpop.permute.xlu1 %1049 }
  0xd6   : > { %v1048_v26 = vpop.permute.xlu0 %1047  ;;  %1069 = vst.msk [vmem:[#allocation2 + $0x28] sm:$0xff] %vm1063_vm7, %v1050_v27 }
  0xd7   : > { %1068 = vst.msk [vmem:[#allocation2 + $0x20] sm:$0xff] %vm1063_vm7, %v1048_v26 }
  0xd9   : > { %v1140_v29 = vpop.permute.xlu1 %1139 }
  0xda   : > { %v1138_v28 = vpop.permute.xlu0 %1137  ;;  %1159 = vst.msk [vmem:[#allocation2 + $0x28] sm:$0xff] %vm1153_vm8, %v1140_v29 }
  0xdb   : > { %1158 = vst.msk [vmem:[#allocation2 + $0x20] sm:$0xff] %vm1153_vm8, %v1138_v28 }
  0xdd   : > { %v1357_v31 = vpop.permute.xlu1 %1356 }
  0xde   : > { %v1355_v30 = vpop.permute.xlu0 %1354  ;;  %1376 = vst.msk [vmem:[#allocation2 + $0x28] sm:$0xff] %vm1370_vm10, %v1357_v31 }
  0xdf   : > { %1375 = vst.msk [vmem:[#allocation2 + $0x20] sm:$0xff] %vm1370_vm10, %v1355_v30 }
  0xe1   : > { %v454_v33 = vpop.permute.xlu1 %453 }
  0xe2   : > { %v1500_v32 = vpop.permute.xlu0 %1499  ;;  %472 = vst.msk [vmem:[#allocation2 + $0x30] sm:$0xff] %vm465_vm3, %v454_v33 }
  0xe3   : > { %1520 = vst.msk [vmem:[#allocation2 + $0x20] sm:$0xff] %vm1515_vm11, %v1500_v32 }
  0xe5   : > { %v456_v35 = vpop.permute.xlu1 %455 }
  0xe6   : > { %v1502_v34 = vpop.permute.xlu0 %1501  ;;  %473 = vst.msk [vmem:[#allocation2 + $0x38] sm:$0xff] %vm465_vm3, %v456_v35 }
  0xe7   : > { %1521 = vst.msk [vmem:[#allocation2 + $0x28] sm:$0xff] %vm1515_vm11, %v1502_v34 }
  0xe9   : > { %v602_v38 = vpop.permute.xlu1 %601 }
  0xea   : > { %v600_v36 = vpop.permute.xlu0 %599  ;;  %v1528_v37 = vld [vmem:[#allocation2 + $0x20] sm:$0xff]  ;;  %619 = vst.msk [vmem:[#allocation2 + $0x38] sm:$0xff] %vm611_vm4, %v602_v38 }
  0xeb   : > { %618 = vst.msk [vmem:[#allocation2 + $0x30] sm:$0xff] %vm611_vm4, %v600_v36  ;;  %2161 = vmatprep.mubr.msk.bf16.mxu1 %vm1568_vm12, %v1528_v37 }
  0xed   : > { %v692_v41 = vpop.permute.xlu1 %691 }
  0xee   : > { %v690_v39 = vpop.permute.xlu0 %689  ;;  %v1529_v40 = vld [vmem:[#allocation2 + $0x28] sm:$0xff]  ;;  %709 = vst.msk [vmem:[#allocation2 + $0x38] sm:$0xff] %vm701_vm5, %v692_v41 }
  0xef   : > { %708 = vst.msk [vmem:[#allocation2 + $0x30] sm:$0xff] %vm701_vm5, %v690_v39  ;;  %2162 = vmatmul.mubr.msk.bf16.vlgmr.msra.gmra.mrb[0].mxu1 %vm1568_vm12, %v1529_v40 }
  0xf1   : > { %v909_v43 = vpop.permute.xlu1 %908 }
  0xf2   : > { %v907_v42 = vpop.permute.xlu0 %906  ;;  %926 = vst.msk [vmem:[#allocation2 + $0x38] sm:$0xff] %vm918_vm6, %v909_v43 }
  0xf3   : > { %925 = vst.msk [vmem:[#allocation2 + $0x30] sm:$0xff] %vm918_vm6, %v907_v42 }
  0xf5   : > { %v1054_v45 = vpop.permute.xlu1 %1053 }
  0xf6   : > { %v1052_v44 = vpop.permute.xlu0 %1051  ;;  %1071 = vst.msk [vmem:[#allocation2 + $0x38] sm:$0xff] %vm1063_vm7, %v1054_v45 }
  0xf7   : > { %1070 = vst.msk [vmem:[#allocation2 + $0x30] sm:$0xff] %vm1063_vm7, %v1052_v44 }
  0xf9   : > { %v1144_v47 = vpop.permute.xlu1 %1143 }
  0xfa   : > { %v1142_v46 = vpop.permute.xlu0 %1141  ;;  %1161 = vst.msk [vmem:[#allocation2 + $0x38] sm:$0xff] %vm1153_vm8, %v1144_v47 }
  0xfb   : > { %1160 = vst.msk [vmem:[#allocation2 + $0x30] sm:$0xff] %vm1153_vm8, %v1142_v46 }
  0xfd   : > { %v1361_v49 = vpop.permute.xlu1 %1360 }
  0xfe   : > { %v1359_v48 = vpop.permute.xlu0 %1358  ;;  %1378 = vst.msk [vmem:[#allocation2 + $0x38] sm:$0xff] %vm1370_vm10, %v1361_v49 }
  0xff   : > { %1377 = vst.msk [vmem:[#allocation2 + $0x30] sm:$0xff] %vm1370_vm10, %v1359_v48 }
 0x101   : > { %v1506_v51 = vpop.permute.xlu1 %1505 }
 0x102   : > { %v1504_v50 = vpop.permute.xlu0 %1503  ;;  %1523 = vst.msk [vmem:[#allocation2 + $0x38] sm:$0xff] %vm1515_vm11, %v1506_v51 }
 0x103   : > { %1522 = vst.msk [vmem:[#allocation2 + $0x30] sm:$0xff] %vm1515_vm11, %v1504_v50 }
 0x109   : > { %v1531_v53 = vld [vmem:[#allocation2 + $0x38] sm:$0xff] }
 0x10a   : > { %v1530_v52 = vld [vmem:[#allocation2 + $0x30] sm:$0xff] }
 0x10b   : > { %2165 = vmatprep.mubr.msk.bf16.mxu1 %vm1568_vm12, %v1530_v52 }
 0x10c   : > { %2166 = vmatmul.mubr.msk.bf16.gmra.mrb[4].mxu1 %vm1568_vm12, %v1531_v53 }
 0x182   : > { %v2155_v54 = vpop.f32.mrb[0].mxu0 }
 0x183   : > { %1696 = vst [vmem:[%s2715_s14 + $0x10] sm:$0xff] %v2155_v54  ;;  %v1631_v55 = vpop.f32.mrb[1].mxu0  ;;  %v1733_v61 = vmul.f32 %v2155_v54, %v2155_v54 }
 0x184   : > { %1694 = vst [vmem:[%s2715_s14] sm:$0xff] %v1631_v55  ;;  %v2156_v56 = vpop.f32.mrb[2].mxu0  ;;  %v1731_v58 = vmul.f32 %v1631_v55, %v1631_v55 }
 0x185   : > { %1697 = vst [vmem:[%s2715_s14 + $0x18] sm:$0xff] %v2156_v56  ;;  %v1634_v57 = vpop.f32.mrb[3].mxu0  ;;  %v1734_v0 = vmul.f32 %v2156_v56, %v2156_v56 }
 0x186   : > { %1695 = vst [vmem:[%s2715_s14 + $0x8] sm:$0xff] %v1634_v57  ;;  %v1710_v59 = vadd.f32 %v1634_v57, %v1631_v55  ;;  %v1732_v60 = vmul.f32 %v1634_v57, %v1634_v57 }
 0x188   : > { %v1711_v62 = vadd.f32 %v2155_v54, %v1710_v59  ;;  %v1747_v63 = vadd.f32 %v1732_v60, %v1731_v58 }
 0x18a   : > { %v1748_v1 = vadd.f32 %v1747_v63, %v1733_v61  ;;  %v1712_v2 = vadd.f32 %v2156_v56, %v1711_v62 }
 0x18c   : > { %v1749_v3 = vadd.f32 %v1748_v1, %v1734_v0 }
 0x1a2   : > { %v2159_v4 = vpop.f32.mrb[4].mxu0 }
 0x1a3   : > { %1700 = vst [vmem:[%s2715_s14 + $0x30] sm:$0xff] %v2159_v4  ;;  %v1647_v5 = vpop.f32.mrb[5].mxu0  ;;  %v1737_v13 = vmul.f32 %v2159_v4, %v2159_v4 }
 0x1a4   : > { %1698 = vst [vmem:[%s2715_s14 + $0x20] sm:$0xff] %v1647_v5  ;;  %v1713_v6 = vadd.f32 %v1712_v2, %v1647_v5  ;;  %v1735_v7 = vmul.f32 %v1647_v5, %v1647_v5  ;;  %v2160_v8 = vpop.f32.mrb[6].mxu0 }
 0x1a5   : > { %1701 = vst [vmem:[%s2715_s14 + $0x38] sm:$0xff] %v2160_v8  ;;  %v1650_v9 = vpop.f32.mrb[7].mxu0  ;;  %v1738_v16 = vmul.f32 %v2160_v8, %v2160_v8 }
 0x1a6   : > { %v1750_v10 = vadd.f32 %v1749_v3, %v1735_v7  ;;  %1699 = vst [vmem:[%s2715_s14 + $0x28] sm:$0xff] %v1650_v9  ;;  %v1714_v11 = vadd.f32 %v1713_v6, %v1650_v9  ;;  %v1736_v12 = vmul.f32 %v1650_v9, %v1650_v9 }
 0x1a8   : > { %v1715_v14 = vadd.f32 %v2159_v4, %v1714_v11  ;;  %v1751_v15 = vadd.f32 %v1750_v10, %v1736_v12 }
 0x1aa   : > { %v1752_v17 = vadd.f32 %v1751_v15, %v1737_v13  ;;  %v1716_v18 = vadd.f32 %v2160_v8, %v1715_v14 }
 0x1ac   : > { %v1753_v19 = vadd.f32 %v1752_v17, %v1738_v16 }
 0x1c2   : > { %v2163_v20 = vpop.f32.mrb[0].mxu1 }
 0x1c3   : > { %1704 = vst [vmem:[%s2715_s14 + $0x50] sm:$0xff] %v2163_v20  ;;  %v1663_v21 = vpop.f32.mrb[1].mxu1  ;;  %v1741_v29 = vmul.f32 %v2163_v20, %v2163_v20 }
 0x1c4   : > { %1702 = vst [vmem:[%s2715_s14 + $0x40] sm:$0xff] %v1663_v21  ;;  %v1717_v22 = vadd.f32 %v1716_v18, %v1663_v21  ;;  %v1739_v23 = vmul.f32 %v1663_v21, %v1663_v21  ;;  %v2164_v24 = vpop.f32.mrb[2].mxu1 }
 0x1c5   : > { %1705 = vst [vmem:[%s2715_s14 + $0x58] sm:$0xff] %v2164_v24  ;;  %v1666_v25 = vpop.f32.mrb[3].mxu1  ;;  %v1742_v32 = vmul.f32 %v2164_v24, %v2164_v24 }
 0x1c6   : > { %v1754_v26 = vadd.f32 %v1753_v19, %v1739_v23  ;;  %1703 = vst [vmem:[%s2715_s14 + $0x48] sm:$0xff] %v1666_v25  ;;  %v1718_v27 = vadd.f32 %v1717_v22, %v1666_v25  ;;  %v1740_v28 = vmul.f32 %v1666_v25, %v1666_v25 }
 0x1c8   : > { %v1719_v30 = vadd.f32 %v2163_v20, %v1718_v27  ;;  %v1755_v31 = vadd.f32 %v1754_v26, %v1740_v28 }
 0x1ca   : > { %v1756_v33 = vadd.f32 %v1755_v31, %v1741_v29  ;;  %v1720_v34 = vadd.f32 %v2164_v24, %v1719_v30 }
 0x1cc   : > { %v1757_v35 = vadd.f32 %v1756_v33, %v1742_v32 }
 0x1df   : > { %v2167_v36 = vpop.f32.mrb[4].mxu1 }
 0x1e0   : > { %1708 = vst [vmem:[%s2715_s14 + $0x70] sm:$0xff] %v2167_v36  ;;  %v1679_v37 = vpop.f32.mrb[5].mxu1  ;;  %v1745_v45 = vmul.f32 %v2167_v36, %v2167_v36 }
 0x1e1   : > { %1706 = vst [vmem:[%s2715_s14 + $0x60] sm:$0xff] %v1679_v37  ;;  %v1721_v38 = vadd.f32 %v1720_v34, %v1679_v37  ;;  %v1743_v39 = vmul.f32 %v1679_v37, %v1679_v37  ;;  %v2168_v40 = vpop.f32.mrb[6].mxu1 }
 0x1e2   : > { %1709 = vst [vmem:[%s2715_s14 + $0x78] sm:$0xff] %v2168_v40  ;;  %v1682_v41 = vpop.f32.mrb[7].mxu1  ;;  %v1746_v48 = vmul.f32 %v2168_v40, %v2168_v40 }
 0x1e3   : > { %v1758_v42 = vadd.f32 %v1757_v35, %v1743_v39  ;;  %1707 = vst [vmem:[%s2715_s14 + $0x68] sm:$0xff] %v1682_v41  ;;  %v1722_v43 = vadd.f32 %v1721_v38, %v1682_v41  ;;  %v1744_v44 = vmul.f32 %v1682_v41, %v1682_v41 }
 0x1e5   : > { %v1723_v46 = vadd.f32 %v2167_v36, %v1722_v43  ;;  %v1759_v47 = vadd.f32 %v1758_v42, %v1744_v44 }
 0x1e7   : > { %v1724_v49 = vadd.f32 %v2168_v40, %v1723_v46  ;;  %v1760_v50 = vadd.f32 %v1759_v47, %v1745_v45 }
 0x1e9   : > { %v1725_v51 = vrot.slane %v1724_v49, 4  ;;  %v1761_v52 = vadd.f32 %v1760_v50, %v1746_v48 }
 0x1eb   : > { %v1726_v53 = vadd.f32 %v1725_v51, %v1724_v49  ;;  %v1762_v54 = vrot.slane %v1761_v52, 4 }
 0x1ed   : > { %v1727_v55 = vrot.slane %v1726_v53, 2  ;;  %v1763_v56 = vadd.f32 %v1762_v54, %v1761_v52 }
 0x1ef   : > { %v1728_v57 = vadd.f32 %v1727_v55, %v1726_v53  ;;  %v1764_v58 = vrot.slane %v1763_v56, 2 }
 0x1f1   : > { %v1729_v59 = vrot.slane %v1728_v57, 1  ;;  %v1765_v60 = vadd.f32 %v1764_v58, %v1763_v56 }
 0x1f3   : > { %v1766_v61 = vrot.slane %v1765_v60, 1  ;;  %v1730_v62 = vadd.f32 %v1729_v59, %v1728_v57 }
 0x1f5   : > { %v1767_v63 = vadd.f32 %v1766_v61, %v1765_v60 }
 0x1f7   : > { %v1769_v0 = vsel %vm1768_vm13, %v1730_v62, %v1767_v63 }
 0x1f8   : > { %1770 = vst [vmem:[%s181_s18] sm:$0x3] %v1769_v0 }
 0x1f9 PF: > { %s14_s12 = sadd.s32 1, %s2329_s12  }
 0x1fa   : > { %p11_p4 = scmp.ge.s32.totalorder %s14_s12, 6  }
 0x1fc   :  { %13 = sbr.rel (!%p11_p4) target bundleno = 1 (0x1), region = 72 }

</bundles_post_ra>
